<compile_context>
chip_gen: v6e
topology: v6e:2x2x1
jax: 0.10.0
libtpu: 0.0.40
codegen_flags: <defaults>
</compile_context>

<pallas_src>
import functools

import jax
import jax.numpy as jnp
from jax import lax
from jax.experimental import pallas as pl
from jax.experimental.pallas import tpu as pltpu


def _round_up(a, b):
    return (a + b - 1) // b * b


# -----------------------------------------------------------------------------
# Pallas kernel: one (TM-row, TT-timestep) chunk of the 2-layer LSTM.
#   x_ref    : (TT, TM)   raw input chunk, time-major, rows mapped to lanes
#   w0p_ref  : (4H, KP)   packed [W_hh0 | w_ih0 | b_ih0+b_hh0 | 0]
#   w1p_ref  : (4H, KP)   packed [W_hh1 | b_ih1+b_hh1 | 0]
#   wih1_ref : (4H, H)    layer-1 input weight
#   out_ref  : (TT, H, TM) top-layer hidden states (lane-dense, H-major)
#   s0       : (KP, TM)   packed layer-0 state [h0 ; x_t ; 1 ; 0]   (carried)
#   s1       : (KP, TM)   packed layer-1 state [h1 ; 1 ; 0]         (carried)
#   c0, c1   : (H, TM)    cell states                               (carried)
# -----------------------------------------------------------------------------
def _lstm2_kernel(x_ref, w0p_ref, w1p_ref, wih1_ref, out_ref, s0, s1, c0, c1):
    H, TM = c0.shape
    TT = out_ref.shape[0]

    # Zero state at the first time chunk of each row tile (PyTorch default h0=c0=0)
    # and set the "ones" rows used to fold the biases into the matmuls.
    @pl.when(pl.program_id(1) == 0)
    def _init():
        s0[...] = jnp.zeros_like(s0)
        s1[...] = jnp.zeros_like(s1)
        ones_row = jnp.ones((1, TM), jnp.float32)
        s0[pl.ds(H + 1, 1), :] = ones_row      # bias row for layer 0
        s1[pl.ds(H, 1), :] = ones_row          # bias row for layer 1
        c0[...] = jnp.zeros_like(c0)
        c1[...] = jnp.zeros_like(c1)

    def sigmoid(v):
        # One EUP tanh push instead of exp + reciprocal.
        return 0.5 * jnp.tanh(0.5 * v) + 0.5

    def cell(gates, c_prev):
        # PyTorch gate order along the 4H (sublane) axis: i, f, g, o.
        i = sigmoid(gates[0:H, :])
        f = sigmoid(gates[H:2 * H, :])
        g = jnp.tanh(gates[2 * H:3 * H, :])
        o = sigmoid(gates[3 * H:4 * H, :])
        c_new = f * c_prev + i * g
        return o * jnp.tanh(c_new), c_new

    # Fully-unrolled static time loop over the chunk.
    for t in range(TT):
        # Layer-1 recurrent part: independent of layer 0, so its MXU push can overlap
        # layer-0's EUP chain.   g1p = W_hh1 @ h1_prev + b1
        g1p = jnp.dot(w1p_ref[...], s1[...], preferred_element_type=jnp.float32)

        # Layer 0: drop x_t into the packed state row, then one K=(H+8) matmul gives
        # W_hh0 @ h0 + w_ih0 * x_t + (b_ih0 + b_hh0).
        s0[pl.ds(H, 1), :] = x_ref[pl.ds(t, 1), :]
        gates0 = jnp.dot(w0p_ref[...], s0[...], preferred_element_type=jnp.float32)
        h0n, c0n = cell(gates0, c0[...])
        s0[pl.ds(0, H), :] = h0n
        c0[...] = c0n

        # Layer 1: only this part depends on the fresh h0.
        gates1 = g1p + jnp.dot(wih1_ref[...], h0n, preferred_element_type=jnp.float32)
        h1n, c1n = cell(gates1, c1[...])
        s1[pl.ds(0, H), :] = h1n
        c1[...] = c1n

        # Dense (H, TM) store — full 128-lane vst, no masking.
        out_ref[t] = h1n


# -----------------------------------------------------------------------------
# Wrapper (padding, weight packing, pallas_call, final layout fix-up).
# -----------------------------------------------------------------------------
def temporal_encoder_lstm_forward(x, params, hidden_dim):
    B, N, T = x.shape
    H = hidden_dim
    M = B * N
    KP = H + 8          # packed state rows: [h (H) ; x_t / 1 ; 1 / 0 ; zero pad]

    # Row (lane) tile: multiple of 128 for full lane density; >=2 tiles before using 256.
    Mp = _round_up(M, 128)
    TM = 256 if (Mp >= 512 and Mp % 256 == 0) else 128

    # Time chunk: prefer a divisor of T so no padded timesteps are computed.
    if T <= 16:
        TT = T
    elif T % 16 == 0:
        TT = 16
    elif T % 8 == 0:
        TT = 8
    else:
        TT = 16
    Tp = _round_up(T, TT)

    f32 = jnp.float32

    # Time-major, lane-dense x: (Tp, Mp). Padded rows/steps are computed then stripped.
    xr = x.reshape(M, T).astype(f32)
    xr = jnp.pad(xr, ((0, Mp - M), (0, Tp - T)))
    x_tm = jnp.transpose(xr, (1, 0))                                      # (Tp, Mp)

    w_hh0 = params["w_hh_l0"].astype(f32)                                 # (4H, H)
    w_ih0 = params["w_ih_l0"].astype(f32).reshape(4 * H, 1)               # (4H, 1)
    b0 = (params["b_ih_l0"] + params["b_hh_l0"]).astype(f32).reshape(4 * H, 1)
    w0p = jnp.concatenate(
        [w_hh0, w_ih0, b0, jnp.zeros((4 * H, KP - H - 2), f32)], axis=1)  # (4H, KP)

    w_hh1 = params["w_hh_l1"].astype(f32)                                 # (4H, H)
    b1 = (params["b_ih_l1"] + params["b_hh_l1"]).astype(f32).reshape(4 * H, 1)
    w1p = jnp.concatenate(
        [w_hh1, b1, jnp.zeros((4 * H, KP - H - 1), f32)], axis=1)         # (4H, KP)

    w_ih1 = params["w_ih_l1"].astype(f32)                                 # (4H, H)

    grid = (Mp // TM, Tp // TT)

    out = pl.pallas_call(
        _lstm2_kernel,
        out_shape=jax.ShapeDtypeStruct((Tp, H, Mp), f32),
        grid_spec=pltpu.PrefetchScalarGridSpec(
            num_scalar_prefetch=0,
            grid=grid,
            in_specs=[
                pl.BlockSpec((TT, TM), lambda i, j: (j, i)),        # raw x chunk
                pl.BlockSpec((4 * H, KP), lambda i, j: (0, 0)),     # packed layer-0 W
                pl.BlockSpec((4 * H, KP), lambda i, j: (0, 0)),     # packed layer-1 W_hh
                pl.BlockSpec((4 * H, H), lambda i, j: (0, 0)),      # layer-1 W_ih
            ],
            out_specs=pl.BlockSpec((TT, H, TM), lambda i, j: (j, 0, i)),
            scratch_shapes=[
                pltpu.VMEM((KP, TM), f32),    # s0: [h0 ; x_t ; 1 ; 0]
                pltpu.VMEM((KP, TM), f32),    # s1: [h1 ; 1 ; 0]
                pltpu.VMEM((H, TM), f32),     # c0
                pltpu.VMEM((H, TM), f32),     # c1
            ],
        ),
        compiler_params=pltpu.CompilerParams(
            dimension_semantics=("parallel", "arbitrary"),
        ),
    )(x_tm, w0p, w1p, w_ih1)

    # (Tp, H, Mp) -> strip padding -> (M, T, H) -> (B, N, T, H). Single wrapper transpose.
    out = jnp.transpose(out[:T, :, :M], (2, 0, 1))
    return out.reshape(B, N, T, H)


# -----------------------------------------------------------------------------
# Pure-JAX reference (mirrors torch.nn.LSTM math) for verification.
# -----------------------------------------------------------------------------
def temporal_encoder_lstm_ref(x, params, hidden_dim):
    B, N, T = x.shape
    H = hidden_dim
    M = B * N
    xs = x.reshape(M, T, 1).astype(jnp.float32)

    def run_layer(inp, wih, whh, bih, bhh):
        def step(carry, x_t):
            h, c = carry
            gates = x_t @ wih.T + h @ whh.T + bih + bhh
            i = jax.nn.sigmoid(gates[:, :H])
            f = jax.nn.sigmoid(gates[:, H:2 * H])
            g = jnp.tanh(gates[:, 2 * H:3 * H])
            o = jax.nn.sigmoid(gates[:, 3 * H:])
            c = f * c + i * g
            h = o * jnp.tanh(c)
            return (h, c), h

        h0 = jnp.zeros((M, H), jnp.float32)
        c0 = jnp.zeros((M, H), jnp.float32)
        _, ys = lax.scan(step, (h0, c0), jnp.transpose(inp, (1, 0, 2)))
        return jnp.transpose(ys, (1, 0, 2))                 # (M, T, H)

    out0 = run_layer(xs, params["w_ih_l0"], params["w_hh_l0"],
                     params["b_ih_l0"], params["b_hh_l0"])
    out1 = run_layer(out0, params["w_ih_l1"], params["w_hh_l1"],
                     params["b_ih_l1"], params["b_hh_l1"])
    return out1.reshape(B, N, T, H)


# -----------------------------------------------------------------------------
# Deterministic parameter init (same shapes as nn.LSTM(1, H, num_layers=2)).
# -----------------------------------------------------------------------------
def init_params(key, hidden_dim):
    H = hidden_dim
    bound = 1.0 / jnp.sqrt(H)
    shapes = {
        "w_ih_l0": (4 * H, 1),
        "w_hh_l0": (4 * H, H),
        "b_ih_l0": (4 * H,),
        "b_hh_l0": (4 * H,),
        "w_ih_l1": (4 * H, H),
        "w_hh_l1": (4 * H, H),
        "b_ih_l1": (4 * H,),
        "b_hh_l1": (4 * H,),
    }
    params = {}
    keys = jax.random.split(key, len(shapes))
    for k, (name, shp) in zip(keys, sorted(shapes.items())):
        params[name] = jax.random.uniform(k, shp, jnp.float32, -bound, bound)
    return params


if __name__ == "__main__":
    key = jax.random.PRNGKey(0)
    kx, kp, kx2 = jax.random.split(key, 3)

    # Small shapes consistent with forward(): x is (batch, num_nodes, seq_len).
    B, N, T, H = 2, 4, 8, 32
    x = jax.random.normal(kx, (B, N, T), jnp.float32)
    params = init_params(kp, H)

    fwd = jax.jit(functools.partial(temporal_encoder_lstm_forward, hidden_dim=H))

    out = fwd(x, params)
    jax.block_until_ready(out)
    ref = temporal_encoder_lstm_ref(x, params, H)
    assert out.shape == (B, N, T, H), out.shape
    err = float(jnp.max(jnp.abs(out - ref)))
    assert err < 1e-4, err

    # Second check: multiple row tiles (M=160 -> Mp=256, two TM=128 tiles) and the
    # time-chunk state-carry path (T=40 -> five TT=8 chunks, no padded timesteps).
    B2, N2, T2 = 2, 80, 40
    x2 = jax.random.normal(kx2, (B2, N2, T2), jnp.float32)
    out2 = fwd(x2, params)
    jax.block_until_ready(out2)
    ref2 = temporal_encoder_lstm_ref(x2, params, H)
    assert out2.shape == (B2, N2, T2, H), out2.shape
    err2 = float(jnp.max(jnp.abs(out2 - ref2)))
    assert err2 < 1e-4, err2

    print("KERNEL_OK")
</pallas_src>

<mosaic_0001>
module attributes {stable_mosaic.version = 11 : i64} {
  func.func @_lstm2_kernel(%arg0: i32, %arg1: i32, %arg2: memref<8x128xf32, #tpu.memory_space<vmem>>, %arg3: memref<128x40xf32, #tpu.memory_space<vmem>>, %arg4: memref<128x40xf32, #tpu.memory_space<vmem>>, %arg5: memref<128x32xf32, #tpu.memory_space<vmem>>, %arg6: memref<8x32x128xf32, #tpu.memory_space<vmem>>, %arg7: memref<40x128xf32, #tpu.memory_space<vmem>>, %arg8: memref<40x128xf32, #tpu.memory_space<vmem>>, %arg9: memref<32x128xf32, #tpu.memory_space<vmem>>, %arg10: memref<32x128xf32, #tpu.memory_space<vmem>>) attributes {dimension_semantics = [#tpu.dimension_semantics<parallel>, #tpu.dimension_semantics<arbitrary>], iteration_bounds = array<i64: 1, 1>, scalar_prefetch = 0 : i64, scratch_operands = 4 : i64, tpu.core_type = #tpu.core_type<tc>, window_params = [{transform_indices = @transform_0, window_bounds = array<i64: 8, 128>}, {pipeline_mode = #tpu.pipeline_mode<synchronous>, transform_indices = @transform_1, window_bounds = array<i64: 128, 40>}, {pipeline_mode = #tpu.pipeline_mode<synchronous>, transform_indices = @transform_2, window_bounds = array<i64: 128, 40>}, {pipeline_mode = #tpu.pipeline_mode<synchronous>, transform_indices = @transform_3, window_bounds = array<i64: 128, 32>}, {transform_indices = @transform_4, window_bounds = array<i64: 8, 32, 128>}]} {
    %c0_i32 = arith.constant 0 : i32
    %0 = arith.cmpi eq, %arg1, %c0_i32 : i32
    %1 = arith.extui %0 : i1 to i32
    %c0_i32_0 = arith.constant 0 : i32
    %2 = arith.cmpi ne, %1, %c0_i32_0 : i32
    scf.if %2 {
      %cst_391 = arith.constant 0.000000e+00 : f32
      %659 = vector.broadcast %cst_391 : f32 to vector<40x128xf32>
      %c0_392 = arith.constant 0 : index
      %c0_393 = arith.constant 0 : index
      %660 = vector.load %arg7[%c0_392, %c0_393] : memref<40x128xf32, #tpu.memory_space<vmem>>, vector<40x128xf32>
      tpu.vector_store %arg7[%c0_392, %c0_393], %659 {strides = array<i32>} : memref<40x128xf32, #tpu.memory_space<vmem>>, vector<40x128xf32>,
      %cst_394 = arith.constant 0.000000e+00 : f32
      %661 = vector.broadcast %cst_394 : f32 to vector<40x128xf32>
      %c0_395 = arith.constant 0 : index
      %c0_396 = arith.constant 0 : index
      %662 = vector.load %arg8[%c0_395, %c0_396] : memref<40x128xf32, #tpu.memory_space<vmem>>, vector<40x128xf32>
      tpu.vector_store %arg8[%c0_395, %c0_396], %661 {strides = array<i32>} : memref<40x128xf32, #tpu.memory_space<vmem>>, vector<40x128xf32>,
      %cst_397 = arith.constant 1.000000e+00 : f32
      %663 = vector.broadcast %cst_397 : f32 to vector<1x128xf32>
      %c33 = arith.constant 33 : index
      %c0_398 = arith.constant 0 : index
      %664 = vector.load %arg7[%c33, %c0_398] : memref<40x128xf32, #tpu.memory_space<vmem>>, vector<1x128xf32>
      tpu.vector_store %arg7[%c33, %c0_398], %663 {strides = array<i32>} : memref<40x128xf32, #tpu.memory_space<vmem>>, vector<1x128xf32>,
      %c32_399 = arith.constant 32 : index
      %c0_400 = arith.constant 0 : index
      %665 = vector.load %arg8[%c32_399, %c0_400] : memref<40x128xf32, #tpu.memory_space<vmem>>, vector<1x128xf32>
      tpu.vector_store %arg8[%c32_399, %c0_400], %663 {strides = array<i32>} : memref<40x128xf32, #tpu.memory_space<vmem>>, vector<1x128xf32>,
      %cst_401 = arith.constant 0.000000e+00 : f32
      %666 = vector.broadcast %cst_401 : f32 to vector<32x128xf32>
      %c0_402 = arith.constant 0 : index
      %c0_403 = arith.constant 0 : index
      %667 = vector.load %arg9[%c0_402, %c0_403] : memref<32x128xf32, #tpu.memory_space<vmem>>, vector<32x128xf32>
      tpu.vector_store %arg9[%c0_402, %c0_403], %666 {strides = array<i32>} : memref<32x128xf32, #tpu.memory_space<vmem>>, vector<32x128xf32>,
      %cst_404 = arith.constant 0.000000e+00 : f32
      %668 = vector.broadcast %cst_404 : f32 to vector<32x128xf32>
      %c0_405 = arith.constant 0 : index
      %c0_406 = arith.constant 0 : index
      %669 = vector.load %arg10[%c0_405, %c0_406] : memref<32x128xf32, #tpu.memory_space<vmem>>, vector<32x128xf32>
      tpu.vector_store %arg10[%c0_405, %c0_406], %668 {strides = array<i32>} : memref<32x128xf32, #tpu.memory_space<vmem>>, vector<32x128xf32>,
    } else {
    }
    %c0 = arith.constant 0 : index
    %c0_1 = arith.constant 0 : index
    %3 = vector.load %arg4[%c0, %c0_1] : memref<128x40xf32, #tpu.memory_space<vmem>>, vector<128x40xf32>
    %c0_2 = arith.constant 0 : index
    %c0_3 = arith.constant 0 : index
    %4 = vector.load %arg8[%c0_2, %c0_3] : memref<40x128xf32, #tpu.memory_space<vmem>>, vector<40x128xf32>
    %cst = arith.constant dense<0.000000e+00> : vector<128x128xf32>
    %5 = tpu.matmul %3, %4, %cst {dimension_numbers = #tpu.dot_dimension_numbers<[1], [0], [0], [1], [0, 0, 1, 1], [], []>} : vector<128x40xf32>, vector<40x128xf32>, vector<128x128xf32> -> vector<128x128xf32>
    %c0_4 = arith.constant 0 : index
    %c0_5 = arith.constant 0 : index
    %6 = vector.load %arg2[%c0_4, %c0_5] : memref<8x128xf32, #tpu.memory_space<vmem>>, vector<1x128xf32>
    %c32 = arith.constant 32 : index
    %c0_6 = arith.constant 0 : index
    %7 = vector.load %arg7[%c32, %c0_6] : memref<40x128xf32, #tpu.memory_space<vmem>>, vector<1x128xf32>
    tpu.vector_store %arg7[%c32, %c0_6], %6 {strides = array<i32>} : memref<40x128xf32, #tpu.memory_space<vmem>>, vector<1x128xf32>,
    %c0_7 = arith.constant 0 : index
    %c0_8 = arith.constant 0 : index
    %8 = vector.load %arg3[%c0_7, %c0_8] : memref<128x40xf32, #tpu.memory_space<vmem>>, vector<128x40xf32>
    %c0_9 = arith.constant 0 : index
    %c0_10 = arith.constant 0 : index
    %9 = vector.load %arg7[%c0_9, %c0_10] : memref<40x128xf32, #tpu.memory_space<vmem>>, vector<40x128xf32>
    %cst_11 = arith.constant dense<0.000000e+00> : vector<128x128xf32>
    %10 = tpu.matmul %8, %9, %cst_11 {dimension_numbers = #tpu.dot_dimension_numbers<[1], [0], [0], [1], [0, 0, 1, 1], [], []>} : vector<128x40xf32>, vector<40x128xf32>, vector<128x128xf32> -> vector<128x128xf32>
    %c0_12 = arith.constant 0 : index
    %c0_13 = arith.constant 0 : index
    %11 = vector.load %arg9[%c0_12, %c0_13] : memref<32x128xf32, #tpu.memory_space<vmem>>, vector<32x128xf32>
    %12 = vector.extract_strided_slice %10 {offsets = [0, 0], sizes = [32, 128], strides = [1, 1]} : vector<128x128xf32> to vector<32x128xf32>
    %cst_14 = arith.constant 5.000000e-01 : f32
    %13 = vector.broadcast %cst_14 : f32 to vector<32x128xf32>
    %14 = arith.mulf %13, %12 : vector<32x128xf32>
    %15 = math.tanh %14 : vector<32x128xf32>
    %cst_15 = arith.constant 5.000000e-01 : f32
    %16 = vector.broadcast %cst_15 : f32 to vector<32x128xf32>
    %17 = arith.mulf %16, %15 : vector<32x128xf32>
    %cst_16 = arith.constant 5.000000e-01 : f32
    %18 = vector.broadcast %cst_16 : f32 to vector<32x128xf32>
    %19 = arith.addf %17, %18 : vector<32x128xf32>
    %20 = vector.extract_strided_slice %10 {offsets = [32, 0], sizes = [32, 128], strides = [1, 1]} : vector<128x128xf32> to vector<32x128xf32>
    %cst_17 = arith.constant 5.000000e-01 : f32
    %21 = vector.broadcast %cst_17 : f32 to vector<32x128xf32>
    %22 = arith.mulf %21, %20 : vector<32x128xf32>
    %23 = math.tanh %22 : vector<32x128xf32>
    %cst_18 = arith.constant 5.000000e-01 : f32
    %24 = vector.broadcast %cst_18 : f32 to vector<32x128xf32>
    %25 = arith.mulf %24, %23 : vector<32x128xf32>
    %cst_19 = arith.constant 5.000000e-01 : f32
    %26 = vector.broadcast %cst_19 : f32 to vector<32x128xf32>
    %27 = arith.addf %25, %26 : vector<32x128xf32>
    %28 = vector.extract_strided_slice %10 {offsets = [64, 0], sizes = [32, 128], strides = [1, 1]} : vector<128x128xf32> to vector<32x128xf32>
    %29 = math.tanh %28 : vector<32x128xf32>
    %30 = vector.extract_strided_slice %10 {offsets = [96, 0], sizes = [32, 128], strides = [1, 1]} : vector<128x128xf32> to vector<32x128xf32>
    %cst_20 = arith.constant 5.000000e-01 : f32
    %31 = vector.broadcast %cst_20 : f32 to vector<32x128xf32>
    %32 = arith.mulf %31, %30 : vector<32x128xf32>
    %33 = math.tanh %32 : vector<32x128xf32>
    %cst_21 = arith.constant 5.000000e-01 : f32
    %34 = vector.broadcast %cst_21 : f32 to vector<32x128xf32>
    %35 = arith.mulf %34, %33 : vector<32x128xf32>
    %cst_22 = arith.constant 5.000000e-01 : f32
    %36 = vector.broadcast %cst_22 : f32 to vector<32x128xf32>
    %37 = arith.addf %35, %36 : vector<32x128xf32>
    %38 = arith.mulf %27, %11 : vector<32x128xf32>
    %39 = arith.mulf %19, %29 : vector<32x128xf32>
    %40 = arith.addf %38, %39 : vector<32x128xf32>
    %41 = math.tanh %40 : vector<32x128xf32>
    %42 = arith.mulf %37, %41 : vector<32x128xf32>
    %c0_23 = arith.constant 0 : index
    %c0_24 = arith.constant 0 : index
    %43 = vector.load %arg7[%c0_23, %c0_24] : memref<40x128xf32, #tpu.memory_space<vmem>>, vector<32x128xf32>
    tpu.vector_store %arg7[%c0_23, %c0_24], %42 {strides = array<i32>} : memref<40x128xf32, #tpu.memory_space<vmem>>, vector<32x128xf32>,
    %c0_25 = arith.constant 0 : index
    %c0_26 = arith.constant 0 : index
    %44 = vector.load %arg9[%c0_25, %c0_26] : memref<32x128xf32, #tpu.memory_space<vmem>>, vector<32x128xf32>
    tpu.vector_store %arg9[%c0_25, %c0_26], %40 {strides = array<i32>} : memref<32x128xf32, #tpu.memory_space<vmem>>, vector<32x128xf32>,
    %c0_27 = arith.constant 0 : index
    %c0_28 = arith.constant 0 : index
    %45 = vector.load %arg5[%c0_27, %c0_28] : memref<128x32xf32, #tpu.memory_space<vmem>>, vector<128x32xf32>
    %cst_29 = arith.constant dense<0.000000e+00> : vector<128x128xf32>
    %46 = tpu.matmul %45, %42, %cst_29 {dimension_numbers = #tpu.dot_dimension_numbers<[1], [0], [0], [1], [0, 0, 1, 1], [], []>} : vector<128x32xf32>, vector<32x128xf32>, vector<128x128xf32> -> vector<128x128xf32>
    %47 = arith.addf %5, %46 : vector<128x128xf32>
    %c0_30 = arith.constant 0 : index
    %c0_31 = arith.constant 0 : index
    %48 = vector.load %arg10[%c0_30, %c0_31] : memref<32x128xf32, #tpu.memory_space<vmem>>, vector<32x128xf32>
    %49 = vector.extract_strided_slice %47 {offsets = [0, 0], sizes = [32, 128], strides = [1, 1]} : vector<128x128xf32> to vector<32x128xf32>
    %cst_32 = arith.constant 5.000000e-01 : f32
    %50 = vector.broadcast %cst_32 : f32 to vector<32x128xf32>
    %51 = arith.mulf %50, %49 : vector<32x128xf32>
    %52 = math.tanh %51 : vector<32x128xf32>
    %cst_33 = arith.constant 5.000000e-01 : f32
    %53 = vector.broadcast %cst_33 : f32 to vector<32x128xf32>
    %54 = arith.mulf %53, %52 : vector<32x128xf32>
    %cst_34 = arith.constant 5.000000e-01 : f32
    %55 = vector.broadcast %cst_34 : f32 to vector<32x128xf32>
    %56 = arith.addf %54, %55 : vector<32x128xf32>
    %57 = vector.extract_strided_slice %47 {offsets = [32, 0], sizes = [32, 128], strides = [1, 1]} : vector<128x128xf32> to vector<32x128xf32>
    %cst_35 = arith.constant 5.000000e-01 : f32
    %58 = vector.broadcast %cst_35 : f32 to vector<32x128xf32>
    %59 = arith.mulf %58, %57 : vector<32x128xf32>
    %60 = math.tanh %59 : vector<32x128xf32>
    %cst_36 = arith.constant 5.000000e-01 : f32
    %61 = vector.broadcast %cst_36 : f32 to vector<32x128xf32>
    %62 = arith.mulf %61, %60 : vector<32x128xf32>
    %cst_37 = arith.constant 5.000000e-01 : f32
    %63 = vector.broadcast %cst_37 : f32 to vector<32x128xf32>
    %64 = arith.addf %62, %63 : vector<32x128xf32>
    %65 = vector.extract_strided_slice %47 {offsets = [64, 0], sizes = [32, 128], strides = [1, 1]} : vector<128x128xf32> to vector<32x128xf32>
    %66 = math.tanh %65 : vector<32x128xf32>
    %67 = vector.extract_strided_slice %47 {offsets = [96, 0], sizes = [32, 128], strides = [1, 1]} : vector<128x128xf32> to vector<32x128xf32>
    %cst_38 = arith.constant 5.000000e-01 : f32
    %68 = vector.broadcast %cst_38 : f32 to vector<32x128xf32>
    %69 = arith.mulf %68, %67 : vector<32x128xf32>
    %70 = math.tanh %69 : vector<32x128xf32>
    %cst_39 = arith.constant 5.000000e-01 : f32
    %71 = vector.broadcast %cst_39 : f32 to vector<32x128xf32>
    %72 = arith.mulf %71, %70 : vector<32x128xf32>
    %cst_40 = arith.constant 5.000000e-01 : f32
    %73 = vector.broadcast %cst_40 : f32 to vector<32x128xf32>
    %74 = arith.addf %72, %73 : vector<32x128xf32>
    %75 = arith.mulf %64, %48 : vector<32x128xf32>
    %76 = arith.mulf %56, %66 : vector<32x128xf32>
    %77 = arith.addf %75, %76 : vector<32x128xf32>
    %78 = math.tanh %77 : vector<32x128xf32>
    %79 = arith.mulf %74, %78 : vector<32x128xf32>
    %c0_41 = arith.constant 0 : index
    %c0_42 = arith.constant 0 : index
    %80 = vector.load %arg8[%c0_41, %c0_42] : memref<40x128xf32, #tpu.memory_space<vmem>>, vector<32x128xf32>
    tpu.vector_store %arg8[%c0_41, %c0_42], %79 {strides = array<i32>} : memref<40x128xf32, #tpu.memory_space<vmem>>, vector<32x128xf32>,
    %c0_43 = arith.constant 0 : index
    %c0_44 = arith.constant 0 : index
    %81 = vector.load %arg10[%c0_43, %c0_44] : memref<32x128xf32, #tpu.memory_space<vmem>>, vector<32x128xf32>
    tpu.vector_store %arg10[%c0_43, %c0_44], %77 {strides = array<i32>} : memref<32x128xf32, #tpu.memory_space<vmem>>, vector<32x128xf32>,
    %c0_45 = arith.constant 0 : index
    %c0_46 = arith.constant 0 : index
    %c0_47 = arith.constant 0 : index
    %82 = vector.load %arg6[%c0_45, %c0_46, %c0_47] : memref<8x32x128xf32, #tpu.memory_space<vmem>>, vector<1x32x128xf32>
    %83 = vector.shape_cast %82 : vector<1x32x128xf32> to vector<32x128xf32>
    %84 = vector.shape_cast %79 : vector<32x128xf32> to vector<1x32x128xf32>
    tpu.vector_store %arg6[%c0_45, %c0_46, %c0_47], %84 {strides = array<i32>} : memref<8x32x128xf32, #tpu.memory_space<vmem>>, vector<1x32x128xf32>,
    %c0_48 = arith.constant 0 : index
    %c0_49 = arith.constant 0 : index
    %85 = vector.load %arg4[%c0_48, %c0_49] : memref<128x40xf32, #tpu.memory_space<vmem>>, vector<128x40xf32>
    %c0_50 = arith.constant 0 : index
    %c0_51 = arith.constant 0 : index
    %86 = vector.load %arg8[%c0_50, %c0_51] : memref<40x128xf32, #tpu.memory_space<vmem>>, vector<40x128xf32>
    %cst_52 = arith.constant dense<0.000000e+00> : vector<128x128xf32>
    %87 = tpu.matmul %85, %86, %cst_52 {dimension_numbers = #tpu.dot_dimension_numbers<[1], [0], [0], [1], [0, 0, 1, 1], [], []>} : vector<128x40xf32>, vector<40x128xf32>, vector<128x128xf32> -> vector<128x128xf32>
    %c1 = arith.constant 1 : index
    %c0_53 = arith.constant 0 : index
    %88 = vector.load %arg2[%c1, %c0_53] : memref<8x128xf32, #tpu.memory_space<vmem>>, vector<1x128xf32>
    %c32_54 = arith.constant 32 : index
    %c0_55 = arith.constant 0 : index
    %89 = vector.load %arg7[%c32_54, %c0_55] : memref<40x128xf32, #tpu.memory_space<vmem>>, vector<1x128xf32>
    tpu.vector_store %arg7[%c32_54, %c0_55], %88 {strides = array<i32>} : memref<40x128xf32, #tpu.memory_space<vmem>>, vector<1x128xf32>,
    %c0_56 = arith.constant 0 : index
    %c0_57 = arith.constant 0 : index
    %90 = vector.load %arg3[%c0_56, %c0_57] : memref<128x40xf32, #tpu.memory_space<vmem>>, vector<128x40xf32>
    %c0_58 = arith.constant 0 : index
    %c0_59 = arith.constant 0 : index
    %91 = vector.load %arg7[%c0_58, %c0_59] : memref<40x128xf32, #tpu.memory_space<vmem>>, vector<40x128xf32>
    %cst_60 = arith.constant dense<0.000000e+00> : vector<128x128xf32>
    %92 = tpu.matmul %90, %91, %cst_60 {dimension_numbers = #tpu.dot_dimension_numbers<[1], [0], [0], [1], [0, 0, 1, 1], [], []>} : vector<128x40xf32>, vector<40x128xf32>, vector<128x128xf32> -> vector<128x128xf32>
    %c0_61 = arith.constant 0 : index
    %c0_62 = arith.constant 0 : index
    %93 = vector.load %arg9[%c0_61, %c0_62] : memref<32x128xf32, #tpu.memory_space<vmem>>, vector<32x128xf32>
    %94 = vector.extract_strided_slice %92 {offsets = [0, 0], sizes = [32, 128], strides = [1, 1]} : vector<128x128xf32> to vector<32x128xf32>
    %cst_63 = arith.constant 5.000000e-01 : f32
    %95 = vector.broadcast %cst_63 : f32 to vector<32x128xf32>
    %96 = arith.mulf %95, %94 : vector<32x128xf32>
    %97 = math.tanh %96 : vector<32x128xf32>
    %cst_64 = arith.constant 5.000000e-01 : f32
    %98 = vector.broadcast %cst_64 : f32 to vector<32x128xf32>
    %99 = arith.mulf %98, %97 : vector<32x128xf32>
    %cst_65 = arith.constant 5.000000e-01 : f32
    %100 = vector.broadcast %cst_65 : f32 to vector<32x128xf32>
    %101 = arith.addf %99, %100 : vector<32x128xf32>
    %102 = vector.extract_strided_slice %92 {offsets = [32, 0], sizes = [32, 128], strides = [1, 1]} : vector<128x128xf32> to vector<32x128xf32>
    %cst_66 = arith.constant 5.000000e-01 : f32
    %103 = vector.broadcast %cst_66 : f32 to vector<32x128xf32>
    %104 = arith.mulf %103, %102 : vector<32x128xf32>
    %105 = math.tanh %104 : vector<32x128xf32>
    %cst_67 = arith.constant 5.000000e-01 : f32
    %106 = vector.broadcast %cst_67 : f32 to vector<32x128xf32>
    %107 = arith.mulf %106, %105 : vector<32x128xf32>
    %cst_68 = arith.constant 5.000000e-01 : f32
    %108 = vector.broadcast %cst_68 : f32 to vector<32x128xf32>
    %109 = arith.addf %107, %108 : vector<32x128xf32>
    %110 = vector.extract_strided_slice %92 {offsets = [64, 0], sizes = [32, 128], strides = [1, 1]} : vector<128x128xf32> to vector<32x128xf32>
    %111 = math.tanh %110 : vector<32x128xf32>
    %112 = vector.extract_strided_slice %92 {offsets = [96, 0], sizes = [32, 128], strides = [1, 1]} : vector<128x128xf32> to vector<32x128xf32>
    %cst_69 = arith.constant 5.000000e-01 : f32
    %113 = vector.broadcast %cst_69 : f32 to vector<32x128xf32>
    %114 = arith.mulf %113, %112 : vector<32x128xf32>
    %115 = math.tanh %114 : vector<32x128xf32>
    %cst_70 = arith.constant 5.000000e-01 : f32
    %116 = vector.broadcast %cst_70 : f32 to vector<32x128xf32>
    %117 = arith.mulf %116, %115 : vector<32x128xf32>
    %cst_71 = arith.constant 5.000000e-01 : f32
    %118 = vector.broadcast %cst_71 : f32 to vector<32x128xf32>
    %119 = arith.addf %117, %118 : vector<32x128xf32>
    %120 = arith.mulf %109, %93 : vector<32x128xf32>
    %121 = arith.mulf %101, %111 : vector<32x128xf32>
    %122 = arith.addf %120, %121 : vector<32x128xf32>
    %123 = math.tanh %122 : vector<32x128xf32>
    %124 = arith.mulf %119, %123 : vector<32x128xf32>
    %c0_72 = arith.constant 0 : index
    %c0_73 = arith.constant 0 : index
    %125 = vector.load %arg7[%c0_72, %c0_73] : memref<40x128xf32, #tpu.memory_space<vmem>>, vector<32x128xf32>
    tpu.vector_store %arg7[%c0_72, %c0_73], %124 {strides = array<i32>} : memref<40x128xf32, #tpu.memory_space<vmem>>, vector<32x128xf32>,
    %c0_74 = arith.constant 0 : index
    %c0_75 = arith.constant 0 : index
    %126 = vector.load %arg9[%c0_74, %c0_75] : memref<32x128xf32, #tpu.memory_space<vmem>>, vector<32x128xf32>
    tpu.vector_store %arg9[%c0_74, %c0_75], %122 {strides = array<i32>} : memref<32x128xf32, #tpu.memory_space<vmem>>, vector<32x128xf32>,
    %c0_76 = arith.constant 0 : index
    %c0_77 = arith.constant 0 : index
    %127 = vector.load %arg5[%c0_76, %c0_77] : memref<128x32xf32, #tpu.memory_space<vmem>>, vector<128x32xf32>
    %cst_78 = arith.constant dense<0.000000e+00> : vector<128x128xf32>
    %128 = tpu.matmul %127, %124, %cst_78 {dimension_numbers = #tpu.dot_dimension_numbers<[1], [0], [0], [1], [0, 0, 1, 1], [], []>} : vector<128x32xf32>, vector<32x128xf32>, vector<128x128xf32> -> vector<128x128xf32>
    %129 = arith.addf %87, %128 : vector<128x128xf32>
    %c0_79 = arith.constant 0 : index
    %c0_80 = arith.constant 0 : index
    %130 = vector.load %arg10[%c0_79, %c0_80] : memref<32x128xf32, #tpu.memory_space<vmem>>, vector<32x128xf32>
    %131 = vector.extract_strided_slice %129 {offsets = [0, 0], sizes = [32, 128], strides = [1, 1]} : vector<128x128xf32> to vector<32x128xf32>
    %cst_81 = arith.constant 5.000000e-01 : f32
    %132 = vector.broadcast %cst_81 : f32 to vector<32x128xf32>
    %133 = arith.mulf %132, %131 : vector<32x128xf32>
    %134 = math.tanh %133 : vector<32x128xf32>
    %cst_82 = arith.constant 5.000000e-01 : f32
    %135 = vector.broadcast %cst_82 : f32 to vector<32x128xf32>
    %136 = arith.mulf %135, %134 : vector<32x128xf32>
    %cst_83 = arith.constant 5.000000e-01 : f32
    %137 = vector.broadcast %cst_83 : f32 to vector<32x128xf32>
    %138 = arith.addf %136, %137 : vector<32x128xf32>
    %139 = vector.extract_strided_slice %129 {offsets = [32, 0], sizes = [32, 128], strides = [1, 1]} : vector<128x128xf32> to vector<32x128xf32>
    %cst_84 = arith.constant 5.000000e-01 : f32
    %140 = vector.broadcast %cst_84 : f32 to vector<32x128xf32>
    %141 = arith.mulf %140, %139 : vector<32x128xf32>
    %142 = math.tanh %141 : vector<32x128xf32>
    %cst_85 = arith.constant 5.000000e-01 : f32
    %143 = vector.broadcast %cst_85 : f32 to vector<32x128xf32>
    %144 = arith.mulf %143, %142 : vector<32x128xf32>
    %cst_86 = arith.constant 5.000000e-01 : f32
    %145 = vector.broadcast %cst_86 : f32 to vector<32x128xf32>
    %146 = arith.addf %144, %145 : vector<32x128xf32>
    %147 = vector.extract_strided_slice %129 {offsets = [64, 0], sizes = [32, 128], strides = [1, 1]} : vector<128x128xf32> to vector<32x128xf32>
    %148 = math.tanh %147 : vector<32x128xf32>
    %149 = vector.extract_strided_slice %129 {offsets = [96, 0], sizes = [32, 128], strides = [1, 1]} : vector<128x128xf32> to vector<32x128xf32>
    %cst_87 = arith.constant 5.000000e-01 : f32
    %150 = vector.broadcast %cst_87 : f32 to vector<32x128xf32>
    %151 = arith.mulf %150, %149 : vector<32x128xf32>
    %152 = math.tanh %151 : vector<32x128xf32>
    %cst_88 = arith.constant 5.000000e-01 : f32
    %153 = vector.broadcast %cst_88 : f32 to vector<32x128xf32>
    %154 = arith.mulf %153, %152 : vector<32x128xf32>
    %cst_89 = arith.constant 5.000000e-01 : f32
    %155 = vector.broadcast %cst_89 : f32 to vector<32x128xf32>
    %156 = arith.addf %154, %155 : vector<32x128xf32>
    %157 = arith.mulf %146, %130 : vector<32x128xf32>
    %158 = arith.mulf %138, %148 : vector<32x128xf32>
    %159 = arith.addf %157, %158 : vector<32x128xf32>
    %160 = math.tanh %159 : vector<32x128xf32>
    %161 = arith.mulf %156, %160 : vector<32x128xf32>
    %c0_90 = arith.constant 0 : index
    %c0_91 = arith.constant 0 : index
    %162 = vector.load %arg8[%c0_90, %c0_91] : memref<40x128xf32, #tpu.memory_space<vmem>>, vector<32x128xf32>
    tpu.vector_store %arg8[%c0_90, %c0_91], %161 {strides = array<i32>} : memref<40x128xf32, #tpu.memory_space<vmem>>, vector<32x128xf32>,
    %c0_92 = arith.constant 0 : index
    %c0_93 = arith.constant 0 : index
    %163 = vector.load %arg10[%c0_92, %c0_93] : memref<32x128xf32, #tpu.memory_space<vmem>>, vector<32x128xf32>
    tpu.vector_store %arg10[%c0_92, %c0_93], %159 {strides = array<i32>} : memref<32x128xf32, #tpu.memory_space<vmem>>, vector<32x128xf32>,
    %c1_94 = arith.constant 1 : index
    %c0_95 = arith.constant 0 : index
    %c0_96 = arith.constant 0 : index
    %164 = vector.load %arg6[%c1_94, %c0_95, %c0_96] : memref<8x32x128xf32, #tpu.memory_space<vmem>>, vector<1x32x128xf32>
    %165 = vector.shape_cast %164 : vector<1x32x128xf32> to vector<32x128xf32>
    %166 = vector.shape_cast %161 : vector<32x128xf32> to vector<1x32x128xf32>
    tpu.vector_store %arg6[%c1_94, %c0_95, %c0_96], %166 {strides = array<i32>} : memref<8x32x128xf32, #tpu.memory_space<vmem>>, vector<1x32x128xf32>,
    %c0_97 = arith.constant 0 : index
    %c0_98 = arith.constant 0 : index
    %167 = vector.load %arg4[%c0_97, %c0_98] : memref<128x40xf32, #tpu.memory_space<vmem>>, vector<128x40xf32>
    %c0_99 = arith.constant 0 : index
    %c0_100 = arith.constant 0 : index
    %168 = vector.load %arg8[%c0_99, %c0_100] : memref<40x128xf32, #tpu.memory_space<vmem>>, vector<40x128xf32>
    %cst_101 = arith.constant dense<0.000000e+00> : vector<128x128xf32>
    %169 = tpu.matmul %167, %168, %cst_101 {dimension_numbers = #tpu.dot_dimension_numbers<[1], [0], [0], [1], [0, 0, 1, 1], [], []>} : vector<128x40xf32>, vector<40x128xf32>, vector<128x128xf32> -> vector<128x128xf32>
    %c2 = arith.constant 2 : index
    %c0_102 = arith.constant 0 : index
    %170 = vector.load %arg2[%c2, %c0_102] : memref<8x128xf32, #tpu.memory_space<vmem>>, vector<1x128xf32>
    %c32_103 = arith.constant 32 : index
    %c0_104 = arith.constant 0 : index
    %171 = vector.load %arg7[%c32_103, %c0_104] : memref<40x128xf32, #tpu.memory_space<vmem>>, vector<1x128xf32>
    tpu.vector_store %arg7[%c32_103, %c0_104], %170 {strides = array<i32>} : memref<40x128xf32, #tpu.memory_space<vmem>>, vector<1x128xf32>,
    %c0_105 = arith.constant 0 : index
    %c0_106 = arith.constant 0 : index
    %172 = vector.load %arg3[%c0_105, %c0_106] : memref<128x40xf32, #tpu.memory_space<vmem>>, vector<128x40xf32>
    %c0_107 = arith.constant 0 : index
    %c0_108 = arith.constant 0 : index
    %173 = vector.load %arg7[%c0_107, %c0_108] : memref<40x128xf32, #tpu.memory_space<vmem>>, vector<40x128xf32>
    %cst_109 = arith.constant dense<0.000000e+00> : vector<128x128xf32>
    %174 = tpu.matmul %172, %173, %cst_109 {dimension_numbers = #tpu.dot_dimension_numbers<[1], [0], [0], [1], [0, 0, 1, 1], [], []>} : vector<128x40xf32>, vector<40x128xf32>, vector<128x128xf32> -> vector<128x128xf32>
    %c0_110 = arith.constant 0 : index
    %c0_111 = arith.constant 0 : index
    %175 = vector.load %arg9[%c0_110, %c0_111] : memref<32x128xf32, #tpu.memory_space<vmem>>, vector<32x128xf32>
    %176 = vector.extract_strided_slice %174 {offsets = [0, 0], sizes = [32, 128], strides = [1, 1]} : vector<128x128xf32> to vector<32x128xf32>
    %cst_112 = arith.constant 5.000000e-01 : f32
    %177 = vector.broadcast %cst_112 : f32 to vector<32x128xf32>
    %178 = arith.mulf %177, %176 : vector<32x128xf32>
    %179 = math.tanh %178 : vector<32x128xf32>
    %cst_113 = arith.constant 5.000000e-01 : f32
    %180 = vector.broadcast %cst_113 : f32 to vector<32x128xf32>
    %181 = arith.mulf %180, %179 : vector<32x128xf32>
    %cst_114 = arith.constant 5.000000e-01 : f32
    %182 = vector.broadcast %cst_114 : f32 to vector<32x128xf32>
    %183 = arith.addf %181, %182 : vector<32x128xf32>
    %184 = vector.extract_strided_slice %174 {offsets = [32, 0], sizes = [32, 128], strides = [1, 1]} : vector<128x128xf32> to vector<32x128xf32>
    %cst_115 = arith.constant 5.000000e-01 : f32
    %185 = vector.broadcast %cst_115 : f32 to vector<32x128xf32>
    %186 = arith.mulf %185, %184 : vector<32x128xf32>
    %187 = math.tanh %186 : vector<32x128xf32>
    %cst_116 = arith.constant 5.000000e-01 : f32
    %188 = vector.broadcast %cst_116 : f32 to vector<32x128xf32>
    %189 = arith.mulf %188, %187 : vector<32x128xf32>
    %cst_117 = arith.constant 5.000000e-01 : f32
    %190 = vector.broadcast %cst_117 : f32 to vector<32x128xf32>
    %191 = arith.addf %189, %190 : vector<32x128xf32>
    %192 = vector.extract_strided_slice %174 {offsets = [64, 0], sizes = [32, 128], strides = [1, 1]} : vector<128x128xf32> to vector<32x128xf32>
    %193 = math.tanh %192 : vector<32x128xf32>
    %194 = vector.extract_strided_slice %174 {offsets = [96, 0], sizes = [32, 128], strides = [1, 1]} : vector<128x128xf32> to vector<32x128xf32>
    %cst_118 = arith.constant 5.000000e-01 : f32
    %195 = vector.broadcast %cst_118 : f32 to vector<32x128xf32>
    %196 = arith.mulf %195, %194 : vector<32x128xf32>
    %197 = math.tanh %196 : vector<32x128xf32>
    %cst_119 = arith.constant 5.000000e-01 : f32
    %198 = vector.broadcast %cst_119 : f32 to vector<32x128xf32>
    %199 = arith.mulf %198, %197 : vector<32x128xf32>
    %cst_120 = arith.constant 5.000000e-01 : f32
    %200 = vector.broadcast %cst_120 : f32 to vector<32x128xf32>
    %201 = arith.addf %199, %200 : vector<32x128xf32>
    %202 = arith.mulf %191, %175 : vector<32x128xf32>
    %203 = arith.mulf %183, %193 : vector<32x128xf32>
    %204 = arith.addf %202, %203 : vector<32x128xf32>
    %205 = math.tanh %204 : vector<32x128xf32>
    %206 = arith.mulf %201, %205 : vector<32x128xf32>
    %c0_121 = arith.constant 0 : index
    %c0_122 = arith.constant 0 : index
    %207 = vector.load %arg7[%c0_121, %c0_122] : memref<40x128xf32, #tpu.memory_space<vmem>>, vector<32x128xf32>
    tpu.vector_store %arg7[%c0_121, %c0_122], %206 {strides = array<i32>} : memref<40x128xf32, #tpu.memory_space<vmem>>, vector<32x128xf32>,
    %c0_123 = arith.constant 0 : index
    %c0_124 = arith.constant 0 : index
    %208 = vector.load %arg9[%c0_123, %c0_124] : memref<32x128xf32, #tpu.memory_space<vmem>>, vector<32x128xf32>
    tpu.vector_store %arg9[%c0_123, %c0_124], %204 {strides = array<i32>} : memref<32x128xf32, #tpu.memory_space<vmem>>, vector<32x128xf32>,
    %c0_125 = arith.constant 0 : index
    %c0_126 = arith.constant 0 : index
    %209 = vector.load %arg5[%c0_125, %c0_126] : memref<128x32xf32, #tpu.memory_space<vmem>>, vector<128x32xf32>
    %cst_127 = arith.constant dense<0.000000e+00> : vector<128x128xf32>
    %210 = tpu.matmul %209, %206, %cst_127 {dimension_numbers = #tpu.dot_dimension_numbers<[1], [0], [0], [1], [0, 0, 1, 1], [], []>} : vector<128x32xf32>, vector<32x128xf32>, vector<128x128xf32> -> vector<128x128xf32>
    %211 = arith.addf %169, %210 : vector<128x128xf32>
    %c0_128 = arith.constant 0 : index
    %c0_129 = arith.constant 0 : index
    %212 = vector.load %arg10[%c0_128, %c0_129] : memref<32x128xf32, #tpu.memory_space<vmem>>, vector<32x128xf32>
    %213 = vector.extract_strided_slice %211 {offsets = [0, 0], sizes = [32, 128], strides = [1, 1]} : vector<128x128xf32> to vector<32x128xf32>
    %cst_130 = arith.constant 5.000000e-01 : f32
    %214 = vector.broadcast %cst_130 : f32 to vector<32x128xf32>
    %215 = arith.mulf %214, %213 : vector<32x128xf32>
    %216 = math.tanh %215 : vector<32x128xf32>
    %cst_131 = arith.constant 5.000000e-01 : f32
    %217 = vector.broadcast %cst_131 : f32 to vector<32x128xf32>
    %218 = arith.mulf %217, %216 : vector<32x128xf32>
    %cst_132 = arith.constant 5.000000e-01 : f32
    %219 = vector.broadcast %cst_132 : f32 to vector<32x128xf32>
    %220 = arith.addf %218, %219 : vector<32x128xf32>
    %221 = vector.extract_strided_slice %211 {offsets = [32, 0], sizes = [32, 128], strides = [1, 1]} : vector<128x128xf32> to vector<32x128xf32>
    %cst_133 = arith.constant 5.000000e-01 : f32
    %222 = vector.broadcast %cst_133 : f32 to vector<32x128xf32>
    %223 = arith.mulf %222, %221 : vector<32x128xf32>
    %224 = math.tanh %223 : vector<32x128xf32>
    %cst_134 = arith.constant 5.000000e-01 : f32
    %225 = vector.broadcast %cst_134 : f32 to vector<32x128xf32>
    %226 = arith.mulf %225, %224 : vector<32x128xf32>
    %cst_135 = arith.constant 5.000000e-01 : f32
    %227 = vector.broadcast %cst_135 : f32 to vector<32x128xf32>
    %228 = arith.addf %226, %227 : vector<32x128xf32>
    %229 = vector.extract_strided_slice %211 {offsets = [64, 0], sizes = [32, 128], strides = [1, 1]} : vector<128x128xf32> to vector<32x128xf32>
    %230 = math.tanh %229 : vector<32x128xf32>
    %231 = vector.extract_strided_slice %211 {offsets = [96, 0], sizes = [32, 128], strides = [1, 1]} : vector<128x128xf32> to vector<32x128xf32>
    %cst_136 = arith.constant 5.000000e-01 : f32
    %232 = vector.broadcast %cst_136 : f32 to vector<32x128xf32>
    %233 = arith.mulf %232, %231 : vector<32x128xf32>
    %234 = math.tanh %233 : vector<32x128xf32>
    %cst_137 = arith.constant 5.000000e-01 : f32
    %235 = vector.broadcast %cst_137 : f32 to vector<32x128xf32>
    %236 = arith.mulf %235, %234 : vector<32x128xf32>
    %cst_138 = arith.constant 5.000000e-01 : f32
    %237 = vector.broadcast %cst_138 : f32 to vector<32x128xf32>
    %238 = arith.addf %236, %237 : vector<32x128xf32>
    %239 = arith.mulf %228, %212 : vector<32x128xf32>
    %240 = arith.mulf %220, %230 : vector<32x128xf32>
    %241 = arith.addf %239, %240 : vector<32x128xf32>
    %242 = math.tanh %241 : vector<32x128xf32>
    %243 = arith.mulf %238, %242 : vector<32x128xf32>
    %c0_139 = arith.constant 0 : index
    %c0_140 = arith.constant 0 : index
    %244 = vector.load %arg8[%c0_139, %c0_140] : memref<40x128xf32, #tpu.memory_space<vmem>>, vector<32x128xf32>
    tpu.vector_store %arg8[%c0_139, %c0_140], %243 {strides = array<i32>} : memref<40x128xf32, #tpu.memory_space<vmem>>, vector<32x128xf32>,
    %c0_141 = arith.constant 0 : index
    %c0_142 = arith.constant 0 : index
    %245 = vector.load %arg10[%c0_141, %c0_142] : memref<32x128xf32, #tpu.memory_space<vmem>>, vector<32x128xf32>
    tpu.vector_store %arg10[%c0_141, %c0_142], %241 {strides = array<i32>} : memref<32x128xf32, #tpu.memory_space<vmem>>, vector<32x128xf32>,
    %c2_143 = arith.constant 2 : index
    %c0_144 = arith.constant 0 : index
    %c0_145 = arith.constant 0 : index
    %246 = vector.load %arg6[%c2_143, %c0_144, %c0_145] : memref<8x32x128xf32, #tpu.memory_space<vmem>>, vector<1x32x128xf32>
    %247 = vector.shape_cast %246 : vector<1x32x128xf32> to vector<32x128xf32>
    %248 = vector.shape_cast %243 : vector<32x128xf32> to vector<1x32x128xf32>
    tpu.vector_store %arg6[%c2_143, %c0_144, %c0_145], %248 {strides = array<i32>} : memref<8x32x128xf32, #tpu.memory_space<vmem>>, vector<1x32x128xf32>,
    %c0_146 = arith.constant 0 : index
    %c0_147 = arith.constant 0 : index
    %249 = vector.load %arg4[%c0_146, %c0_147] : memref<128x40xf32, #tpu.memory_space<vmem>>, vector<128x40xf32>
    %c0_148 = arith.constant 0 : index
    %c0_149 = arith.constant 0 : index
    %250 = vector.load %arg8[%c0_148, %c0_149] : memref<40x128xf32, #tpu.memory_space<vmem>>, vector<40x128xf32>
    %cst_150 = arith.constant dense<0.000000e+00> : vector<128x128xf32>
    %251 = tpu.matmul %249, %250, %cst_150 {dimension_numbers = #tpu.dot_dimension_numbers<[1], [0], [0], [1], [0, 0, 1, 1], [], []>} : vector<128x40xf32>, vector<40x128xf32>, vector<128x128xf32> -> vector<128x128xf32>
    %c3 = arith.constant 3 : index
    %c0_151 = arith.constant 0 : index
    %252 = vector.load %arg2[%c3, %c0_151] : memref<8x128xf32, #tpu.memory_space<vmem>>, vector<1x128xf32>
    %c32_152 = arith.constant 32 : index
    %c0_153 = arith.constant 0 : index
    %253 = vector.load %arg7[%c32_152, %c0_153] : memref<40x128xf32, #tpu.memory_space<vmem>>, vector<1x128xf32>
    tpu.vector_store %arg7[%c32_152, %c0_153], %252 {strides = array<i32>} : memref<40x128xf32, #tpu.memory_space<vmem>>, vector<1x128xf32>,
    %c0_154 = arith.constant 0 : index
    %c0_155 = arith.constant 0 : index
    %254 = vector.load %arg3[%c0_154, %c0_155] : memref<128x40xf32, #tpu.memory_space<vmem>>, vector<128x40xf32>
    %c0_156 = arith.constant 0 : index
    %c0_157 = arith.constant 0 : index
    %255 = vector.load %arg7[%c0_156, %c0_157] : memref<40x128xf32, #tpu.memory_space<vmem>>, vector<40x128xf32>
    %cst_158 = arith.constant dense<0.000000e+00> : vector<128x128xf32>
    %256 = tpu.matmul %254, %255, %cst_158 {dimension_numbers = #tpu.dot_dimension_numbers<[1], [0], [0], [1], [0, 0, 1, 1], [], []>} : vector<128x40xf32>, vector<40x128xf32>, vector<128x128xf32> -> vector<128x128xf32>
    %c0_159 = arith.constant 0 : index
    %c0_160 = arith.constant 0 : index
    %257 = vector.load %arg9[%c0_159, %c0_160] : memref<32x128xf32, #tpu.memory_space<vmem>>, vector<32x128xf32>
    %258 = vector.extract_strided_slice %256 {offsets = [0, 0], sizes = [32, 128], strides = [1, 1]} : vector<128x128xf32> to vector<32x128xf32>
    %cst_161 = arith.constant 5.000000e-01 : f32
    %259 = vector.broadcast %cst_161 : f32 to vector<32x128xf32>
    %260 = arith.mulf %259, %258 : vector<32x128xf32>
    %261 = math.tanh %260 : vector<32x128xf32>
    %cst_162 = arith.constant 5.000000e-01 : f32
    %262 = vector.broadcast %cst_162 : f32 to vector<32x128xf32>
    %263 = arith.mulf %262, %261 : vector<32x128xf32>
    %cst_163 = arith.constant 5.000000e-01 : f32
    %264 = vector.broadcast %cst_163 : f32 to vector<32x128xf32>
    %265 = arith.addf %263, %264 : vector<32x128xf32>
    %266 = vector.extract_strided_slice %256 {offsets = [32, 0], sizes = [32, 128], strides = [1, 1]} : vector<128x128xf32> to vector<32x128xf32>
    %cst_164 = arith.constant 5.000000e-01 : f32
    %267 = vector.broadcast %cst_164 : f32 to vector<32x128xf32>
    %268 = arith.mulf %267, %266 : vector<32x128xf32>
    %269 = math.tanh %268 : vector<32x128xf32>
    %cst_165 = arith.constant 5.000000e-01 : f32
    %270 = vector.broadcast %cst_165 : f32 to vector<32x128xf32>
    %271 = arith.mulf %270, %269 : vector<32x128xf32>
    %cst_166 = arith.constant 5.000000e-01 : f32
    %272 = vector.broadcast %cst_166 : f32 to vector<32x128xf32>
    %273 = arith.addf %271, %272 : vector<32x128xf32>
    %274 = vector.extract_strided_slice %256 {offsets = [64, 0], sizes = [32, 128], strides = [1, 1]} : vector<128x128xf32> to vector<32x128xf32>
    %275 = math.tanh %274 : vector<32x128xf32>
    %276 = vector.extract_strided_slice %256 {offsets = [96, 0], sizes = [32, 128], strides = [1, 1]} : vector<128x128xf32> to vector<32x128xf32>
    %cst_167 = arith.constant 5.000000e-01 : f32
    %277 = vector.broadcast %cst_167 : f32 to vector<32x128xf32>
    %278 = arith.mulf %277, %276 : vector<32x128xf32>
    %279 = math.tanh %278 : vector<32x128xf32>
    %cst_168 = arith.constant 5.000000e-01 : f32
    %280 = vector.broadcast %cst_168 : f32 to vector<32x128xf32>
    %281 = arith.mulf %280, %279 : vector<32x128xf32>
    %cst_169 = arith.constant 5.000000e-01 : f32
    %282 = vector.broadcast %cst_169 : f32 to vector<32x128xf32>
    %283 = arith.addf %281, %282 : vector<32x128xf32>
    %284 = arith.mulf %273, %257 : vector<32x128xf32>
    %285 = arith.mulf %265, %275 : vector<32x128xf32>
    %286 = arith.addf %284, %285 : vector<32x128xf32>
    %287 = math.tanh %286 : vector<32x128xf32>
    %288 = arith.mulf %283, %287 : vector<32x128xf32>
    %c0_170 = arith.constant 0 : index
    %c0_171 = arith.constant 0 : index
    %289 = vector.load %arg7[%c0_170, %c0_171] : memref<40x128xf32, #tpu.memory_space<vmem>>, vector<32x128xf32>
    tpu.vector_store %arg7[%c0_170, %c0_171], %288 {strides = array<i32>} : memref<40x128xf32, #tpu.memory_space<vmem>>, vector<32x128xf32>,
    %c0_172 = arith.constant 0 : index
    %c0_173 = arith.constant 0 : index
    %290 = vector.load %arg9[%c0_172, %c0_173] : memref<32x128xf32, #tpu.memory_space<vmem>>, vector<32x128xf32>
    tpu.vector_store %arg9[%c0_172, %c0_173], %286 {strides = array<i32>} : memref<32x128xf32, #tpu.memory_space<vmem>>, vector<32x128xf32>,
    %c0_174 = arith.constant 0 : index
    %c0_175 = arith.constant 0 : index
    %291 = vector.load %arg5[%c0_174, %c0_175] : memref<128x32xf32, #tpu.memory_space<vmem>>, vector<128x32xf32>
    %cst_176 = arith.constant dense<0.000000e+00> : vector<128x128xf32>
    %292 = tpu.matmul %291, %288, %cst_176 {dimension_numbers = #tpu.dot_dimension_numbers<[1], [0], [0], [1], [0, 0, 1, 1], [], []>} : vector<128x32xf32>, vector<32x128xf32>, vector<128x128xf32> -> vector<128x128xf32>
    %293 = arith.addf %251, %292 : vector<128x128xf32>
    %c0_177 = arith.constant 0 : index
    %c0_178 = arith.constant 0 : index
    %294 = vector.load %arg10[%c0_177, %c0_178] : memref<32x128xf32, #tpu.memory_space<vmem>>, vector<32x128xf32>
    %295 = vector.extract_strided_slice %293 {offsets = [0, 0], sizes = [32, 128], strides = [1, 1]} : vector<128x128xf32> to vector<32x128xf32>
    %cst_179 = arith.constant 5.000000e-01 : f32
    %296 = vector.broadcast %cst_179 : f32 to vector<32x128xf32>
    %297 = arith.mulf %296, %295 : vector<32x128xf32>
    %298 = math.tanh %297 : vector<32x128xf32>
    %cst_180 = arith.constant 5.000000e-01 : f32
    %299 = vector.broadcast %cst_180 : f32 to vector<32x128xf32>
    %300 = arith.mulf %299, %298 : vector<32x128xf32>
    %cst_181 = arith.constant 5.000000e-01 : f32
    %301 = vector.broadcast %cst_181 : f32 to vector<32x128xf32>
    %302 = arith.addf %300, %301 : vector<32x128xf32>
    %303 = vector.extract_strided_slice %293 {offsets = [32, 0], sizes = [32, 128], strides = [1, 1]} : vector<128x128xf32> to vector<32x128xf32>
    %cst_182 = arith.constant 5.000000e-01 : f32
    %304 = vector.broadcast %cst_182 : f32 to vector<32x128xf32>
    %305 = arith.mulf %304, %303 : vector<32x128xf32>
    %306 = math.tanh %305 : vector<32x128xf32>
    %cst_183 = arith.constant 5.000000e-01 : f32
    %307 = vector.broadcast %cst_183 : f32 to vector<32x128xf32>
    %308 = arith.mulf %307, %306 : vector<32x128xf32>
    %cst_184 = arith.constant 5.000000e-01 : f32
    %309 = vector.broadcast %cst_184 : f32 to vector<32x128xf32>
    %310 = arith.addf %308, %309 : vector<32x128xf32>
    %311 = vector.extract_strided_slice %293 {offsets = [64, 0], sizes = [32, 128], strides = [1, 1]} : vector<128x128xf32> to vector<32x128xf32>
    %312 = math.tanh %311 : vector<32x128xf32>
    %313 = vector.extract_strided_slice %293 {offsets = [96, 0], sizes = [32, 128], strides = [1, 1]} : vector<128x128xf32> to vector<32x128xf32>
    %cst_185 = arith.constant 5.000000e-01 : f32
    %314 = vector.broadcast %cst_185 : f32 to vector<32x128xf32>
    %315 = arith.mulf %314, %313 : vector<32x128xf32>
    %316 = math.tanh %315 : vector<32x128xf32>
    %cst_186 = arith.constant 5.000000e-01 : f32
    %317 = vector.broadcast %cst_186 : f32 to vector<32x128xf32>
    %318 = arith.mulf %317, %316 : vector<32x128xf32>
    %cst_187 = arith.constant 5.000000e-01 : f32
    %319 = vector.broadcast %cst_187 : f32 to vector<32x128xf32>
    %320 = arith.addf %318, %319 : vector<32x128xf32>
    %321 = arith.mulf %310, %294 : vector<32x128xf32>
    %322 = arith.mulf %302, %312 : vector<32x128xf32>
    %323 = arith.addf %321, %322 : vector<32x128xf32>
    %324 = math.tanh %323 : vector<32x128xf32>
    %325 = arith.mulf %320, %324 : vector<32x128xf32>
    %c0_188 = arith.constant 0 : index
    %c0_189 = arith.constant 0 : index
    %326 = vector.load %arg8[%c0_188, %c0_189] : memref<40x128xf32, #tpu.memory_space<vmem>>, vector<32x128xf32>
    tpu.vector_store %arg8[%c0_188, %c0_189], %325 {strides = array<i32>} : memref<40x128xf32, #tpu.memory_space<vmem>>, vector<32x128xf32>,
    %c0_190 = arith.constant 0 : index
    %c0_191 = arith.constant 0 : index
    %327 = vector.load %arg10[%c0_190, %c0_191] : memref<32x128xf32, #tpu.memory_space<vmem>>, vector<32x128xf32>
    tpu.vector_store %arg10[%c0_190, %c0_191], %323 {strides = array<i32>} : memref<32x128xf32, #tpu.memory_space<vmem>>, vector<32x128xf32>,
    %c3_192 = arith.constant 3 : index
    %c0_193 = arith.constant 0 : index
    %c0_194 = arith.constant 0 : index
    %328 = vector.load %arg6[%c3_192, %c0_193, %c0_194] : memref<8x32x128xf32, #tpu.memory_space<vmem>>, vector<1x32x128xf32>
    %329 = vector.shape_cast %328 : vector<1x32x128xf32> to vector<32x128xf32>
    %330 = vector.shape_cast %325 : vector<32x128xf32> to vector<1x32x128xf32>
    tpu.vector_store %arg6[%c3_192, %c0_193, %c0_194], %330 {strides = array<i32>} : memref<8x32x128xf32, #tpu.memory_space<vmem>>, vector<1x32x128xf32>,
    %c0_195 = arith.constant 0 : index
    %c0_196 = arith.constant 0 : index
    %331 = vector.load %arg4[%c0_195, %c0_196] : memref<128x40xf32, #tpu.memory_space<vmem>>, vector<128x40xf32>
    %c0_197 = arith.constant 0 : index
    %c0_198 = arith.constant 0 : index
    %332 = vector.load %arg8[%c0_197, %c0_198] : memref<40x128xf32, #tpu.memory_space<vmem>>, vector<40x128xf32>
    %cst_199 = arith.constant dense<0.000000e+00> : vector<128x128xf32>
    %333 = tpu.matmul %331, %332, %cst_199 {dimension_numbers = #tpu.dot_dimension_numbers<[1], [0], [0], [1], [0, 0, 1, 1], [], []>} : vector<128x40xf32>, vector<40x128xf32>, vector<128x128xf32> -> vector<128x128xf32>
    %c4 = arith.constant 4 : index
    %c0_200 = arith.constant 0 : index
    %334 = vector.load %arg2[%c4, %c0_200] : memref<8x128xf32, #tpu.memory_space<vmem>>, vector<1x128xf32>
    %c32_201 = arith.constant 32 : index
    %c0_202 = arith.constant 0 : index
    %335 = vector.load %arg7[%c32_201, %c0_202] : memref<40x128xf32, #tpu.memory_space<vmem>>, vector<1x128xf32>
    tpu.vector_store %arg7[%c32_201, %c0_202], %334 {strides = array<i32>} : memref<40x128xf32, #tpu.memory_space<vmem>>, vector<1x128xf32>,
    %c0_203 = arith.constant 0 : index
    %c0_204 = arith.constant 0 : index
    %336 = vector.load %arg3[%c0_203, %c0_204] : memref<128x40xf32, #tpu.memory_space<vmem>>, vector<128x40xf32>
    %c0_205 = arith.constant 0 : index
    %c0_206 = arith.constant 0 : index
    %337 = vector.load %arg7[%c0_205, %c0_206] : memref<40x128xf32, #tpu.memory_space<vmem>>, vector<40x128xf32>
    %cst_207 = arith.constant dense<0.000000e+00> : vector<128x128xf32>
    %338 = tpu.matmul %336, %337, %cst_207 {dimension_numbers = #tpu.dot_dimension_numbers<[1], [0], [0], [1], [0, 0, 1, 1], [], []>} : vector<128x40xf32>, vector<40x128xf32>, vector<128x128xf32> -> vector<128x128xf32>
    %c0_208 = arith.constant 0 : index
    %c0_209 = arith.constant 0 : index
    %339 = vector.load %arg9[%c0_208, %c0_209] : memref<32x128xf32, #tpu.memory_space<vmem>>, vector<32x128xf32>
    %340 = vector.extract_strided_slice %338 {offsets = [0, 0], sizes = [32, 128], strides = [1, 1]} : vector<128x128xf32> to vector<32x128xf32>
    %cst_210 = arith.constant 5.000000e-01 : f32
    %341 = vector.broadcast %cst_210 : f32 to vector<32x128xf32>
    %342 = arith.mulf %341, %340 : vector<32x128xf32>
    %343 = math.tanh %342 : vector<32x128xf32>
    %cst_211 = arith.constant 5.000000e-01 : f32
    %344 = vector.broadcast %cst_211 : f32 to vector<32x128xf32>
    %345 = arith.mulf %344, %343 : vector<32x128xf32>
    %cst_212 = arith.constant 5.000000e-01 : f32
    %346 = vector.broadcast %cst_212 : f32 to vector<32x128xf32>
    %347 = arith.addf %345, %346 : vector<32x128xf32>
    %348 = vector.extract_strided_slice %338 {offsets = [32, 0], sizes = [32, 128], strides = [1, 1]} : vector<128x128xf32> to vector<32x128xf32>
    %cst_213 = arith.constant 5.000000e-01 : f32
    %349 = vector.broadcast %cst_213 : f32 to vector<32x128xf32>
    %350 = arith.mulf %349, %348 : vector<32x128xf32>
    %351 = math.tanh %350 : vector<32x128xf32>
    %cst_214 = arith.constant 5.000000e-01 : f32
    %352 = vector.broadcast %cst_214 : f32 to vector<32x128xf32>
    %353 = arith.mulf %352, %351 : vector<32x128xf32>
    %cst_215 = arith.constant 5.000000e-01 : f32
    %354 = vector.broadcast %cst_215 : f32 to vector<32x128xf32>
    %355 = arith.addf %353, %354 : vector<32x128xf32>
    %356 = vector.extract_strided_slice %338 {offsets = [64, 0], sizes = [32, 128], strides = [1, 1]} : vector<128x128xf32> to vector<32x128xf32>
    %357 = math.tanh %356 : vector<32x128xf32>
    %358 = vector.extract_strided_slice %338 {offsets = [96, 0], sizes = [32, 128], strides = [1, 1]} : vector<128x128xf32> to vector<32x128xf32>
    %cst_216 = arith.constant 5.000000e-01 : f32
    %359 = vector.broadcast %cst_216 : f32 to vector<32x128xf32>
    %360 = arith.mulf %359, %358 : vector<32x128xf32>
    %361 = math.tanh %360 : vector<32x128xf32>
    %cst_217 = arith.constant 5.000000e-01 : f32
    %362 = vector.broadcast %cst_217 : f32 to vector<32x128xf32>
    %363 = arith.mulf %362, %361 : vector<32x128xf32>
    %cst_218 = arith.constant 5.000000e-01 : f32
    %364 = vector.broadcast %cst_218 : f32 to vector<32x128xf32>
    %365 = arith.addf %363, %364 : vector<32x128xf32>
    %366 = arith.mulf %355, %339 : vector<32x128xf32>
    %367 = arith.mulf %347, %357 : vector<32x128xf32>
    %368 = arith.addf %366, %367 : vector<32x128xf32>
    %369 = math.tanh %368 : vector<32x128xf32>
    %370 = arith.mulf %365, %369 : vector<32x128xf32>
    %c0_219 = arith.constant 0 : index
    %c0_220 = arith.constant 0 : index
    %371 = vector.load %arg7[%c0_219, %c0_220] : memref<40x128xf32, #tpu.memory_space<vmem>>, vector<32x128xf32>
    tpu.vector_store %arg7[%c0_219, %c0_220], %370 {strides = array<i32>} : memref<40x128xf32, #tpu.memory_space<vmem>>, vector<32x128xf32>,
    %c0_221 = arith.constant 0 : index
    %c0_222 = arith.constant 0 : index
    %372 = vector.load %arg9[%c0_221, %c0_222] : memref<32x128xf32, #tpu.memory_space<vmem>>, vector<32x128xf32>
    tpu.vector_store %arg9[%c0_221, %c0_222], %368 {strides = array<i32>} : memref<32x128xf32, #tpu.memory_space<vmem>>, vector<32x128xf32>,
    %c0_223 = arith.constant 0 : index
    %c0_224 = arith.constant 0 : index
    %373 = vector.load %arg5[%c0_223, %c0_224] : memref<128x32xf32, #tpu.memory_space<vmem>>, vector<128x32xf32>
    %cst_225 = arith.constant dense<0.000000e+00> : vector<128x128xf32>
    %374 = tpu.matmul %373, %370, %cst_225 {dimension_numbers = #tpu.dot_dimension_numbers<[1], [0], [0], [1], [0, 0, 1, 1], [], []>} : vector<128x32xf32>, vector<32x128xf32>, vector<128x128xf32> -> vector<128x128xf32>
    %375 = arith.addf %333, %374 : vector<128x128xf32>
    %c0_226 = arith.constant 0 : index
    %c0_227 = arith.constant 0 : index
    %376 = vector.load %arg10[%c0_226, %c0_227] : memref<32x128xf32, #tpu.memory_space<vmem>>, vector<32x128xf32>
    %377 = vector.extract_strided_slice %375 {offsets = [0, 0], sizes = [32, 128], strides = [1, 1]} : vector<128x128xf32> to vector<32x128xf32>
    %cst_228 = arith.constant 5.000000e-01 : f32
    %378 = vector.broadcast %cst_228 : f32 to vector<32x128xf32>
    %379 = arith.mulf %378, %377 : vector<32x128xf32>
    %380 = math.tanh %379 : vector<32x128xf32>
    %cst_229 = arith.constant 5.000000e-01 : f32
    %381 = vector.broadcast %cst_229 : f32 to vector<32x128xf32>
    %382 = arith.mulf %381, %380 : vector<32x128xf32>
    %cst_230 = arith.constant 5.000000e-01 : f32
    %383 = vector.broadcast %cst_230 : f32 to vector<32x128xf32>
    %384 = arith.addf %382, %383 : vector<32x128xf32>
    %385 = vector.extract_strided_slice %375 {offsets = [32, 0], sizes = [32, 128], strides = [1, 1]} : vector<128x128xf32> to vector<32x128xf32>
    %cst_231 = arith.constant 5.000000e-01 : f32
    %386 = vector.broadcast %cst_231 : f32 to vector<32x128xf32>
    %387 = arith.mulf %386, %385 : vector<32x128xf32>
    %388 = math.tanh %387 : vector<32x128xf32>
    %cst_232 = arith.constant 5.000000e-01 : f32
    %389 = vector.broadcast %cst_232 : f32 to vector<32x128xf32>
    %390 = arith.mulf %389, %388 : vector<32x128xf32>
    %cst_233 = arith.constant 5.000000e-01 : f32
    %391 = vector.broadcast %cst_233 : f32 to vector<32x128xf32>
    %392 = arith.addf %390, %391 : vector<32x128xf32>
    %393 = vector.extract_strided_slice %375 {offsets = [64, 0], sizes = [32, 128], strides = [1, 1]} : vector<128x128xf32> to vector<32x128xf32>
    %394 = math.tanh %393 : vector<32x128xf32>
    %395 = vector.extract_strided_slice %375 {offsets = [96, 0], sizes = [32, 128], strides = [1, 1]} : vector<128x128xf32> to vector<32x128xf32>
    %cst_234 = arith.constant 5.000000e-01 : f32
    %396 = vector.broadcast %cst_234 : f32 to vector<32x128xf32>
    %397 = arith.mulf %396, %395 : vector<32x128xf32>
    %398 = math.tanh %397 : vector<32x128xf32>
    %cst_235 = arith.constant 5.000000e-01 : f32
    %399 = vector.broadcast %cst_235 : f32 to vector<32x128xf32>
    %400 = arith.mulf %399, %398 : vector<32x128xf32>
    %cst_236 = arith.constant 5.000000e-01 : f32
    %401 = vector.broadcast %cst_236 : f32 to vector<32x128xf32>
    %402 = arith.addf %400, %401 : vector<32x128xf32>
    %403 = arith.mulf %392, %376 : vector<32x128xf32>
    %404 = arith.mulf %384, %394 : vector<32x128xf32>
    %405 = arith.addf %403, %404 : vector<32x128xf32>
    %406 = math.tanh %405 : vector<32x128xf32>
    %407 = arith.mulf %402, %406 : vector<32x128xf32>
    %c0_237 = arith.constant 0 : index
    %c0_238 = arith.constant 0 : index
    %408 = vector.load %arg8[%c0_237, %c0_238] : memref<40x128xf32, #tpu.memory_space<vmem>>, vector<32x128xf32>
    tpu.vector_store %arg8[%c0_237, %c0_238], %407 {strides = array<i32>} : memref<40x128xf32, #tpu.memory_space<vmem>>, vector<32x128xf32>,
    %c0_239 = arith.constant 0 : index
    %c0_240 = arith.constant 0 : index
    %409 = vector.load %arg10[%c0_239, %c0_240] : memref<32x128xf32, #tpu.memory_space<vmem>>, vector<32x128xf32>
    tpu.vector_store %arg10[%c0_239, %c0_240], %405 {strides = array<i32>} : memref<32x128xf32, #tpu.memory_space<vmem>>, vector<32x128xf32>,
    %c4_241 = arith.constant 4 : index
    %c0_242 = arith.constant 0 : index
    %c0_243 = arith.constant 0 : index
    %410 = vector.load %arg6[%c4_241, %c0_242, %c0_243] : memref<8x32x128xf32, #tpu.memory_space<vmem>>, vector<1x32x128xf32>
    %411 = vector.shape_cast %410 : vector<1x32x128xf32> to vector<32x128xf32>
    %412 = vector.shape_cast %407 : vector<32x128xf32> to vector<1x32x128xf32>
    tpu.vector_store %arg6[%c4_241, %c0_242, %c0_243], %412 {strides = array<i32>} : memref<8x32x128xf32, #tpu.memory_space<vmem>>, vector<1x32x128xf32>,
    %c0_244 = arith.constant 0 : index
    %c0_245 = arith.constant 0 : index
    %413 = vector.load %arg4[%c0_244, %c0_245] : memref<128x40xf32, #tpu.memory_space<vmem>>, vector<128x40xf32>
    %c0_246 = arith.constant 0 : index
    %c0_247 = arith.constant 0 : index
    %414 = vector.load %arg8[%c0_246, %c0_247] : memref<40x128xf32, #tpu.memory_space<vmem>>, vector<40x128xf32>
    %cst_248 = arith.constant dense<0.000000e+00> : vector<128x128xf32>
    %415 = tpu.matmul %413, %414, %cst_248 {dimension_numbers = #tpu.dot_dimension_numbers<[1], [0], [0], [1], [0, 0, 1, 1], [], []>} : vector<128x40xf32>, vector<40x128xf32>, vector<128x128xf32> -> vector<128x128xf32>
    %c5 = arith.constant 5 : index
    %c0_249 = arith.constant 0 : index
    %416 = vector.load %arg2[%c5, %c0_249] : memref<8x128xf32, #tpu.memory_space<vmem>>, vector<1x128xf32>
    %c32_250 = arith.constant 32 : index
    %c0_251 = arith.constant 0 : index
    %417 = vector.load %arg7[%c32_250, %c0_251] : memref<40x128xf32, #tpu.memory_space<vmem>>, vector<1x128xf32>
    tpu.vector_store %arg7[%c32_250, %c0_251], %416 {strides = array<i32>} : memref<40x128xf32, #tpu.memory_space<vmem>>, vector<1x128xf32>,
    %c0_252 = arith.constant 0 : index
    %c0_253 = arith.constant 0 : index
    %418 = vector.load %arg3[%c0_252, %c0_253] : memref<128x40xf32, #tpu.memory_space<vmem>>, vector<128x40xf32>
    %c0_254 = arith.constant 0 : index
    %c0_255 = arith.constant 0 : index
    %419 = vector.load %arg7[%c0_254, %c0_255] : memref<40x128xf32, #tpu.memory_space<vmem>>, vector<40x128xf32>
    %cst_256 = arith.constant dense<0.000000e+00> : vector<128x128xf32>
    %420 = tpu.matmul %418, %419, %cst_256 {dimension_numbers = #tpu.dot_dimension_numbers<[1], [0], [0], [1], [0, 0, 1, 1], [], []>} : vector<128x40xf32>, vector<40x128xf32>, vector<128x128xf32> -> vector<128x128xf32>
    %c0_257 = arith.constant 0 : index
    %c0_258 = arith.constant 0 : index
    %421 = vector.load %arg9[%c0_257, %c0_258] : memref<32x128xf32, #tpu.memory_space<vmem>>, vector<32x128xf32>
    %422 = vector.extract_strided_slice %420 {offsets = [0, 0], sizes = [32, 128], strides = [1, 1]} : vector<128x128xf32> to vector<32x128xf32>
    %cst_259 = arith.constant 5.000000e-01 : f32
    %423 = vector.broadcast %cst_259 : f32 to vector<32x128xf32>
    %424 = arith.mulf %423, %422 : vector<32x128xf32>
    %425 = math.tanh %424 : vector<32x128xf32>
    %cst_260 = arith.constant 5.000000e-01 : f32
    %426 = vector.broadcast %cst_260 : f32 to vector<32x128xf32>
    %427 = arith.mulf %426, %425 : vector<32x128xf32>
    %cst_261 = arith.constant 5.000000e-01 : f32
    %428 = vector.broadcast %cst_261 : f32 to vector<32x128xf32>
    %429 = arith.addf %427, %428 : vector<32x128xf32>
    %430 = vector.extract_strided_slice %420 {offsets = [32, 0], sizes = [32, 128], strides = [1, 1]} : vector<128x128xf32> to vector<32x128xf32>
    %cst_262 = arith.constant 5.000000e-01 : f32
    %431 = vector.broadcast %cst_262 : f32 to vector<32x128xf32>
    %432 = arith.mulf %431, %430 : vector<32x128xf32>
    %433 = math.tanh %432 : vector<32x128xf32>
    %cst_263 = arith.constant 5.000000e-01 : f32
    %434 = vector.broadcast %cst_263 : f32 to vector<32x128xf32>
    %435 = arith.mulf %434, %433 : vector<32x128xf32>
    %cst_264 = arith.constant 5.000000e-01 : f32
    %436 = vector.broadcast %cst_264 : f32 to vector<32x128xf32>
    %437 = arith.addf %435, %436 : vector<32x128xf32>
    %438 = vector.extract_strided_slice %420 {offsets = [64, 0], sizes = [32, 128], strides = [1, 1]} : vector<128x128xf32> to vector<32x128xf32>
    %439 = math.tanh %438 : vector<32x128xf32>
    %440 = vector.extract_strided_slice %420 {offsets = [96, 0], sizes = [32, 128], strides = [1, 1]} : vector<128x128xf32> to vector<32x128xf32>
    %cst_265 = arith.constant 5.000000e-01 : f32
    %441 = vector.broadcast %cst_265 : f32 to vector<32x128xf32>
    %442 = arith.mulf %441, %440 : vector<32x128xf32>
    %443 = math.tanh %442 : vector<32x128xf32>
    %cst_266 = arith.constant 5.000000e-01 : f32
    %444 = vector.broadcast %cst_266 : f32 to vector<32x128xf32>
    %445 = arith.mulf %444, %443 : vector<32x128xf32>
    %cst_267 = arith.constant 5.000000e-01 : f32
    %446 = vector.broadcast %cst_267 : f32 to vector<32x128xf32>
    %447 = arith.addf %445, %446 : vector<32x128xf32>
    %448 = arith.mulf %437, %421 : vector<32x128xf32>
    %449 = arith.mulf %429, %439 : vector<32x128xf32>
    %450 = arith.addf %448, %449 : vector<32x128xf32>
    %451 = math.tanh %450 : vector<32x128xf32>
    %452 = arith.mulf %447, %451 : vector<32x128xf32>
    %c0_268 = arith.constant 0 : index
    %c0_269 = arith.constant 0 : index
    %453 = vector.load %arg7[%c0_268, %c0_269] : memref<40x128xf32, #tpu.memory_space<vmem>>, vector<32x128xf32>
    tpu.vector_store %arg7[%c0_268, %c0_269], %452 {strides = array<i32>} : memref<40x128xf32, #tpu.memory_space<vmem>>, vector<32x128xf32>,
    %c0_270 = arith.constant 0 : index
    %c0_271 = arith.constant 0 : index
    %454 = vector.load %arg9[%c0_270, %c0_271] : memref<32x128xf32, #tpu.memory_space<vmem>>, vector<32x128xf32>
    tpu.vector_store %arg9[%c0_270, %c0_271], %450 {strides = array<i32>} : memref<32x128xf32, #tpu.memory_space<vmem>>, vector<32x128xf32>,
    %c0_272 = arith.constant 0 : index
    %c0_273 = arith.constant 0 : index
    %455 = vector.load %arg5[%c0_272, %c0_273] : memref<128x32xf32, #tpu.memory_space<vmem>>, vector<128x32xf32>
    %cst_274 = arith.constant dense<0.000000e+00> : vector<128x128xf32>
    %456 = tpu.matmul %455, %452, %cst_274 {dimension_numbers = #tpu.dot_dimension_numbers<[1], [0], [0], [1], [0, 0, 1, 1], [], []>} : vector<128x32xf32>, vector<32x128xf32>, vector<128x128xf32> -> vector<128x128xf32>
    %457 = arith.addf %415, %456 : vector<128x128xf32>
    %c0_275 = arith.constant 0 : index
    %c0_276 = arith.constant 0 : index
    %458 = vector.load %arg10[%c0_275, %c0_276] : memref<32x128xf32, #tpu.memory_space<vmem>>, vector<32x128xf32>
    %459 = vector.extract_strided_slice %457 {offsets = [0, 0], sizes = [32, 128], strides = [1, 1]} : vector<128x128xf32> to vector<32x128xf32>
    %cst_277 = arith.constant 5.000000e-01 : f32
    %460 = vector.broadcast %cst_277 : f32 to vector<32x128xf32>
    %461 = arith.mulf %460, %459 : vector<32x128xf32>
    %462 = math.tanh %461 : vector<32x128xf32>
    %cst_278 = arith.constant 5.000000e-01 : f32
    %463 = vector.broadcast %cst_278 : f32 to vector<32x128xf32>
    %464 = arith.mulf %463, %462 : vector<32x128xf32>
    %cst_279 = arith.constant 5.000000e-01 : f32
    %465 = vector.broadcast %cst_279 : f32 to vector<32x128xf32>
    %466 = arith.addf %464, %465 : vector<32x128xf32>
    %467 = vector.extract_strided_slice %457 {offsets = [32, 0], sizes = [32, 128], strides = [1, 1]} : vector<128x128xf32> to vector<32x128xf32>
    %cst_280 = arith.constant 5.000000e-01 : f32
    %468 = vector.broadcast %cst_280 : f32 to vector<32x128xf32>
    %469 = arith.mulf %468, %467 : vector<32x128xf32>
    %470 = math.tanh %469 : vector<32x128xf32>
    %cst_281 = arith.constant 5.000000e-01 : f32
    %471 = vector.broadcast %cst_281 : f32 to vector<32x128xf32>
    %472 = arith.mulf %471, %470 : vector<32x128xf32>
    %cst_282 = arith.constant 5.000000e-01 : f32
    %473 = vector.broadcast %cst_282 : f32 to vector<32x128xf32>
    %474 = arith.addf %472, %473 : vector<32x128xf32>
    %475 = vector.extract_strided_slice %457 {offsets = [64, 0], sizes = [32, 128], strides = [1, 1]} : vector<128x128xf32> to vector<32x128xf32>
    %476 = math.tanh %475 : vector<32x128xf32>
    %477 = vector.extract_strided_slice %457 {offsets = [96, 0], sizes = [32, 128], strides = [1, 1]} : vector<128x128xf32> to vector<32x128xf32>
    %cst_283 = arith.constant 5.000000e-01 : f32
    %478 = vector.broadcast %cst_283 : f32 to vector<32x128xf32>
    %479 = arith.mulf %478, %477 : vector<32x128xf32>
    %480 = math.tanh %479 : vector<32x128xf32>
    %cst_284 = arith.constant 5.000000e-01 : f32
    %481 = vector.broadcast %cst_284 : f32 to vector<32x128xf32>
    %482 = arith.mulf %481, %480 : vector<32x128xf32>
    %cst_285 = arith.constant 5.000000e-01 : f32
    %483 = vector.broadcast %cst_285 : f32 to vector<32x128xf32>
    %484 = arith.addf %482, %483 : vector<32x128xf32>
    %485 = arith.mulf %474, %458 : vector<32x128xf32>
    %486 = arith.mulf %466, %476 : vector<32x128xf32>
    %487 = arith.addf %485, %486 : vector<32x128xf32>
    %488 = math.tanh %487 : vector<32x128xf32>
    %489 = arith.mulf %484, %488 : vector<32x128xf32>
    %c0_286 = arith.constant 0 : index
    %c0_287 = arith.constant 0 : index
    %490 = vector.load %arg8[%c0_286, %c0_287] : memref<40x128xf32, #tpu.memory_space<vmem>>, vector<32x128xf32>
    tpu.vector_store %arg8[%c0_286, %c0_287], %489 {strides = array<i32>} : memref<40x128xf32, #tpu.memory_space<vmem>>, vector<32x128xf32>,
    %c0_288 = arith.constant 0 : index
    %c0_289 = arith.constant 0 : index
    %491 = vector.load %arg10[%c0_288, %c0_289] : memref<32x128xf32, #tpu.memory_space<vmem>>, vector<32x128xf32>
    tpu.vector_store %arg10[%c0_288, %c0_289], %487 {strides = array<i32>} : memref<32x128xf32, #tpu.memory_space<vmem>>, vector<32x128xf32>,
    %c5_290 = arith.constant 5 : index
    %c0_291 = arith.constant 0 : index
    %c0_292 = arith.constant 0 : index
    %492 = vector.load %arg6[%c5_290, %c0_291, %c0_292] : memref<8x32x128xf32, #tpu.memory_space<vmem>>, vector<1x32x128xf32>
    %493 = vector.shape_cast %492 : vector<1x32x128xf32> to vector<32x128xf32>
    %494 = vector.shape_cast %489 : vector<32x128xf32> to vector<1x32x128xf32>
    tpu.vector_store %arg6[%c5_290, %c0_291, %c0_292], %494 {strides = array<i32>} : memref<8x32x128xf32, #tpu.memory_space<vmem>>, vector<1x32x128xf32>,
    %c0_293 = arith.constant 0 : index
    %c0_294 = arith.constant 0 : index
    %495 = vector.load %arg4[%c0_293, %c0_294] : memref<128x40xf32, #tpu.memory_space<vmem>>, vector<128x40xf32>
    %c0_295 = arith.constant 0 : index
    %c0_296 = arith.constant 0 : index
    %496 = vector.load %arg8[%c0_295, %c0_296] : memref<40x128xf32, #tpu.memory_space<vmem>>, vector<40x128xf32>
    %cst_297 = arith.constant dense<0.000000e+00> : vector<128x128xf32>
    %497 = tpu.matmul %495, %496, %cst_297 {dimension_numbers = #tpu.dot_dimension_numbers<[1], [0], [0], [1], [0, 0, 1, 1], [], []>} : vector<128x40xf32>, vector<40x128xf32>, vector<128x128xf32> -> vector<128x128xf32>
    %c6 = arith.constant 6 : index
    %c0_298 = arith.constant 0 : index
    %498 = vector.load %arg2[%c6, %c0_298] : memref<8x128xf32, #tpu.memory_space<vmem>>, vector<1x128xf32>
    %c32_299 = arith.constant 32 : index
    %c0_300 = arith.constant 0 : index
    %499 = vector.load %arg7[%c32_299, %c0_300] : memref<40x128xf32, #tpu.memory_space<vmem>>, vector<1x128xf32>
    tpu.vector_store %arg7[%c32_299, %c0_300], %498 {strides = array<i32>} : memref<40x128xf32, #tpu.memory_space<vmem>>, vector<1x128xf32>,
    %c0_301 = arith.constant 0 : index
    %c0_302 = arith.constant 0 : index
    %500 = vector.load %arg3[%c0_301, %c0_302] : memref<128x40xf32, #tpu.memory_space<vmem>>, vector<128x40xf32>
    %c0_303 = arith.constant 0 : index
    %c0_304 = arith.constant 0 : index
    %501 = vector.load %arg7[%c0_303, %c0_304] : memref<40x128xf32, #tpu.memory_space<vmem>>, vector<40x128xf32>
    %cst_305 = arith.constant dense<0.000000e+00> : vector<128x128xf32>
    %502 = tpu.matmul %500, %501, %cst_305 {dimension_numbers = #tpu.dot_dimension_numbers<[1], [0], [0], [1], [0, 0, 1, 1], [], []>} : vector<128x40xf32>, vector<40x128xf32>, vector<128x128xf32> -> vector<128x128xf32>
    %c0_306 = arith.constant 0 : index
    %c0_307 = arith.constant 0 : index
    %503 = vector.load %arg9[%c0_306, %c0_307] : memref<32x128xf32, #tpu.memory_space<vmem>>, vector<32x128xf32>
    %504 = vector.extract_strided_slice %502 {offsets = [0, 0], sizes = [32, 128], strides = [1, 1]} : vector<128x128xf32> to vector<32x128xf32>
    %cst_308 = arith.constant 5.000000e-01 : f32
    %505 = vector.broadcast %cst_308 : f32 to vector<32x128xf32>
    %506 = arith.mulf %505, %504 : vector<32x128xf32>
    %507 = math.tanh %506 : vector<32x128xf32>
    %cst_309 = arith.constant 5.000000e-01 : f32
    %508 = vector.broadcast %cst_309 : f32 to vector<32x128xf32>
    %509 = arith.mulf %508, %507 : vector<32x128xf32>
    %cst_310 = arith.constant 5.000000e-01 : f32
    %510 = vector.broadcast %cst_310 : f32 to vector<32x128xf32>
    %511 = arith.addf %509, %510 : vector<32x128xf32>
    %512 = vector.extract_strided_slice %502 {offsets = [32, 0], sizes = [32, 128], strides = [1, 1]} : vector<128x128xf32> to vector<32x128xf32>
    %cst_311 = arith.constant 5.000000e-01 : f32
    %513 = vector.broadcast %cst_311 : f32 to vector<32x128xf32>
    %514 = arith.mulf %513, %512 : vector<32x128xf32>
    %515 = math.tanh %514 : vector<32x128xf32>
    %cst_312 = arith.constant 5.000000e-01 : f32
    %516 = vector.broadcast %cst_312 : f32 to vector<32x128xf32>
    %517 = arith.mulf %516, %515 : vector<32x128xf32>
    %cst_313 = arith.constant 5.000000e-01 : f32
    %518 = vector.broadcast %cst_313 : f32 to vector<32x128xf32>
    %519 = arith.addf %517, %518 : vector<32x128xf32>
    %520 = vector.extract_strided_slice %502 {offsets = [64, 0], sizes = [32, 128], strides = [1, 1]} : vector<128x128xf32> to vector<32x128xf32>
    %521 = math.tanh %520 : vector<32x128xf32>
    %522 = vector.extract_strided_slice %502 {offsets = [96, 0], sizes = [32, 128], strides = [1, 1]} : vector<128x128xf32> to vector<32x128xf32>
    %cst_314 = arith.constant 5.000000e-01 : f32
    %523 = vector.broadcast %cst_314 : f32 to vector<32x128xf32>
    %524 = arith.mulf %523, %522 : vector<32x128xf32>
    %525 = math.tanh %524 : vector<32x128xf32>
    %cst_315 = arith.constant 5.000000e-01 : f32
    %526 = vector.broadcast %cst_315 : f32 to vector<32x128xf32>
    %527 = arith.mulf %526, %525 : vector<32x128xf32>
    %cst_316 = arith.constant 5.000000e-01 : f32
    %528 = vector.broadcast %cst_316 : f32 to vector<32x128xf32>
    %529 = arith.addf %527, %528 : vector<32x128xf32>
    %530 = arith.mulf %519, %503 : vector<32x128xf32>
    %531 = arith.mulf %511, %521 : vector<32x128xf32>
    %532 = arith.addf %530, %531 : vector<32x128xf32>
    %533 = math.tanh %532 : vector<32x128xf32>
    %534 = arith.mulf %529, %533 : vector<32x128xf32>
    %c0_317 = arith.constant 0 : index
    %c0_318 = arith.constant 0 : index
    %535 = vector.load %arg7[%c0_317, %c0_318] : memref<40x128xf32, #tpu.memory_space<vmem>>, vector<32x128xf32>
    tpu.vector_store %arg7[%c0_317, %c0_318], %534 {strides = array<i32>} : memref<40x128xf32, #tpu.memory_space<vmem>>, vector<32x128xf32>,
    %c0_319 = arith.constant 0 : index
    %c0_320 = arith.constant 0 : index
    %536 = vector.load %arg9[%c0_319, %c0_320] : memref<32x128xf32, #tpu.memory_space<vmem>>, vector<32x128xf32>
    tpu.vector_store %arg9[%c0_319, %c0_320], %532 {strides = array<i32>} : memref<32x128xf32, #tpu.memory_space<vmem>>, vector<32x128xf32>,
    %c0_321 = arith.constant 0 : index
    %c0_322 = arith.constant 0 : index
    %537 = vector.load %arg5[%c0_321, %c0_322] : memref<128x32xf32, #tpu.memory_space<vmem>>, vector<128x32xf32>
    %cst_323 = arith.constant dense<0.000000e+00> : vector<128x128xf32>
    %538 = tpu.matmul %537, %534, %cst_323 {dimension_numbers = #tpu.dot_dimension_numbers<[1], [0], [0], [1], [0, 0, 1, 1], [], []>} : vector<128x32xf32>, vector<32x128xf32>, vector<128x128xf32> -> vector<128x128xf32>
    %539 = arith.addf %497, %538 : vector<128x128xf32>
    %c0_324 = arith.constant 0 : index
    %c0_325 = arith.constant 0 : index
    %540 = vector.load %arg10[%c0_324, %c0_325] : memref<32x128xf32, #tpu.memory_space<vmem>>, vector<32x128xf32>
    %541 = vector.extract_strided_slice %539 {offsets = [0, 0], sizes = [32, 128], strides = [1, 1]} : vector<128x128xf32> to vector<32x128xf32>
    %cst_326 = arith.constant 5.000000e-01 : f32
    %542 = vector.broadcast %cst_326 : f32 to vector<32x128xf32>
    %543 = arith.mulf %542, %541 : vector<32x128xf32>
    %544 = math.tanh %543 : vector<32x128xf32>
    %cst_327 = arith.constant 5.000000e-01 : f32
    %545 = vector.broadcast %cst_327 : f32 to vector<32x128xf32>
    %546 = arith.mulf %545, %544 : vector<32x128xf32>
    %cst_328 = arith.constant 5.000000e-01 : f32
    %547 = vector.broadcast %cst_328 : f32 to vector<32x128xf32>
    %548 = arith.addf %546, %547 : vector<32x128xf32>
    %549 = vector.extract_strided_slice %539 {offsets = [32, 0], sizes = [32, 128], strides = [1, 1]} : vector<128x128xf32> to vector<32x128xf32>
    %cst_329 = arith.constant 5.000000e-01 : f32
    %550 = vector.broadcast %cst_329 : f32 to vector<32x128xf32>
    %551 = arith.mulf %550, %549 : vector<32x128xf32>
    %552 = math.tanh %551 : vector<32x128xf32>
    %cst_330 = arith.constant 5.000000e-01 : f32
    %553 = vector.broadcast %cst_330 : f32 to vector<32x128xf32>
    %554 = arith.mulf %553, %552 : vector<32x128xf32>
    %cst_331 = arith.constant 5.000000e-01 : f32
    %555 = vector.broadcast %cst_331 : f32 to vector<32x128xf32>
    %556 = arith.addf %554, %555 : vector<32x128xf32>
    %557 = vector.extract_strided_slice %539 {offsets = [64, 0], sizes = [32, 128], strides = [1, 1]} : vector<128x128xf32> to vector<32x128xf32>
    %558 = math.tanh %557 : vector<32x128xf32>
    %559 = vector.extract_strided_slice %539 {offsets = [96, 0], sizes = [32, 128], strides = [1, 1]} : vector<128x128xf32> to vector<32x128xf32>
    %cst_332 = arith.constant 5.000000e-01 : f32
    %560 = vector.broadcast %cst_332 : f32 to vector<32x128xf32>
    %561 = arith.mulf %560, %559 : vector<32x128xf32>
    %562 = math.tanh %561 : vector<32x128xf32>
    %cst_333 = arith.constant 5.000000e-01 : f32
    %563 = vector.broadcast %cst_333 : f32 to vector<32x128xf32>
    %564 = arith.mulf %563, %562 : vector<32x128xf32>
    %cst_334 = arith.constant 5.000000e-01 : f32
    %565 = vector.broadcast %cst_334 : f32 to vector<32x128xf32>
    %566 = arith.addf %564, %565 : vector<32x128xf32>
    %567 = arith.mulf %556, %540 : vector<32x128xf32>
    %568 = arith.mulf %548, %558 : vector<32x128xf32>
    %569 = arith.addf %567, %568 : vector<32x128xf32>
    %570 = math.tanh %569 : vector<32x128xf32>
    %571 = arith.mulf %566, %570 : vector<32x128xf32>
    %c0_335 = arith.constant 0 : index
    %c0_336 = arith.constant 0 : index
    %572 = vector.load %arg8[%c0_335, %c0_336] : memref<40x128xf32, #tpu.memory_space<vmem>>, vector<32x128xf32>
    tpu.vector_store %arg8[%c0_335, %c0_336], %571 {strides = array<i32>} : memref<40x128xf32, #tpu.memory_space<vmem>>, vector<32x128xf32>,
    %c0_337 = arith.constant 0 : index
    %c0_338 = arith.constant 0 : index
    %573 = vector.load %arg10[%c0_337, %c0_338] : memref<32x128xf32, #tpu.memory_space<vmem>>, vector<32x128xf32>
    tpu.vector_store %arg10[%c0_337, %c0_338], %569 {strides = array<i32>} : memref<32x128xf32, #tpu.memory_space<vmem>>, vector<32x128xf32>,
    %c6_339 = arith.constant 6 : index
    %c0_340 = arith.constant 0 : index
    %c0_341 = arith.constant 0 : index
    %574 = vector.load %arg6[%c6_339, %c0_340, %c0_341] : memref<8x32x128xf32, #tpu.memory_space<vmem>>, vector<1x32x128xf32>
    %575 = vector.shape_cast %574 : vector<1x32x128xf32> to vector<32x128xf32>
    %576 = vector.shape_cast %571 : vector<32x128xf32> to vector<1x32x128xf32>
    tpu.vector_store %arg6[%c6_339, %c0_340, %c0_341], %576 {strides = array<i32>} : memref<8x32x128xf32, #tpu.memory_space<vmem>>, vector<1x32x128xf32>,
    %c0_342 = arith.constant 0 : index
    %c0_343 = arith.constant 0 : index
    %577 = vector.load %arg4[%c0_342, %c0_343] : memref<128x40xf32, #tpu.memory_space<vmem>>, vector<128x40xf32>
    %c0_344 = arith.constant 0 : index
    %c0_345 = arith.constant 0 : index
    %578 = vector.load %arg8[%c0_344, %c0_345] : memref<40x128xf32, #tpu.memory_space<vmem>>, vector<40x128xf32>
    %cst_346 = arith.constant dense<0.000000e+00> : vector<128x128xf32>
    %579 = tpu.matmul %577, %578, %cst_346 {dimension_numbers = #tpu.dot_dimension_numbers<[1], [0], [0], [1], [0, 0, 1, 1], [], []>} : vector<128x40xf32>, vector<40x128xf32>, vector<128x128xf32> -> vector<128x128xf32>
    %c7 = arith.constant 7 : index
    %c0_347 = arith.constant 0 : index
    %580 = vector.load %arg2[%c7, %c0_347] : memref<8x128xf32, #tpu.memory_space<vmem>>, vector<1x128xf32>
    %c32_348 = arith.constant 32 : index
    %c0_349 = arith.constant 0 : index
    %581 = vector.load %arg7[%c32_348, %c0_349] : memref<40x128xf32, #tpu.memory_space<vmem>>, vector<1x128xf32>
    tpu.vector_store %arg7[%c32_348, %c0_349], %580 {strides = array<i32>} : memref<40x128xf32, #tpu.memory_space<vmem>>, vector<1x128xf32>,
    %c0_350 = arith.constant 0 : index
    %c0_351 = arith.constant 0 : index
    %582 = vector.load %arg3[%c0_350, %c0_351] : memref<128x40xf32, #tpu.memory_space<vmem>>, vector<128x40xf32>
    %c0_352 = arith.constant 0 : index
    %c0_353 = arith.constant 0 : index
    %583 = vector.load %arg7[%c0_352, %c0_353] : memref<40x128xf32, #tpu.memory_space<vmem>>, vector<40x128xf32>
    %cst_354 = arith.constant dense<0.000000e+00> : vector<128x128xf32>
    %584 = tpu.matmul %582, %583, %cst_354 {dimension_numbers = #tpu.dot_dimension_numbers<[1], [0], [0], [1], [0, 0, 1, 1], [], []>} : vector<128x40xf32>, vector<40x128xf32>, vector<128x128xf32> -> vector<128x128xf32>
    %c0_355 = arith.constant 0 : index
    %c0_356 = arith.constant 0 : index
    %585 = vector.load %arg9[%c0_355, %c0_356] : memref<32x128xf32, #tpu.memory_space<vmem>>, vector<32x128xf32>
    %586 = vector.extract_strided_slice %584 {offsets = [0, 0], sizes = [32, 128], strides = [1, 1]} : vector<128x128xf32> to vector<32x128xf32>
    %cst_357 = arith.constant 5.000000e-01 : f32
    %587 = vector.broadcast %cst_357 : f32 to vector<32x128xf32>
    %588 = arith.mulf %587, %586 : vector<32x128xf32>
    %589 = math.tanh %588 : vector<32x128xf32>
    %cst_358 = arith.constant 5.000000e-01 : f32
    %590 = vector.broadcast %cst_358 : f32 to vector<32x128xf32>
    %591 = arith.mulf %590, %589 : vector<32x128xf32>
    %cst_359 = arith.constant 5.000000e-01 : f32
    %592 = vector.broadcast %cst_359 : f32 to vector<32x128xf32>
    %593 = arith.addf %591, %592 : vector<32x128xf32>
    %594 = vector.extract_strided_slice %584 {offsets = [32, 0], sizes = [32, 128], strides = [1, 1]} : vector<128x128xf32> to vector<32x128xf32>
    %cst_360 = arith.constant 5.000000e-01 : f32
    %595 = vector.broadcast %cst_360 : f32 to vector<32x128xf32>
    %596 = arith.mulf %595, %594 : vector<32x128xf32>
    %597 = math.tanh %596 : vector<32x128xf32>
    %cst_361 = arith.constant 5.000000e-01 : f32
    %598 = vector.broadcast %cst_361 : f32 to vector<32x128xf32>
    %599 = arith.mulf %598, %597 : vector<32x128xf32>
    %cst_362 = arith.constant 5.000000e-01 : f32
    %600 = vector.broadcast %cst_362 : f32 to vector<32x128xf32>
    %601 = arith.addf %599, %600 : vector<32x128xf32>
    %602 = vector.extract_strided_slice %584 {offsets = [64, 0], sizes = [32, 128], strides = [1, 1]} : vector<128x128xf32> to vector<32x128xf32>
    %603 = math.tanh %602 : vector<32x128xf32>
    %604 = vector.extract_strided_slice %584 {offsets = [96, 0], sizes = [32, 128], strides = [1, 1]} : vector<128x128xf32> to vector<32x128xf32>
    %cst_363 = arith.constant 5.000000e-01 : f32
    %605 = vector.broadcast %cst_363 : f32 to vector<32x128xf32>
    %606 = arith.mulf %605, %604 : vector<32x128xf32>
    %607 = math.tanh %606 : vector<32x128xf32>
    %cst_364 = arith.constant 5.000000e-01 : f32
    %608 = vector.broadcast %cst_364 : f32 to vector<32x128xf32>
    %609 = arith.mulf %608, %607 : vector<32x128xf32>
    %cst_365 = arith.constant 5.000000e-01 : f32
    %610 = vector.broadcast %cst_365 : f32 to vector<32x128xf32>
    %611 = arith.addf %609, %610 : vector<32x128xf32>
    %612 = arith.mulf %601, %585 : vector<32x128xf32>
    %613 = arith.mulf %593, %603 : vector<32x128xf32>
    %614 = arith.addf %612, %613 : vector<32x128xf32>
    %615 = math.tanh %614 : vector<32x128xf32>
    %616 = arith.mulf %611, %615 : vector<32x128xf32>
    %c0_366 = arith.constant 0 : index
    %c0_367 = arith.constant 0 : index
    %617 = vector.load %arg7[%c0_366, %c0_367] : memref<40x128xf32, #tpu.memory_space<vmem>>, vector<32x128xf32>
    tpu.vector_store %arg7[%c0_366, %c0_367], %616 {strides = array<i32>} : memref<40x128xf32, #tpu.memory_space<vmem>>, vector<32x128xf32>,
    %c0_368 = arith.constant 0 : index
    %c0_369 = arith.constant 0 : index
    %618 = vector.load %arg9[%c0_368, %c0_369] : memref<32x128xf32, #tpu.memory_space<vmem>>, vector<32x128xf32>
    tpu.vector_store %arg9[%c0_368, %c0_369], %614 {strides = array<i32>} : memref<32x128xf32, #tpu.memory_space<vmem>>, vector<32x128xf32>,
    %c0_370 = arith.constant 0 : index
    %c0_371 = arith.constant 0 : index
    %619 = vector.load %arg5[%c0_370, %c0_371] : memref<128x32xf32, #tpu.memory_space<vmem>>, vector<128x32xf32>
    %cst_372 = arith.constant dense<0.000000e+00> : vector<128x128xf32>
    %620 = tpu.matmul %619, %616, %cst_372 {dimension_numbers = #tpu.dot_dimension_numbers<[1], [0], [0], [1], [0, 0, 1, 1], [], []>} : vector<128x32xf32>, vector<32x128xf32>, vector<128x128xf32> -> vector<128x128xf32>
    %621 = arith.addf %579, %620 : vector<128x128xf32>
    %c0_373 = arith.constant 0 : index
    %c0_374 = arith.constant 0 : index
    %622 = vector.load %arg10[%c0_373, %c0_374] : memref<32x128xf32, #tpu.memory_space<vmem>>, vector<32x128xf32>
    %623 = vector.extract_strided_slice %621 {offsets = [0, 0], sizes = [32, 128], strides = [1, 1]} : vector<128x128xf32> to vector<32x128xf32>
    %cst_375 = arith.constant 5.000000e-01 : f32
    %624 = vector.broadcast %cst_375 : f32 to vector<32x128xf32>
    %625 = arith.mulf %624, %623 : vector<32x128xf32>
    %626 = math.tanh %625 : vector<32x128xf32>
    %cst_376 = arith.constant 5.000000e-01 : f32
    %627 = vector.broadcast %cst_376 : f32 to vector<32x128xf32>
    %628 = arith.mulf %627, %626 : vector<32x128xf32>
    %cst_377 = arith.constant 5.000000e-01 : f32
    %629 = vector.broadcast %cst_377 : f32 to vector<32x128xf32>
    %630 = arith.addf %628, %629 : vector<32x128xf32>
    %631 = vector.extract_strided_slice %621 {offsets = [32, 0], sizes = [32, 128], strides = [1, 1]} : vector<128x128xf32> to vector<32x128xf32>
    %cst_378 = arith.constant 5.000000e-01 : f32
    %632 = vector.broadcast %cst_378 : f32 to vector<32x128xf32>
    %633 = arith.mulf %632, %631 : vector<32x128xf32>
    %634 = math.tanh %633 : vector<32x128xf32>
    %cst_379 = arith.constant 5.000000e-01 : f32
    %635 = vector.broadcast %cst_379 : f32 to vector<32x128xf32>
    %636 = arith.mulf %635, %634 : vector<32x128xf32>
    %cst_380 = arith.constant 5.000000e-01 : f32
    %637 = vector.broadcast %cst_380 : f32 to vector<32x128xf32>
    %638 = arith.addf %636, %637 : vector<32x128xf32>
    %639 = vector.extract_strided_slice %621 {offsets = [64, 0], sizes = [32, 128], strides = [1, 1]} : vector<128x128xf32> to vector<32x128xf32>
    %640 = math.tanh %639 : vector<32x128xf32>
    %641 = vector.extract_strided_slice %621 {offsets = [96, 0], sizes = [32, 128], strides = [1, 1]} : vector<128x128xf32> to vector<32x128xf32>
    %cst_381 = arith.constant 5.000000e-01 : f32
    %642 = vector.broadcast %cst_381 : f32 to vector<32x128xf32>
    %643 = arith.mulf %642, %641 : vector<32x128xf32>
    %644 = math.tanh %643 : vector<32x128xf32>
    %cst_382 = arith.constant 5.000000e-01 : f32
    %645 = vector.broadcast %cst_382 : f32 to vector<32x128xf32>
    %646 = arith.mulf %645, %644 : vector<32x128xf32>
    %cst_383 = arith.constant 5.000000e-01 : f32
    %647 = vector.broadcast %cst_383 : f32 to vector<32x128xf32>
    %648 = arith.addf %646, %647 : vector<32x128xf32>
    %649 = arith.mulf %638, %622 : vector<32x128xf32>
    %650 = arith.mulf %630, %640 : vector<32x128xf32>
    %651 = arith.addf %649, %650 : vector<32x128xf32>
    %652 = math.tanh %651 : vector<32x128xf32>
    %653 = arith.mulf %648, %652 : vector<32x128xf32>
    %c0_384 = arith.constant 0 : index
    %c0_385 = arith.constant 0 : index
    %654 = vector.load %arg8[%c0_384, %c0_385] : memref<40x128xf32, #tpu.memory_space<vmem>>, vector<32x128xf32>
    tpu.vector_store %arg8[%c0_384, %c0_385], %653 {strides = array<i32>} : memref<40x128xf32, #tpu.memory_space<vmem>>, vector<32x128xf32>,
    %c0_386 = arith.constant 0 : index
    %c0_387 = arith.constant 0 : index
    %655 = vector.load %arg10[%c0_386, %c0_387] : memref<32x128xf32, #tpu.memory_space<vmem>>, vector<32x128xf32>
    tpu.vector_store %arg10[%c0_386, %c0_387], %651 {strides = array<i32>} : memref<32x128xf32, #tpu.memory_space<vmem>>, vector<32x128xf32>,
    %c7_388 = arith.constant 7 : index
    %c0_389 = arith.constant 0 : index
    %c0_390 = arith.constant 0 : index
    %656 = vector.load %arg6[%c7_388, %c0_389, %c0_390] : memref<8x32x128xf32, #tpu.memory_space<vmem>>, vector<1x32x128xf32>
    %657 = vector.shape_cast %656 : vector<1x32x128xf32> to vector<32x128xf32>
    %658 = vector.shape_cast %653 : vector<32x128xf32> to vector<1x32x128xf32>
    tpu.vector_store %arg6[%c7_388, %c0_389, %c0_390], %658 {strides = array<i32>} : memref<8x32x128xf32, #tpu.memory_space<vmem>>, vector<1x32x128xf32>,
    return
  }
  func.func @transform_0(%arg0: i32, %arg1: i32) -> (i32, i32) {
    %c0_i32 = arith.constant 0 : i32
    return %arg1, %arg0 : i32, i32
  }
  func.func @transform_1(%arg0: i32, %arg1: i32) -> (i32, i32) {
    %c0_i32 = arith.constant 0 : i32
    %c0_i32_0 = arith.constant 0 : i32
    %c0_i32_1 = arith.constant 0 : i32
    return %c0_i32, %c0_i32_0 : i32, i32
  }
  func.func @transform_2(%arg0: i32, %arg1: i32) -> (i32, i32) {
    %c0_i32 = arith.constant 0 : i32
    %c0_i32_0 = arith.constant 0 : i32
    %c0_i32_1 = arith.constant 0 : i32
    return %c0_i32, %c0_i32_0 : i32, i32
  }
  func.func @transform_3(%arg0: i32, %arg1: i32) -> (i32, i32) {
    %c0_i32 = arith.constant 0 : i32
    %c0_i32_0 = arith.constant 0 : i32
    %c0_i32_1 = arith.constant 0 : i32
    return %c0_i32, %c0_i32_0 : i32, i32
  }
  func.func @transform_4(%arg0: i32, %arg1: i32) -> (i32, i32, i32) {
    %c0_i32 = arith.constant 0 : i32
    %c0_i32_0 = arith.constant 0 : i32
    return %arg1, %c0_i32, %arg0 : i32, i32, i32
  }
}

</mosaic_0001>

<bundles_post_ra>
// kernel: temporal_encoder_lstm_forward.1
= control target key start
LH: loop header
LB: loop body
LE: loop exit
PB: predicated region body
PF: predicated region fallthrough
CT: control target
= control target key end

     0   :  { %vm85_vm0 = vcmask 326656   ;;  %v8892_v0 = vmov 0.0   ;;  %v8893_v3 = vmov 1.0   ;;  %vm379_vm1 = vcmask 261120   ;;  %s11151_s0 = inlined_call_operand.vmem [shape: f32[8,128], index: 0, kind: input, shape index: {}]   ;;  %s11152_s1 = inlined_call_operand.vmem [shape: f32[128,40], index: 1, kind: input, shape index: {}]   ;;  %s11153_s3 = inlined_call_operand.vmem [shape: f32[128,32], index: 3, kind: input, shape index: {}]   ;;  %s11154_s2 = inlined_call_operand.vmem [shape: f32[128,40], index: 2, kind: input, shape index: {}]   ;;  %s11155_s4 = inlined_call_operand.vmem [shape: f32[8,32,128], index: 4, kind: output, shape index: {}]  }
   0x1   :  { %25 = vst [vmem:[#allocation2 + $0x20] sm:$0xff] %v8892_v0  ;;  %v62_v1 = vld [vmem:[%s11151_s0] sm:$0x1]  ;;  %30 = vst [vmem:[#allocation3 + $0x18] sm:$0xff] %v8892_v0  ;;  %v875_v4 = vld [vmem:[%s11151_s0 + $0x1] sm:$0x1] }
   0x2   :  { %v64_v2 = vld [vmem:[%s11152_s1] sm:$0xff]  ;;  %31 = vst [vmem:[#allocation2 + $0x21] sm:$0x1] %v8893_v3  ;;  %63 = vst [vmem:[#allocation2 + $0x20] sm:$0x1] %v62_v1  ;;  %v8940_v6 = vld [vmem:[%s11152_s1 + $0x8] sm:$0xff] }
   0x3   :  { %32 = vst [vmem:[#allocation3 + $0x18] sm:$0x1] %v8893_v3  ;;  %7460 = vmatprep.mubr.msk.f32.mxu0 %vm85_vm0, %v64_v2  ;;  %v8946_v7 = vld [vmem:[%s11152_s1 + $0x10] sm:$0xff]  ;;  %v8956_v8 = vld [vmem:[%s11152_s1 + $0x18] sm:$0xff]  ;;  %v8961_v9 = vld [vmem:[%s11152_s1 + $0x20] sm:$0xff] }
   0x4   :  { %v8970_v10 = vld [vmem:[%s11152_s1 + $0x28] sm:$0xff]  ;;  %v8975_v11 = vld [vmem:[%s11152_s1 + $0x30] sm:$0xff]  ;;  %v8984_v12 = vld [vmem:[%s11152_s1 + $0x38] sm:$0xff] }
   0x5   :  { %v8989_v13 = vld [vmem:[%s11152_s1 + $0x40] sm:$0xff]  ;;  %v8998_v14 = vld [vmem:[%s11152_s1 + $0x48] sm:$0xff]  ;;  %v9003_v15 = vld [vmem:[%s11152_s1 + $0x50] sm:$0xff] }
   0x6   :  { %v9012_v16 = vld [vmem:[%s11152_s1 + $0x58] sm:$0xff]  ;;  %v9017_v17 = vld [vmem:[%s11152_s1 + $0x60] sm:$0xff]  ;;  %v9026_v18 = vld [vmem:[%s11152_s1 + $0x68] sm:$0xff] }
   0x7   :  { %v9031_v19 = vld [vmem:[%s11152_s1 + $0x70] sm:$0xff]  ;;  %v9040_v20 = vld [vmem:[%s11152_s1 + $0x78] sm:$0xff]  ;;  %v9048_v22 = vld [vmem:[%s11153_s3] sm:$0xff] }
   0x8   :  { %7492 = vmatprep.mubr.msk.f32.mxu1 %vm379_vm1, %v9048_v22 }
   0x9   :  { %v84_v5 = vld [vmem:[#allocation2 + $0x20] sm:$0xff] }
   0xa   :  { %7450 = vmatprep.subr.mxu0 %v84_v5  ;;  %876 = vst [vmem:[#allocation2 + $0x20] sm:$0x1] %v875_v4 }
   0xb   :  { %7451 = vmatpush3.msra.mxu0 %v84_v5 }
   0xc   :  { %7452 = vmatprep.subr.mxu0 %v8892_v0 }
   0xd   :  { %7453 = vmatpush3.msra.mxu0 %v8892_v0 }
   0xe   :  { %7454 = vmatprep.subr.mxu0 %v8892_v0 }
   0xf   :  { %7455 = vmatpush3.msra.mxu0 %v8892_v0 }
  0x10   :  { %7456 = vmatprep.subr.mxu0 %v8892_v0 }
  0x11   :  { %7457 = vmatpush3.msra.mxu0 %v8892_v0  ;;  %v897_v21 = vld [vmem:[#allocation2 + $0x20] sm:$0xff] }
  0x12   :  { %7458 = vmatprep.subr.mxu0 %v8892_v0 }
  0x13   :  { %7459 = vmatpush3.msra.mxu0 %v8892_v0 }
  0x14   :  { %7461 = vmatmul.mubr.msk.f32.vlgmr.msra.gmra.mxu0 %vm85_vm0, %v8940_v6  ;;  %7550 = vmatprep.subr.mxu0 %v897_v21 }
  0x15   :  { %7463 = vmatprep.mubr.msk.f32.mxu0 %vm85_vm0, %v8946_v7  ;;  %7551 = vmatpush3.msra.mxu0 %v897_v21 }
  0x18   :  { %7464 = vmatmul.mubr.msk.f32.gmra.mxu0 %vm85_vm0, %v8956_v8 }
  0x19   :  { %7466 = vmatprep.mubr.msk.f32.mxu0 %vm85_vm0, %v8961_v9 }
  0x1c   :  { %7467 = vmatmul.mubr.msk.f32.gmra.mxu0 %vm85_vm0, %v8970_v10 }
  0x1d   :  { %7469 = vmatprep.mubr.msk.f32.mxu0 %vm85_vm0, %v8975_v11 }
  0x20   :  { %7470 = vmatmul.mubr.msk.f32.gmra.mxu0 %vm85_vm0, %v8984_v12 }
  0x21   :  { %7472 = vmatprep.mubr.msk.f32.mxu0 %vm85_vm0, %v8989_v13 }
  0x24   :  { %7473 = vmatmul.mubr.msk.f32.gmra.mxu0 %vm85_vm0, %v8998_v14 }
  0x25   :  { %7475 = vmatprep.mubr.msk.f32.mxu0 %vm85_vm0, %v9003_v15 }
  0x28   :  { %7476 = vmatmul.mubr.msk.f32.gmra.mxu0 %vm85_vm0, %v9012_v16 }
  0x29   :  { %7478 = vmatprep.mubr.msk.f32.mxu0 %vm85_vm0, %v9017_v17 }
  0x2c   :  { %7479 = vmatmul.mubr.msk.f32.gmra.mxu0 %vm85_vm0, %v9026_v18 }
  0x2d   :  { %7481 = vmatprep.mubr.msk.f32.mxu0 %vm85_vm0, %v9031_v19 }
  0x30   :  { %7482 = vmatmul.mubr.msk.f32.gmra.mxu0 %vm85_vm0, %v9040_v20 }
  0x31   :  { %7560 = vmatprep.mubr.msk.f32.mxu0 %vm85_vm0, %v64_v2 }
  0xd4   :  { %v7462_v23 = vpop.f32.mrf.mxu0 }
  0xd5   :  { %v284_v26 = vmul.f32 0.5, %v7462_v23 }
  0xd6   :  { %v200_v24 = vpop.f32.mrf.mxu0 }
  0xd7   :  { %v283_v27 = vmul.f32 0.5, %v200_v24  ;;  %8252 = vtanh.f32 %v284_v26 }
  0xd8   :  { %v7465_v25 = vpop.f32.mrf.mxu0 }
  0xd9   :  { %v286_v29 = vmul.f32 0.5, %v7465_v25  ;;  %8254 = vtanh.f32 %v283_v27 }
  0xda   :  { %v210_v28 = vpop.f32.mrf.mxu0 }
  0xdb   :  { %v285_v32 = vmul.f32 0.5, %v210_v28 }
  0xdc   :  { %v7468_v30 = vpop.f32.mrf.mxu0 }
  0xdd   :  { %v300_v31 = vmul.f32 0.5, %v7468_v30 }
  0xde   :  { %v220_v33 = vpop.f32.mrf.mxu0 }
  0xdf   :  { %8256 = vtanh.f32 %v300_v31  ;;  %v299_v34 = vmul.f32 0.5, %v220_v33 }
  0xe0   :  { %8258 = vtanh.f32 %v286_v29  ;;  %v7471_v35 = vpop.f32.mrf.mxu0 }
  0xe1   :  { %8260 = vtanh.f32 %v299_v34  ;;  %v302_v36 = vmul.f32 0.5, %v7471_v35 }
  0xe2   :  { %8262 = vtanh.f32 %v285_v32  ;;  %v230_v37 = vpop.f32.mrf.mxu0 }
  0xe3   :  { %8264 = vtanh.f32 %v302_v36  ;;  %v301_v38 = vmul.f32 0.5, %v230_v37 }
  0xe4   :  { %v7474_v39 = vpop.f32.mrf.mxu0  ;;  %v8253_v42 = vpop.eup %8252 }
  0xe5   :  { %8266 = vtanh.f32 %v301_v38  ;;  %v292_v49 = vmul.f32 0.5, %v8253_v42 }
  0xe6   :  { %8268 = vtanh.f32 %v7474_v39  ;;  %v240_v40 = vpop.f32.mrf.mxu0  ;;  %v8255_v44 = vpop.eup %8254 }
  0xe7   :  { %8270 = vtanh.f32 %v240_v40  ;;  %v291_v55 = vmul.f32 0.5, %v8255_v44  ;;  %v296_v61 = vadd.f32 0.5, %v292_v49 }
  0xe8   :  { %v7477_v41 = vpop.f32.mrf.mxu0 }
  0xe9   :  { %8272 = vtanh.f32 %v7477_v41  ;;  %v295_v24 = vadd.f32 0.5, %v291_v55 }
  0xea   :  { %v250_v43 = vpop.f32.mrf.mxu0 }
  0xeb   :  { %8274 = vtanh.f32 %v250_v43 }
  0xec   :  { %v8257_v45 = vpop.eup %8256  ;;  %v7480_v46 = vpop.f32.mrf.mxu0 }
  0xed   :  { %v8259_v47 = vpop.eup %8258  ;;  %v308_v50 = vmul.f32 0.5, %v8257_v45  ;;  %v320_v53 = vmul.f32 0.5, %v7480_v46 }
  0xee   :  { %v8261_v48 = vpop.eup %8260  ;;  %v260_v51 = vpop.f32.mrf.mxu0  ;;  %v294_v57 = vmul.f32 0.5, %v8259_v47 }
  0xef   :  { %v8263_v52 = vpop.eup %8262  ;;  %v307_v58 = vmul.f32 0.5, %v8261_v48  ;;  %v312_v63 = vadd.f32 0.5, %v308_v50  ;;  %8276 = vtanh.f32 %v320_v53  ;;  %v319_v26 = vmul.f32 0.5, %v260_v51 }
  0xf0   :  { %v8265_v54 = vpop.eup %8264  ;;  %v7483_v56 = vpop.f32.mrf.mxu0  ;;  %v293_v62 = vmul.f32 0.5, %v8263_v52  ;;  %v298_v27 = vadd.f32 0.5, %v294_v57 }
  0xf1   :  { %v310_v59 = vmul.f32 0.5, %v8265_v54  ;;  %v322_v1 = vmul.f32 0.5, %v7483_v56  ;;  %v311_v28 = vadd.f32 0.5, %v307_v58  ;;  %v336_v31 = vmul.f32 0.0, %v312_v63 }
  0xf2   :  { %v8267_v60 = vpop.eup %8266  ;;  %v270_v2 = vpop.f32.mrf.mxu0  ;;  %v297_v32 = vadd.f32 0.5, %v293_v62 }
  0xf3   :  { %v8269_v3 = vpop.eup %8268  ;;  %v314_v4 = vadd.f32 0.5, %v310_v59  ;;  %v309_v5 = vmul.f32 0.5, %v8267_v60  ;;  %v321_v21 = vmul.f32 0.5, %v270_v2  ;;  %8278 = vtanh.f32 %v322_v1  ;;  %v9067_v1 = vld [vmem:[%s11153_s3 + $0x8] sm:$0xff]  ;;  %v9072_v2 = vld [vmem:[%s11153_s3 + $0x10] sm:$0xff] }
  0xf4   :  { %v8271_v23 = vpop.eup %8270  ;;  %v340_v25 = vmul.f32 %v8269_v3, %v296_v61  ;;  %v335_v38 = vmul.f32 0.0, %v311_v28  ;;  %v61_v3 = vld [vmem:[#allocation3 + $0x18] sm:$0xff]  ;;  %v9285_v28 = vld [vmem:[%s11154_s2 + $0x58] sm:$0xff] }
  0xf5   :  { %v313_v29 = vadd.f32 0.5, %v309_v5  ;;  %8280 = vtanh.f32 %v321_v21  ;;  %v338_v33 = vmul.f32 0.0, %v314_v4  ;;  %v339_v34 = vmul.f32 %v8271_v23, %v295_v24  ;;  %v9083_v4 = vld [vmem:[%s11153_s3 + $0x18] sm:$0xff]  ;;  %v9090_v5 = vld [vmem:[%s11153_s3 + $0x20] sm:$0xff]  ;;  %v9243_v21 = vld [vmem:[%s11154_s2 + $0x28] sm:$0xff]  ;;  %11198 = vst [vmem:[#allocation16_spill] sm:$0xff] %v9285_v28 }
  0xf6   :  { %v8273_v30 = vpop.eup %8272  ;;  %v9052_v37 = vadd.f32 %v340_v25, %v336_v31  ;;  %8282 = vtanh.f32 %v319_v26  ;;  %11192 = vst [vmem:[#allocation10_spill] sm:$0xff] %v9243_v21  ;;  %v9248_v23 = vld [vmem:[%s11154_s2 + $0x30] sm:$0xff]  ;;  %v9257_v24 = vld [vmem:[%s11154_s2 + $0x38] sm:$0xff]  ;;  %v9262_v25 = vld [vmem:[%s11154_s2 + $0x40] sm:$0xff] }
  0xf7   :  { %v342_v35 = vmul.f32 %v8273_v30, %v298_v27  ;;  %v337_v39 = vmul.f32 0.0, %v313_v29  ;;  %v9056_v42 = vadd.f32 %v339_v34, %v335_v38  ;;  %11193 = vst [vmem:[#allocation11_spill] sm:$0xff] %v9248_v23  ;;  %11194 = vst [vmem:[#allocation12_spill] sm:$0xff] %v9257_v24  ;;  %v9271_v26 = vld [vmem:[%s11154_s2 + $0x48] sm:$0xff]  ;;  %v9276_v27 = vld [vmem:[%s11154_s2 + $0x50] sm:$0xff] }
  0xf8   :  { %v8275_v36 = vpop.eup %8274  ;;  %11195 = vst [vmem:[#allocation13_spill] sm:$0xff] %v9262_v25  ;;  %11196 = vst [vmem:[#allocation14_spill] sm:$0xff] %v9271_v26  ;;  %v9290_v29 = vld [vmem:[%s11154_s2 + $0x60] sm:$0xff]  ;;  %v9299_v30 = vld [vmem:[%s11154_s2 + $0x68] sm:$0xff] }
  0xf9   :  { %v9054_v40 = vadd.f32 %v342_v35, %v338_v33  ;;  %v341_v41 = vmul.f32 %v8275_v36, %v297_v32  ;;  %11197 = vst [vmem:[#allocation15_spill] sm:$0xff] %v9276_v27  ;;  %11199 = vst [vmem:[#allocation17_spill] sm:$0xff] %v9290_v29  ;;  %v9304_v31 = vld [vmem:[%s11154_s2 + $0x70] sm:$0xff]  ;;  %v9313_v32 = vld [vmem:[%s11154_s2 + $0x78] sm:$0xff] }
  0xfa   :  { %11200 = vst [vmem:[#allocation18_spill] sm:$0xff] %v9299_v30  ;;  %11201 = vst [vmem:[#allocation19_spill] sm:$0xff] %v9304_v31  ;;  %v1687_v33 = vld [vmem:[%s11151_s0 + $0x2] sm:$0x1]  ;;  %v2499_v35 = vld [vmem:[%s11151_s0 + $0x3] sm:$0x1] }
  0xfb   :  { %v9058_v43 = vadd.f32 %v341_v41, %v337_v39  ;;  %8284 = vtanh.f32 %v9054_v40  ;;  %11202 = vst [vmem:[#allocation20_spill] sm:$0xff] %v9313_v32  ;;  %1688 = vst [vmem:[#allocation2 + $0x20] sm:$0x1] %v1687_v33 }
  0xfc   :  { %8286 = vtanh.f32 %v9052_v37  ;;  %v8277_v44 = vpop.eup %8276 }
  0xfd   :  { %8288 = vtanh.f32 %v9058_v43  ;;  %v328_v49 = vmul.f32 0.5, %v8277_v44 }
  0xfe   :  { %8290 = vtanh.f32 %v9056_v42 }
  0xff   :  { %v332_v54 = vadd.f32 0.5, %v328_v49 }
 0x100   :  { %v8279_v45 = vpop.eup %8278 }
 0x101   :  { %v330_v47 = vmul.f32 0.5, %v8279_v45 }
 0x102   :  { %v8281_v46 = vpop.eup %8280  ;;  %v9322_v34 = vld [vmem:[#allocation2 + $0x20] sm:$0xff] }
 0x103   :  { %v8283_v48 = vpop.eup %8282  ;;  %v334_v50 = vadd.f32 0.5, %v330_v47  ;;  %v329_v51 = vmul.f32 0.5, %v8281_v46  ;;  %2500 = vst [vmem:[#allocation2 + $0x20] sm:$0x1] %v2499_v35 }
 0x104   :  { %v327_v55 = vmul.f32 0.5, %v8283_v48 }
 0x105   :  { %v333_v57 = vadd.f32 0.5, %v329_v51 }
 0x106   :  { %v331_v62 = vadd.f32 0.5, %v327_v55 }
 0x108   :  { %v8285_v52 = vpop.eup %8284 }
 0x109   :  { %v8287_v53 = vpop.eup %8286  ;;  %v354_v56 = vmul.f32 %v8285_v52, %v334_v50 }
 0x10a   :  { %v8289_v58 = vpop.eup %8288  ;;  %v352_v61 = vmul.f32 %v8287_v53, %v332_v54 }
 0x10b   :  { %7484 = vmatprep.subr.mxu1 %v354_v56  ;;  %v353_v59 = vmul.f32 %v8289_v58, %v333_v57  ;;  %7552 = vmatprep.subr.mxu0 %v354_v56  ;;  %v8291_v60 = vpop.eup %8290 }
 0x10c   :  { %7485 = vmatpush3.msra.mxu1 %v354_v56  ;;  %7553 = vmatpush3.msra.mxu0 %v354_v56  ;;  %v351_v63 = vmul.f32 %v8291_v60, %v331_v62 }
 0x10d   :  { %7486 = vmatprep.subr.mxu1 %v353_v59  ;;  %7554 = vmatprep.subr.mxu0 %v353_v59 }
 0x10e   :  { %7487 = vmatpush3.msra.mxu1 %v353_v59  ;;  %7555 = vmatpush3.msra.mxu0 %v353_v59 }
 0x10f   :  { %7488 = vmatprep.subr.mxu1 %v352_v61  ;;  %7556 = vmatprep.subr.mxu0 %v352_v61 }
 0x110   :  { %7489 = vmatpush3.msra.mxu1 %v352_v61  ;;  %7557 = vmatpush3.msra.mxu0 %v352_v61 }
 0x111   :  { %7490 = vmatprep.subr.mxu1 %v351_v63  ;;  %7558 = vmatprep.subr.mxu0 %v351_v63 }
 0x112   :  { %7491 = vmatpush3.msra.mxu1 %v351_v63  ;;  %7559 = vmatpush3.msra.mxu0 %v351_v63 }
 0x113   :  { %7493 = vmatmul.mubr.msk.f32.vlgmr.msra.gmra.mxu1 %vm379_vm1, %v9067_v1  ;;  %7561 = vmatmul.mubr.msk.f32.vlgmr.msra.gmra.mxu0 %vm85_vm0, %v8940_v6  ;;  %v9101_v6 = vld [vmem:[%s11153_s3 + $0x28] sm:$0xff] }
 0x114   :  { %7495 = vmatprep.mubr.msk.f32.mxu1 %vm379_vm1, %v9072_v2  ;;  %7563 = vmatprep.mubr.msk.f32.mxu0 %vm85_vm0, %v8946_v7  ;;  %v9108_v7 = vld [vmem:[%s11153_s3 + $0x30] sm:$0xff] }
 0x115   :  { %7516 = vmatprep.subr.mxu1 %v61_v3  ;;  %7616 = vmatprep.subr.mxu0 %v61_v3 }
 0x116   :  { %7517 = vmatpush3.msra.mxu1 %v61_v3  ;;  %7617 = vmatpush3.msra.mxu0 %v61_v3 }
 0x117   :  { %7496 = vmatmul.mubr.msk.f32.gmra.mxu1 %vm379_vm1, %v9083_v4  ;;  %7564 = vmatmul.mubr.msk.f32.gmra.mxu0 %vm85_vm0, %v8956_v8  ;;  %v9121_v8 = vld [vmem:[%s11153_s3 + $0x38] sm:$0xff] }
 0x118   :  { %7498 = vmatprep.mubr.msk.f32.mxu1 %vm379_vm1, %v9090_v5  ;;  %7566 = vmatprep.mubr.msk.f32.mxu0 %vm85_vm0, %v8961_v9  ;;  %v9128_v9 = vld [vmem:[%s11153_s3 + $0x40] sm:$0xff] }
 0x119   :  { %7518 = vmatprep.subr.mxu1 %v8892_v0 }
 0x11a   :  { %7519 = vmatpush3.msra.mxu1 %v8892_v0 }
 0x11b   :  { %7499 = vmatmul.mubr.msk.f32.gmra.mxu1 %vm379_vm1, %v9101_v6  ;;  %7567 = vmatmul.mubr.msk.f32.gmra.mxu0 %vm85_vm0, %v8970_v10  ;;  %v9141_v10 = vld [vmem:[%s11153_s3 + $0x48] sm:$0xff] }
 0x11c   :  { %7501 = vmatprep.mubr.msk.f32.mxu1 %vm379_vm1, %v9108_v7  ;;  %7569 = vmatprep.mubr.msk.f32.mxu0 %vm85_vm0, %v8975_v11  ;;  %v9148_v11 = vld [vmem:[%s11153_s3 + $0x50] sm:$0xff] }
 0x11d   :  { %7520 = vmatprep.subr.mxu1 %v8892_v0 }
 0x11e   :  { %7521 = vmatpush3.msra.mxu1 %v8892_v0 }
 0x11f   :  { %7502 = vmatmul.mubr.msk.f32.gmra.mxu1 %vm379_vm1, %v9121_v8  ;;  %7570 = vmatmul.mubr.msk.f32.gmra.mxu0 %vm85_vm0, %v8984_v12  ;;  %v9161_v12 = vld [vmem:[%s11153_s3 + $0x58] sm:$0xff] }
 0x120   :  { %7504 = vmatprep.mubr.msk.f32.mxu1 %vm379_vm1, %v9128_v9  ;;  %7572 = vmatprep.mubr.msk.f32.mxu0 %vm85_vm0, %v8989_v13  ;;  %v9168_v13 = vld [vmem:[%s11153_s3 + $0x60] sm:$0xff] }
 0x121   :  { %7522 = vmatprep.subr.mxu1 %v8892_v0 }
 0x122   :  { %7523 = vmatpush3.msra.mxu1 %v8892_v0 }
 0x123   :  { %7505 = vmatmul.mubr.msk.f32.gmra.mxu1 %vm379_vm1, %v9141_v10  ;;  %7573 = vmatmul.mubr.msk.f32.gmra.mxu0 %vm85_vm0, %v8998_v14  ;;  %v9181_v14 = vld [vmem:[%s11153_s3 + $0x68] sm:$0xff] }
 0x124   :  { %7507 = vmatprep.mubr.msk.f32.mxu1 %vm379_vm1, %v9148_v11  ;;  %7575 = vmatprep.mubr.msk.f32.mxu0 %vm85_vm0, %v9003_v15  ;;  %v9199_v15 = vld [vmem:[%s11153_s3 + $0x78] sm:$0xff] }
 0x125   :  { %7524 = vmatprep.subr.mxu1 %v8892_v0 }
 0x126   :  { %7525 = vmatpush3.msra.mxu1 %v8892_v0  ;;  %v9188_v0 = vld [vmem:[%s11153_s3 + $0x70] sm:$0xff] }
 0x127   :  { %7508 = vmatmul.mubr.msk.f32.gmra.mxu1 %vm379_vm1, %v9161_v12  ;;  %7576 = vmatmul.mubr.msk.f32.gmra.mxu0 %vm85_vm0, %v9012_v16  ;;  %v41_v16 = vld [vmem:[%s11154_s2] sm:$0xff] }
 0x128   :  { %7510 = vmatprep.mubr.msk.f32.mxu1 %vm379_vm1, %v9168_v13  ;;  %7578 = vmatprep.mubr.msk.f32.mxu0 %vm85_vm0, %v9017_v17  ;;  %v9214_v17 = vld [vmem:[%s11154_s2 + $0x8] sm:$0xff] }
 0x129   :  { %11188 = vst [vmem:[#allocation6_spill] sm:$0xff] %v9214_v17 }
 0x12b   :  { %7511 = vmatmul.mubr.msk.f32.gmra.mxu1 %vm379_vm1, %v9181_v14  ;;  %7579 = vmatmul.mubr.msk.f32.gmra.mxu0 %vm85_vm0, %v9026_v18  ;;  %v9220_v18 = vld [vmem:[%s11154_s2 + $0x10] sm:$0xff] }
 0x12c   :  { %7513 = vmatprep.mubr.msk.f32.mxu1 %vm379_vm1, %v9188_v0  ;;  %7581 = vmatprep.mubr.msk.f32.mxu0 %vm85_vm0, %v9031_v19  ;;  %11189 = vst [vmem:[#allocation7_spill] sm:$0xff] %v9220_v18  ;;  %v9229_v19 = vld [vmem:[%s11154_s2 + $0x18] sm:$0xff] }
 0x12d   :  { %11190 = vst [vmem:[#allocation8_spill] sm:$0xff] %v9229_v19 }
 0x12f   :  { %7514 = vmatmul.mubr.msk.f32.gmra.mxu1 %vm379_vm1, %v9199_v15  ;;  %7582 = vmatmul.mubr.msk.f32.gmra.mxu0 %vm85_vm0, %v9040_v20  ;;  %v9234_v20 = vld [vmem:[%s11154_s2 + $0x20] sm:$0xff] }
 0x130   :  { %7526 = vmatprep.mubr.msk.f32.mxu1 %vm85_vm0, %v41_v16  ;;  %7626 = vmatprep.mubr.msk.f32.mxu0 %vm85_vm0, %v41_v16  ;;  %11191 = vst [vmem:[#allocation9_spill] sm:$0xff] %v9234_v20 }
 0x133   :  { %7527 = vmatmul.mubr.msk.f32.vlgmr.msra.gmra.mxu1 %vm85_vm0, %v9214_v17 }
 0x134   :  { %7529 = vmatprep.mubr.msk.f32.mxu1 %vm85_vm0, %v9220_v18 }
 0x137   :  { %7530 = vmatmul.mubr.msk.f32.gmra.mxu1 %vm85_vm0, %v9229_v19 }
 0x138   :  { %7532 = vmatprep.mubr.msk.f32.mxu1 %vm85_vm0, %v9234_v20 }
 0x13b   :  { %7533 = vmatmul.mubr.msk.f32.gmra.mxu1 %vm85_vm0, %v9243_v21 }
 0x13c   :  { %7535 = vmatprep.mubr.msk.f32.mxu1 %vm85_vm0, %v9248_v23 }
 0x13f   :  { %7536 = vmatmul.mubr.msk.f32.gmra.mxu1 %vm85_vm0, %v9257_v24 }
 0x140   :  { %7538 = vmatprep.mubr.msk.f32.mxu1 %vm85_vm0, %v9262_v25 }
 0x143   :  { %7539 = vmatmul.mubr.msk.f32.gmra.mxu1 %vm85_vm0, %v9271_v26 }
 0x144   :  { %7541 = vmatprep.mubr.msk.f32.mxu1 %vm85_vm0, %v9276_v27 }
 0x147   :  { %7542 = vmatmul.mubr.msk.f32.gmra.mxu1 %vm85_vm0, %v9285_v28 }
 0x148   :  { %7544 = vmatprep.mubr.msk.f32.mxu1 %vm85_vm0, %v9290_v29 }
 0x14b   :  { %7545 = vmatmul.mubr.msk.f32.gmra.mxu1 %vm85_vm0, %v9299_v30 }
 0x14c   :  { %7547 = vmatprep.mubr.msk.f32.mxu1 %vm85_vm0, %v9304_v31 }
 0x14f   :  { %7548 = vmatmul.mubr.msk.f32.gmra.mxu1 %vm85_vm0, %v9313_v32 }
 0x150   :  { %7592 = vmatprep.mubr.msk.f32.mxu1 %vm379_vm1, %v9048_v22 }
 0x1d3   :  { %v9327_v36 = vpop.f32.mrf.mxu1  ;;  %v7562_v38 = vpop.f32.mrf.mxu0 }
 0x1d4   :  { %v1096_v45 = vmul.f32 0.5, %v7562_v38 }
 0x1d5   :  { %v9329_v39 = vpop.f32.mrf.mxu1  ;;  %v1012_v41 = vpop.f32.mrf.mxu0 }
 0x1d6   :  { %v1095_v47 = vmul.f32 0.5, %v1012_v41  ;;  %8292 = vtanh.f32 %v1096_v45 }
 0x1d7   :  { %v9331_v44 = vpop.f32.mrf.mxu1  ;;  %v7565_v22 = vpop.f32.mrf.mxu0 }
 0x1d8   :  { %v1098_v50 = vmul.f32 0.5, %v7565_v22  ;;  %8294 = vtanh.f32 %v1095_v47 }
 0x1d9   :  { %v9333_v46 = vpop.f32.mrf.mxu1  ;;  %v1022_v48 = vpop.f32.mrf.mxu0 }
 0x1da   :  { %v1097_v54 = vmul.f32 0.5, %v1022_v48 }
 0x1db   :  { %v9335_v49 = vpop.f32.mrf.mxu1  ;;  %v7568_v51 = vpop.f32.mrf.mxu0 }
 0x1dc   :  { %v1112_v52 = vmul.f32 0.5, %v7568_v51 }
 0x1dd   :  { %v9337_v53 = vpop.f32.mrf.mxu1  ;;  %v1032_v55 = vpop.f32.mrf.mxu0 }
 0x1de   :  { %8296 = vtanh.f32 %v1112_v52  ;;  %v1111_v56 = vmul.f32 0.5, %v1032_v55 }
 0x1df   :  { %v9339_v57 = vpop.f32.mrf.mxu1  ;;  %8298 = vtanh.f32 %v1098_v50  ;;  %v7571_v58 = vpop.f32.mrf.mxu0 }
 0x1e0   :  { %8300 = vtanh.f32 %v1111_v56  ;;  %v1114_v59 = vmul.f32 0.5, %v7571_v58 }
 0x1e1   :  { %v9341_v60 = vpop.f32.mrf.mxu1  ;;  %8302 = vtanh.f32 %v1097_v54  ;;  %v1042_v61 = vpop.f32.mrf.mxu0 }
 0x1e2   :  { %8304 = vtanh.f32 %v1114_v59  ;;  %v1113_v62 = vmul.f32 0.5, %v1042_v61 }
 0x1e3   :  { %v9343_v63 = vpop.f32.mrf.mxu1  ;;  %v7574_v3 = vpop.f32.mrf.mxu0 }
 0x1e4   :  { %8306 = vtanh.f32 %v1113_v62  ;;  %v8293_v41 = vpop.eup %8292 }
 0x1e5   :  { %v9345_v16 = vpop.f32.mrf.mxu1  ;;  %8308 = vtanh.f32 %v7574_v3  ;;  %v1052_v33 = vpop.f32.mrf.mxu0  ;;  %v1104_v56 = vmul.f32 0.5, %v8293_v41 }
 0x1e6   :  { %8310 = vtanh.f32 %v1052_v33  ;;  %v8295_v47 = vpop.eup %8294 }
 0x1e7   :  { %v9347_v35 = vpop.f32.mrf.mxu1  ;;  %v7577_v38 = vpop.f32.mrf.mxu0  ;;  %v1103_v58 = vmul.f32 0.5, %v8295_v47  ;;  %v1108_v27 = vadd.f32 0.5, %v1104_v56 }
 0x1e8   :  { %8312 = vtanh.f32 %v7577_v38 }
 0x1e9   :  { %v9349_v22 = vpop.f32.mrf.mxu1  ;;  %v1062_v45 = vpop.f32.mrf.mxu0  ;;  %v1107_v26 = vadd.f32 0.5, %v1103_v58 }
 0x1ea   :  { %8314 = vtanh.f32 %v1062_v45 }
 0x1eb   :  { %v8297_v48 = vpop.eup %8296  ;;  %v9351_v50 = vpop.f32.mrf.mxu1 }
 0x1ec   :  { %v7580_v51 = vpop.f32.mrf.mxu0  ;;  %v8299_v52 = vpop.eup %8298  ;;  %v1120_v54 = vmul.f32 0.5, %v8297_v48 }
 0x1ed   :  { %v8301_v55 = vpop.eup %8300  ;;  %v9353_v59 = vpop.f32.mrf.mxu1  ;;  %v1106_v45 = vmul.f32 0.5, %v8299_v52  ;;  %v1132_v29 = vmul.f32 0.5, %v7580_v51 }
 0x1ee   :  { %v1072_v61 = vpop.f32.mrf.mxu0  ;;  %v8303_v62 = vpop.eup %8302  ;;  %v1124_v33 = vadd.f32 0.5, %v1120_v54  ;;  %v1119_v38 = vmul.f32 0.5, %v8301_v55 }
 0x1ef   :  { %v8305_v3 = vpop.eup %8304  ;;  %v9355_v32 = vpop.f32.mrf.mxu1  ;;  %v1105_v48 = vmul.f32 0.5, %v8303_v62  ;;  %v1131_v20 = vmul.f32 0.5, %v1072_v61  ;;  %v1110_v51 = vadd.f32 0.5, %v1106_v45 }
 0x1f0   :  { %v7583_v31 = vpop.f32.mrf.mxu0  ;;  %v1122_v30 = vmul.f32 0.5, %v8305_v3  ;;  %v1148_v19 = vmul.f32 %v1124_v33, %v9052_v37  ;;  %v1123_v18 = vadd.f32 0.5, %v1119_v38 }
 0x1f1   :  { %v8307_v28 = vpop.eup %8306  ;;  %v9357_v25 = vpop.f32.mrf.mxu1  ;;  %v1134_v41 = vmul.f32 0.5, %v7583_v31 }
 0x1f2   :  { %v1082_v47 = vpop.f32.mrf.mxu0  ;;  %v8309_v24 = vpop.eup %8308  ;;  %v1126_v23 = vadd.f32 0.5, %v1122_v30  ;;  %v1121_v21 = vmul.f32 0.5, %v8307_v28  ;;  %v1109_v28 = vadd.f32 0.5, %v1105_v48 }
 0x1f3   :  { %v1133_v54 = vmul.f32 0.5, %v1082_v47  ;;  %v8311_v55 = vpop.eup %8310  ;;  %v1152_v52 = vmul.f32 %v8309_v24, %v1108_v27  ;;  %v7528_v3 = vpop.f32.mrf.mxu1  ;;  %8316 = vtanh.f32 %v1134_v41  ;;  %v1147_v24 = vmul.f32 %v1123_v18, %v9056_v42 }
 0x1f4   :  { %v1125_v56 = vadd.f32 0.5, %v1121_v21  ;;  %v693_v58 = vadd.f32 %v7528_v3, %v9327_v36  ;;  %8318 = vtanh.f32 %v1132_v29  ;;  %v1150_v30 = vmul.f32 %v1126_v23, %v9054_v40 }
 0x1f5   :  { %v8313_v62 = vpop.eup %8312  ;;  %v9361_v31 = vadd.f32 %v1152_v52, %v1148_v19  ;;  %v687_v17 = vpop.f32.mrf.mxu1  ;;  %8320 = vtanh.f32 %v1133_v54  ;;  %v1151_v61 = vmul.f32 %v8311_v55, %v1107_v26 }
 0x1f6   :  { %v1154_v47 = vmul.f32 %v8313_v62, %v1110_v51  ;;  %v771_v27 = vmul.f32 0.5, %v693_v58  ;;  %v688_v33 = vadd.f32 %v687_v17, %v9329_v39  ;;  %8322 = vtanh.f32 %v1131_v20 }
 0x1f7   :  { %v8315_v37 = vpop.eup %8314  ;;  %v7531_v21 = vpop.f32.mrf.mxu1  ;;  %v1149_v29 = vmul.f32 %v1125_v56, %v9058_v43  ;;  %8324 = vtanh.f32 %v9361_v31  ;;  %v9371_v40 = vadd.f32 %v1151_v61, %v1147_v24 }
 0x1f8   :  { %v9367_v36 = vadd.f32 %v1154_v47, %v1150_v30  ;;  %v1153_v19 = vmul.f32 %v8315_v37, %v1109_v28  ;;  %v703_v38 = vadd.f32 %v7531_v21, %v9331_v44  ;;  %v770_v45 = vmul.f32 0.5, %v688_v33 }
 0x1f9   :  { %v697_v48 = vpop.f32.mrf.mxu1 }
 0x1fa   :  { %v9373_v23 = vadd.f32 %v1153_v19, %v1149_v29  ;;  %v698_v42 = vadd.f32 %v697_v48, %v9333_v46  ;;  %8326 = vtanh.f32 %v9367_v36  ;;  %v773_v17 = vmul.f32 0.5, %v703_v38 }
 0x1fb   :  { %8328 = vtanh.f32 %v771_v27  ;;  %v7534_v43 = vpop.f32.mrf.mxu1 }
 0x1fc   :  { %8330 = vtanh.f32 %v770_v45  ;;  %v713_v18 = vadd.f32 %v7534_v43, %v9335_v49  ;;  %v772_v26 = vmul.f32 0.5, %v698_v42 }
 0x1fd   :  { %v707_v20 = vpop.f32.mrf.mxu1  ;;  %8332 = vtanh.f32 %v9373_v23 }
 0x1fe   :  { %v787_v39 = vmul.f32 0.5, %v713_v18  ;;  %8334 = vtanh.f32 %v9371_v40  ;;  %v708_v44 = vadd.f32 %v707_v20, %v9337_v53 }
 0x1ff   :  { %8336 = vtanh.f32 %v773_v17  ;;  %v7537_v41 = vpop.f32.mrf.mxu1 }
 0x200   :  { %v8317_v46 = vpop.eup %8316  ;;  %8338 = vtanh.f32 %v787_v39  ;;  %v723_v54 = vadd.f32 %v7537_v41, %v9339_v57  ;;  %v786_v3 = vmul.f32 0.5, %v708_v44 }
 0x201   :  { %v8319_v55 = vpop.eup %8318  ;;  %v1142_v52 = vmul.f32 0.5, %v8317_v46  ;;  %v717_v51 = vpop.f32.mrf.mxu1  ;;  %8340 = vtanh.f32 %v772_v26 }
 0x202   :  { %v8321_v49 = vpop.eup %8320  ;;  %v789_v56 = vmul.f32 0.5, %v723_v54  ;;  %v718_v58 = vadd.f32 %v717_v51, %v9341_v60  ;;  %8342 = vtanh.f32 %v786_v3  ;;  %v1140_v47 = vmul.f32 0.5, %v8319_v55 }
 0x203   :  { %v7540_v62 = vpop.f32.mrf.mxu1  ;;  %v8323_v28 = vpop.eup %8322  ;;  %v1146_v30 = vadd.f32 0.5, %v1142_v52  ;;  %v1141_v37 = vmul.f32 0.5, %v8321_v49 }
 0x204   :  { %8344 = vtanh.f32 %v789_v56  ;;  %v788_v53 = vmul.f32 0.5, %v718_v58  ;;  %v733_v61 = vadd.f32 %v7540_v62, %v9343_v63  ;;  %v8325_v24 = vpop.eup %8324  ;;  %v1144_v45 = vadd.f32 0.5, %v1140_v47 }
 0x205   :  { %v727_v57 = vpop.f32.mrf.mxu1  ;;  %v1139_v48 = vmul.f32 0.5, %v8323_v28  ;;  %v1145_v42 = vadd.f32 0.5, %v1141_v37 }
 0x206   :  { %8346 = vtanh.f32 %v788_v53  ;;  %v728_v27 = vadd.f32 %v727_v57, %v9345_v16  ;;  %v9395_v54 = vmul.f32 %v8325_v24, %v1144_v45 }
 0x207   :  { %v8327_v33 = vpop.eup %8326  ;;  %8348 = vtanh.f32 %v733_v61  ;;  %v7543_v21 = vpop.f32.mrf.mxu1 }
 0x208   :  { %v8329_v29 = vpop.eup %8328  ;;  %8350 = vtanh.f32 %v728_v27  ;;  %v743_v60 = vadd.f32 %v7543_v21, %v9347_v35  ;;  %v9386_v19 = vmul.f32 %v8327_v33, %v1146_v30 }
 0x209   :  { %v8331_v38 = vpop.eup %8330  ;;  %v737_v63 = vpop.f32.mrf.mxu1  ;;  %v779_v44 = vmul.f32 0.5, %v8329_v29 }
 0x20a   :  { %v8333_v17 = vpop.eup %8332  ;;  %8352 = vtanh.f32 %v743_v60  ;;  %v738_v43 = vadd.f32 %v737_v63, %v9349_v22  ;;  %7584 = vmatprep.subr.mxu1 %v9386_v19  ;;  %v778_v41 = vmul.f32 0.5, %v8331_v38  ;;  %v1143_v22 = vadd.f32 0.5, %v1139_v48 }
 0x20b   :  { %v8335_v16 = vpop.eup %8334  ;;  %v7546_v18 = vpop.f32.mrf.mxu1  ;;  %7585 = vmatpush3.msra.mxu1 %v9386_v19  ;;  %v9391_v20 = vmul.f32 %v8333_v17, %v1145_v42  ;;  %v783_v61 = vadd.f32 0.5, %v779_v44 }
 0x20c   :  { %v8337_v35 = vpop.eup %8336  ;;  %8354 = vtanh.f32 %v738_v43  ;;  %v753_v26 = vadd.f32 %v7546_v18, %v9351_v50  ;;  %v1163_v50 = vmul.f32 %v8335_v16, %v1143_v22  ;;  %v782_v47 = vadd.f32 0.5, %v778_v41 }
 0x20d   :  { %v8339_v39 = vpop.eup %8338  ;;  %v747_v46 = vpop.f32.mrf.mxu1  ;;  %7586 = vmatprep.subr.mxu1 %v9391_v20  ;;  %v781_v49 = vmul.f32 0.5, %v8337_v35 }
 0x20e   :  { %v795_v55 = vmul.f32 0.5, %v8339_v39  ;;  %v807_v52 = vmul.f32 0.5, %v753_v26  ;;  %v748_v3 = vadd.f32 %v747_v46, %v9353_v59  ;;  %7587 = vmatpush3.msra.mxu1 %v9391_v20  ;;  %v8341_v51 = vpop.eup %8340 }
 0x20f   :  { %v7549_v56 = vpop.f32.mrf.mxu1  ;;  %7588 = vmatprep.subr.mxu1 %v9395_v54  ;;  %v8343_v58 = vpop.eup %8342  ;;  %v780_v57 = vmul.f32 0.5, %v8341_v51  ;;  %v785_v38 = vadd.f32 0.5, %v781_v49 }
 0x210   :  { %v799_v62 = vadd.f32 0.5, %v795_v55  ;;  %8356 = vtanh.f32 %v807_v52  ;;  %v806_v28 = vmul.f32 0.5, %v748_v3  ;;  %v763_v30 = vadd.f32 %v7549_v56, %v9355_v32  ;;  %7589 = vmatpush3.msra.mxu1 %v9395_v54 }
 0x211   :  { %v8345_v53 = vpop.eup %8344  ;;  %v794_v59 = vmul.f32 0.5, %v8343_v58  ;;  %v757_v37 = vpop.f32.mrf.mxu1  ;;  %7590 = vmatprep.subr.mxu1 %v1163_v50 }
 0x212   :  { %v797_v24 = vmul.f32 0.5, %v8345_v53  ;;  %8358 = vtanh.f32 %v806_v28  ;;  %v809_v27 = vmul.f32 0.5, %v763_v30  ;;  %7591 = vmatpush3.msra.mxu1 %v1163_v50  ;;  %v823_v21 = vmul.f32 0.0, %v799_v62  ;;  %v9491_v62 = vld [vmem:[%s11152_s1 + $0x18] sm:$0xff]  ;;  %v9498_v30 = vld [vmem:[%s11152_s1 + $0x20] sm:$0xff] }
 0x213   :  { %v8347_v33 = vpop.eup %8346  ;;  %v798_v29 = vadd.f32 0.5, %v794_v59  ;;  %v758_v60 = vadd.f32 %v757_v37, %v9357_v25  ;;  %7593 = vmatmul.mubr.msk.f32.vlgmr.msra.gmra.mxu1 %vm379_vm1, %v9067_v1  ;;  %7650 = vmatprep.subr.mxu1 %v9322_v34  ;;  %v784_v25 = vadd.f32 0.5, %v780_v57  ;;  %v11204_v28 = vld [vmem:[#allocation7_spill] sm:$0xff]  ;;  %v11205_v53 = vld [vmem:[#allocation8_spill] sm:$0xff]  ;;  %v9516_v59 = vld [vmem:[%s11152_s1 + $0x30] sm:$0xff] }
 0x214   :  { %v8349_v32 = vpop.eup %8348  ;;  %v801_v45 = vadd.f32 0.5, %v797_v24  ;;  %v796_v48 = vmul.f32 0.5, %v8347_v33  ;;  %8360 = vtanh.f32 %v809_v27  ;;  %7651 = vmatpush3.msra.mxu1 %v9322_v34  ;;  %7595 = vmatprep.mubr.msk.f32.mxu1 %vm379_vm1, %v9072_v2  ;;  %v11207_v37 = vld [vmem:[#allocation10_spill] sm:$0xff]  ;;  %v9527_v57 = vld [vmem:[%s11152_s1 + $0x38] sm:$0xff]  ;;  %v9534_v27 = vld [vmem:[%s11152_s1 + $0x40] sm:$0xff] }
 0x215   :  { %v8351_v63 = vpop.eup %8350  ;;  %v822_v42 = vmul.f32 0.0, %v798_v29  ;;  %v827_v17 = vmul.f32 %v8349_v32, %v783_v61  ;;  %v808_v43 = vmul.f32 0.5, %v758_v60  ;;  %7652 = vmatprep.subr.mxu1 %v9386_v19  ;;  %v9509_v61 = vld [vmem:[%s11152_s1 + $0x28] sm:$0xff]  ;;  %v11208_v24 = vld [vmem:[#allocation11_spill] sm:$0xff]  ;;  %v11209_v33 = vld [vmem:[#allocation12_spill] sm:$0xff] }
 0x216   :  { %v825_v1 = vmul.f32 0.0, %v801_v45  ;;  %v800_v16 = vadd.f32 0.5, %v796_v48  ;;  %v826_v18 = vmul.f32 %v8351_v63, %v782_v47  ;;  %7653 = vmatpush3.msra.mxu1 %v9386_v19  ;;  %v11206_v47 = vld [vmem:[#allocation9_spill] sm:$0xff]  ;;  %v9552_v60 = vld [vmem:[%s11152_s1 + $0x50] sm:$0xff]  ;;  %v11212_v45 = vld [vmem:[#allocation15_spill] sm:$0xff] }
 0x217   :  { %v8353_v35 = vpop.eup %8352  ;;  %v9411_v26 = vadd.f32 %v827_v17, %v823_v21  ;;  %8362 = vtanh.f32 %v808_v43  ;;  %7596 = vmatmul.mubr.msk.f32.gmra.mxu1 %vm379_vm1, %v9083_v4  ;;  %7654 = vmatprep.subr.mxu1 %v9391_v20  ;;  %v9545_v21 = vld [vmem:[%s11152_s1 + $0x48] sm:$0xff]  ;;  %v11211_v32 = vld [vmem:[#allocation14_spill] sm:$0xff]  ;;  %v9570_v48 = vld [vmem:[%s11152_s1 + $0x60] sm:$0xff] }
 0x218   :  { %v824_v2 = vmul.f32 0.0, %v800_v16  ;;  %v9416_v34 = vadd.f32 %v826_v18, %v822_v42  ;;  %v829_v39 = vmul.f32 %v8353_v35, %v785_v38  ;;  %7655 = vmatpush3.msra.mxu1 %v9391_v20  ;;  %7598 = vmatprep.mubr.msk.f32.mxu1 %vm379_vm1, %v9090_v5  ;;  %v11210_v29 = vld [vmem:[#allocation13_spill] sm:$0xff]  ;;  %v9563_v38 = vld [vmem:[%s11152_s1 + $0x58] sm:$0xff]  ;;  %v11213_v63 = vld [vmem:[#allocation16_spill] sm:$0xff] }
 0x219   :  { %v8355_v44 = vpop.eup %8354  ;;  %8364 = vtanh.f32 %v9411_v26  ;;  %7656 = vmatprep.subr.mxu1 %v9395_v54  ;;  %v9581_v42 = vld [vmem:[%s11152_s1 + $0x68] sm:$0xff]  ;;  %v9588_v43 = vld [vmem:[%s11152_s1 + $0x70] sm:$0xff]  ;;  %v11216_v16 = vld [vmem:[#allocation19_spill] sm:$0xff] }
 0x21a   :  { %8366 = vtanh.f32 %v9416_v34  ;;  %v9424_v19 = vadd.f32 %v829_v39, %v825_v1  ;;  %v828_v4 = vmul.f32 %v8355_v44, %v784_v25  ;;  %7657 = vmatpush3.msra.mxu1 %v9395_v54  ;;  %v11214_v17 = vld [vmem:[#allocation17_spill] sm:$0xff]  ;;  %v11215_v25 = vld [vmem:[#allocation18_spill] sm:$0xff]  ;;  %v9599_v1 = vld [vmem:[%s11152_s1 + $0x78] sm:$0xff] }
 0x21b   :  { %7599 = vmatmul.mubr.msk.f32.gmra.mxu1 %vm379_vm1, %v9101_v6  ;;  %7658 = vmatprep.subr.mxu1 %v1163_v50  ;;  %v11217_v18 = vld [vmem:[#allocation20_spill] sm:$0xff] }
 0x21c   :  { %8368 = vtanh.f32 %v9424_v19  ;;  %v9430_v20 = vadd.f32 %v828_v4, %v824_v2  ;;  %7659 = vmatpush3.msra.mxu1 %v1163_v50  ;;  %7601 = vmatprep.mubr.msk.f32.mxu1 %vm379_vm1, %v9108_v7  ;;  %v9610_v35 = vld [vmem:[%s11153_s3] sm:$0xff] }
 0x21d   :  { %v8357_v5 = vpop.eup %8356  ;;  %v9614_v2 = vld [vmem:[#allocation2 + $0x20] sm:$0xff] }
 0x21e   :  { %8370 = vtanh.f32 %v9430_v20  ;;  %v815_v46 = vmul.f32 0.5, %v8357_v5  ;;  %v3311_v39 = vld [vmem:[%s11151_s0 + $0x4] sm:$0x1] }
 0x21f   :  { %v8359_v41 = vpop.eup %8358  ;;  %7602 = vmatmul.mubr.msk.f32.gmra.mxu1 %vm379_vm1, %v9121_v8  ;;  %v9619_v44 = vld [vmem:[#allocation3 + $0x18] sm:$0xff]  ;;  %3312 = vst [vmem:[#allocation2 + $0x20] sm:$0x1] %v3311_v39 }
 0x220   :  { %v814_v54 = vmul.f32 0.5, %v8359_v41  ;;  %7604 = vmatprep.mubr.msk.f32.mxu1 %vm379_vm1, %v9128_v9  ;;  %v819_v55 = vadd.f32 0.5, %v815_v46  ;;  %7716 = vmatprep.subr.mxu1 %v9619_v44  ;;  %v9626_v4 = vld [vmem:[%s11154_s2] sm:$0xff] }
 0x221   :  { %v8361_v6 = vpop.eup %8360 }
 0x222   :  { %v817_v22 = vmul.f32 0.5, %v8361_v6  ;;  %v818_v7 = vadd.f32 0.5, %v814_v54 }
 0x223   :  { %7605 = vmatmul.mubr.msk.f32.gmra.mxu1 %vm379_vm1, %v9141_v10 }
 0x224   :  { %v8363_v52 = vpop.eup %8362  ;;  %7607 = vmatprep.mubr.msk.f32.mxu1 %vm379_vm1, %v9148_v11  ;;  %v821_v49 = vadd.f32 0.5, %v817_v22 }
 0x225   :  { %v816_v3 = vmul.f32 0.5, %v8363_v52 }
 0x226   :  { %v8365_v51 = vpop.eup %8364 }
 0x227   :  { %v8367_v56 = vpop.eup %8366  ;;  %v839_v8 = vmul.f32 %v8365_v51, %v819_v55  ;;  %7608 = vmatmul.mubr.msk.f32.gmra.mxu1 %vm379_vm1, %v9161_v12  ;;  %v820_v50 = vadd.f32 0.5, %v816_v3 }
 0x228   :  { %v838_v9 = vmul.f32 %v8367_v56, %v818_v7  ;;  %7610 = vmatprep.mubr.msk.f32.mxu1 %vm379_vm1, %v9168_v13  ;;  %v9463_v13 = vld [vmem:[%s11152_s1] sm:$0xff] }
 0x229   :  { %v8369_v58 = vpop.eup %8368  ;;  %851 = vst [vmem:[%s11155_s4 + $0x8] sm:$0xff] %v839_v8 }
 0x22a   :  { %850 = vst [vmem:[%s11155_s4] sm:$0xff] %v838_v9  ;;  %v841_v10 = vmul.f32 %v8369_v58, %v821_v49 }
 0x22b   :  { %v8371_v11 = vpop.eup %8370  ;;  %7611 = vmatmul.mubr.msk.f32.gmra.mxu1 %vm379_vm1, %v9181_v14  ;;  %v9475_v14 = vld [vmem:[%s11152_s1 + $0x8] sm:$0xff] }
 0x22c   :  { %853 = vst [vmem:[%s11155_s4 + $0x18] sm:$0xff] %v841_v10  ;;  %v840_v12 = vmul.f32 %v8371_v11, %v820_v50  ;;  %7618 = vmatprep.subr.mxu0 %v841_v10  ;;  %7613 = vmatprep.mubr.msk.f32.mxu1 %vm379_vm1, %v9188_v0  ;;  %v9480_v0 = vld [vmem:[%s11152_s1 + $0x10] sm:$0xff] }
 0x22d   :  { %7619 = vmatpush3.msra.mxu0 %v841_v10 }
 0x22e   :  { %852 = vst [vmem:[%s11155_s4 + $0x10] sm:$0xff] %v840_v12  ;;  %7620 = vmatprep.subr.mxu0 %v840_v12 }
 0x22f   :  { %7614 = vmatmul.mubr.msk.f32.gmra.mxu1 %vm379_vm1, %v9199_v15  ;;  %7621 = vmatpush3.msra.mxu0 %v840_v12  ;;  %v11203_v15 = vld [vmem:[#allocation6_spill] sm:$0xff] }
 0x230   :  { %7622 = vmatprep.subr.mxu0 %v839_v8  ;;  %7660 = vmatprep.mubr.msk.f32.mxu1 %vm85_vm0, %v9463_v13  ;;  %11218 = vst [vmem:[#allocation6_spill] sm:$0xff] %v9626_v4 }
 0x231   :  { %7623 = vmatpush3.msra.mxu0 %v839_v8 }
 0x232   :  { %7624 = vmatprep.subr.mxu0 %v838_v9 }
 0x233   :  { %7661 = vmatmul.mubr.msk.f32.vlgmr.msra.gmra.mxu1 %vm85_vm0, %v9475_v14  ;;  %7625 = vmatpush3.msra.mxu0 %v838_v9 }
 0x234   :  { %7627 = vmatmul.mubr.msk.f32.vlgmr.msra.gmra.mxu0 %vm85_vm0, %v11203_v15  ;;  %7663 = vmatprep.mubr.msk.f32.mxu1 %vm85_vm0, %v9480_v0 }
 0x235   :  { %7629 = vmatprep.mubr.msk.f32.mxu0 %vm85_vm0, %v11204_v28  ;;  %7717 = vmatpush3.msra.mxu1 %v9619_v44 }
 0x237   :  { %7664 = vmatmul.mubr.msk.f32.gmra.mxu1 %vm85_vm0, %v9491_v62 }
 0x238   :  { %7630 = vmatmul.mubr.msk.f32.gmra.mxu0 %vm85_vm0, %v11205_v53  ;;  %7666 = vmatprep.mubr.msk.f32.mxu1 %vm85_vm0, %v9498_v30 }
 0x239   :  { %7632 = vmatprep.mubr.msk.f32.mxu0 %vm85_vm0, %v11206_v47 }
 0x23b   :  { %7667 = vmatmul.mubr.msk.f32.gmra.mxu1 %vm85_vm0, %v9509_v61 }
 0x23c   :  { %7633 = vmatmul.mubr.msk.f32.gmra.mxu0 %vm85_vm0, %v11207_v37  ;;  %7669 = vmatprep.mubr.msk.f32.mxu1 %vm85_vm0, %v9516_v59 }
 0x23d   :  { %7635 = vmatprep.mubr.msk.f32.mxu0 %vm85_vm0, %v11208_v24 }
 0x23f   :  { %7670 = vmatmul.mubr.msk.f32.gmra.mxu1 %vm85_vm0, %v9527_v57 }
 0x240   :  { %7636 = vmatmul.mubr.msk.f32.gmra.mxu0 %vm85_vm0, %v11209_v33  ;;  %7672 = vmatprep.mubr.msk.f32.mxu1 %vm85_vm0, %v9534_v27 }
 0x241   :  { %7638 = vmatprep.mubr.msk.f32.mxu0 %vm85_vm0, %v11210_v29 }
 0x243   :  { %7673 = vmatmul.mubr.msk.f32.gmra.mxu1 %vm85_vm0, %v9545_v21 }
 0x244   :  { %7639 = vmatmul.mubr.msk.f32.gmra.mxu0 %vm85_vm0, %v11211_v32  ;;  %7675 = vmatprep.mubr.msk.f32.mxu1 %vm85_vm0, %v9552_v60 }
 0x245   :  { %7641 = vmatprep.mubr.msk.f32.mxu0 %vm85_vm0, %v11212_v45 }
 0x247   :  { %7676 = vmatmul.mubr.msk.f32.gmra.mxu1 %vm85_vm0, %v9563_v38 }
 0x248   :  { %7642 = vmatmul.mubr.msk.f32.gmra.mxu0 %vm85_vm0, %v11213_v63  ;;  %7678 = vmatprep.mubr.msk.f32.mxu1 %vm85_vm0, %v9570_v48 }
 0x249   :  { %7644 = vmatprep.mubr.msk.f32.mxu0 %vm85_vm0, %v11214_v17 }
 0x24b   :  { %7679 = vmatmul.mubr.msk.f32.gmra.mxu1 %vm85_vm0, %v9581_v42 }
 0x24c   :  { %7645 = vmatmul.mubr.msk.f32.gmra.mxu0 %vm85_vm0, %v11215_v25  ;;  %7681 = vmatprep.mubr.msk.f32.mxu1 %vm85_vm0, %v9588_v43 }
 0x24d   :  { %7647 = vmatprep.mubr.msk.f32.mxu0 %vm85_vm0, %v11216_v16 }
 0x24f   :  { %7682 = vmatmul.mubr.msk.f32.gmra.mxu1 %vm85_vm0, %v9599_v1 }
 0x250   :  { %7648 = vmatmul.mubr.msk.f32.gmra.mxu0 %vm85_vm0, %v11217_v18  ;;  %7726 = vmatprep.mubr.msk.f32.mxu1 %vm85_vm0, %v9626_v4 }
 0x251   :  { %7692 = vmatprep.mubr.msk.f32.mxu0 %vm379_vm1, %v9610_v35 }
 0x2d3   :  { %v7594_v5 = vpop.f32.mrf.mxu1 }
 0x2d5   :  { %v1305_v41 = vpop.f32.mrf.mxu1 }
 0x2d7   :  { %v7597_v46 = vpop.f32.mrf.mxu1 }
 0x2d9   :  { %v1315_v54 = vpop.f32.mrf.mxu1 }
 0x2db   :  { %v7600_v6 = vpop.f32.mrf.mxu1 }
 0x2dd   :  { %v1325_v22 = vpop.f32.mrf.mxu1 }
 0x2df   :  { %v7603_v55 = vpop.f32.mrf.mxu1 }
 0x2e1   :  { %v1335_v52 = vpop.f32.mrf.mxu1 }
 0x2e3   :  { %v9630_v7 = vpop.f32.mrf.mxu1 }
 0x2e5   :  { %v9632_v3 = vpop.f32.mrf.mxu1 }
 0x2e7   :  { %v9634_v51 = vpop.f32.mrf.mxu1 }
 0x2e9   :  { %v9636_v49 = vpop.f32.mrf.mxu1 }
 0x2eb   :  { %v9638_v56 = vpop.f32.mrf.mxu1 }
 0x2ed   :  { %v9640_v8 = vpop.f32.mrf.mxu1 }
 0x2ef   :  { %v9642_v9 = vpop.f32.mrf.mxu1 }
 0x2f1   :  { %v9644_v50 = vpop.f32.mrf.mxu1 }
 0x2f3   :  { %v7662_v58 = vpop.f32.mrf.mxu1 }
 0x2f4   :  { %v1908_v10 = vmul.f32 0.5, %v7662_v58  ;;  %v7628_v11 = vpop.f32.mrf.mxu0 }
 0x2f5   :  { %v1504_v12 = vadd.f32 %v7628_v11, %v7594_v5  ;;  %v1824_v15 = vpop.f32.mrf.mxu1 }
 0x2f6   :  { %v1907_v28 = vmul.f32 0.5, %v1824_v15  ;;  %v1498_v53 = vpop.f32.mrf.mxu0  ;;  %8372 = vtanh.f32 %v1908_v10 }
 0x2f7   :  { %v1582_v47 = vmul.f32 0.5, %v1504_v12  ;;  %v1499_v37 = vadd.f32 %v1498_v53, %v1305_v41  ;;  %v7665_v24 = vpop.f32.mrf.mxu1 }
 0x2f8   :  { %8374 = vtanh.f32 %v1907_v28  ;;  %v1910_v33 = vmul.f32 0.5, %v7665_v24  ;;  %v7631_v29 = vpop.f32.mrf.mxu0 }
 0x2f9   :  { %8376 = vtanh.f32 %v1582_v47  ;;  %v1581_v32 = vmul.f32 0.5, %v1499_v37  ;;  %v1514_v45 = vadd.f32 %v7631_v29, %v7597_v46  ;;  %v1834_v63 = vpop.f32.mrf.mxu1 }
 0x2fa   :  { %8378 = vtanh.f32 %v1910_v33  ;;  %v1909_v17 = vmul.f32 0.5, %v1834_v63  ;;  %v1508_v25 = vpop.f32.mrf.mxu0 }
 0x2fb   :  { %8380 = vtanh.f32 %v1581_v32  ;;  %v1584_v16 = vmul.f32 0.5, %v1514_v45  ;;  %v1509_v18 = vadd.f32 %v1508_v25, %v1315_v54  ;;  %v7668_v39 = vpop.f32.mrf.mxu1 }
 0x2fc   :  { %8382 = vtanh.f32 %v1909_v17  ;;  %v1924_v5 = vmul.f32 0.5, %v7668_v39  ;;  %v7634_v58 = vpop.f32.mrf.mxu0 }
 0x2fd   :  { %8384 = vtanh.f32 %v1584_v16  ;;  %v1583_v41 = vmul.f32 0.5, %v1509_v18  ;;  %v1524_v10 = vadd.f32 %v7634_v58, %v7600_v6  ;;  %v1844_v11 = vpop.f32.mrf.mxu1 }
 0x2fe   :  { %8386 = vtanh.f32 %v1924_v5  ;;  %v1923_v12 = vmul.f32 0.5, %v1844_v11  ;;  %v1518_v15 = vpop.f32.mrf.mxu0 }
 0x2ff   :  { %8388 = vtanh.f32 %v1583_v41  ;;  %v1598_v46 = vmul.f32 0.5, %v1524_v10  ;;  %v1519_v28 = vadd.f32 %v1518_v15, %v1325_v22  ;;  %v7671_v53 = vpop.f32.mrf.mxu1 }
 0x300   :  { %8390 = vtanh.f32 %v1923_v12  ;;  %v1926_v47 = vmul.f32 0.5, %v7671_v53  ;;  %v7637_v37 = vpop.f32.mrf.mxu0 }
 0x301   :  { %8392 = vtanh.f32 %v1598_v46  ;;  %v1597_v54 = vmul.f32 0.5, %v1519_v28  ;;  %v1534_v24 = vadd.f32 %v7637_v37, %v7603_v55  ;;  %v1854_v33 = vpop.f32.mrf.mxu1 }
 0x302   :  { %8394 = vtanh.f32 %v1926_v47  ;;  %v1925_v29 = vmul.f32 0.5, %v1854_v33  ;;  %v1528_v32 = vpop.f32.mrf.mxu0 }
 0x303   :  { %8396 = vtanh.f32 %v1597_v54  ;;  %v1600_v6 = vmul.f32 0.5, %v1534_v24  ;;  %v1529_v45 = vadd.f32 %v1528_v32, %v1335_v52  ;;  %v7674_v63 = vpop.f32.mrf.mxu1  ;;  %v8373_v17 = vpop.eup %8372 }
 0x304   :  { %8398 = vtanh.f32 %v1925_v29  ;;  %v7640_v25 = vpop.f32.mrf.mxu0  ;;  %v1916_v52 = vmul.f32 0.5, %v8373_v17 }
 0x305   :  { %v8375_v16 = vpop.eup %8374  ;;  %8400 = vtanh.f32 %v1600_v6  ;;  %v1599_v22 = vmul.f32 0.5, %v1529_v45  ;;  %v1544_v18 = vadd.f32 %v7640_v25, %v9630_v7  ;;  %v1864_v39 = vpop.f32.mrf.mxu1 }
 0x306   :  { %v8377_v5 = vpop.eup %8376  ;;  %8402 = vtanh.f32 %v7674_v63  ;;  %v1538_v55 = vpop.f32.mrf.mxu0  ;;  %v1915_v12 = vmul.f32 0.5, %v8375_v16  ;;  %v9650_v63 = vadd.f32 0.5, %v1916_v52 }
 0x307   :  { %v8379_v58 = vpop.eup %8378  ;;  %8404 = vtanh.f32 %v1599_v22  ;;  %v1539_v41 = vadd.f32 %v1538_v55, %v9632_v3  ;;  %v7677_v10 = vpop.f32.mrf.mxu1  ;;  %v1590_v28 = vmul.f32 0.5, %v8377_v5 }
 0x308   :  { %v8381_v11 = vpop.eup %8380  ;;  %8406 = vtanh.f32 %v1544_v18  ;;  %v7643_v15 = vpop.f32.mrf.mxu0  ;;  %v1918_v53 = vmul.f32 0.5, %v8379_v58  ;;  %v9652_v17 = vadd.f32 0.5, %v1915_v12 }
 0x309   :  { %v8383_v46 = vpop.eup %8382  ;;  %8408 = vtanh.f32 %v1864_v39  ;;  %v1554_v7 = vadd.f32 %v7643_v15, %v9634_v51  ;;  %v1874_v47 = vpop.f32.mrf.mxu1  ;;  %v1589_v54 = vmul.f32 0.5, %v8381_v11  ;;  %v1594_v22 = vadd.f32 0.5, %v1590_v28 }
 0x30a   :  { %v8385_v37 = vpop.eup %8384  ;;  %v1917_v24 = vmul.f32 0.5, %v8383_v46  ;;  %8410 = vtanh.f32 %v1539_v41  ;;  %v1548_v33 = vpop.f32.mrf.mxu0  ;;  %v9654_v18 = vadd.f32 0.5, %v1918_v53 }
 0x30b   :  { %v8387_v29 = vpop.eup %8386  ;;  %v1592_v3 = vmul.f32 0.5, %v8385_v37  ;;  %8412 = vtanh.f32 %v7677_v10  ;;  %v1549_v32 = vadd.f32 %v1548_v33, %v9636_v49  ;;  %v7680_v6 = vpop.f32.mrf.mxu1  ;;  %v1593_v55 = vadd.f32 0.5, %v1589_v54 }
 0x30c   :  { %v8389_v45 = vpop.eup %8388  ;;  %v1932_v25 = vmul.f32 0.5, %v8387_v29  ;;  %8414 = vtanh.f32 %v1554_v7  ;;  %v7646_v51 = vpop.f32.mrf.mxu0  ;;  %v9657_v58 = vadd.f32 0.5, %v1917_v24  ;;  %v1944_v49 = vmul.f32 0.5, %v7680_v6 }
 0x30d   :  { %v8391_v16 = vpop.eup %8390  ;;  %8416 = vtanh.f32 %v1874_v47  ;;  %v1564_v39 = vadd.f32 %v7646_v51, %v9638_v56  ;;  %v1884_v10 = vpop.f32.mrf.mxu1  ;;  %v1596_v52 = vadd.f32 0.5, %v1592_v3  ;;  %v1591_v12 = vmul.f32 0.5, %v8389_v45 }
 0x30e   :  { %v8393_v5 = vpop.eup %8392  ;;  %8418 = vtanh.f32 %v1549_v32  ;;  %v1558_v41 = vpop.f32.mrf.mxu0  ;;  %v1936_v28 = vadd.f32 0.5, %v1932_v25  ;;  %v1931_v53 = vmul.f32 0.5, %v8391_v16  ;;  %v1943_v29 = vmul.f32 0.5, %v1884_v10 }
 0x30f   :  { %v8395_v11 = vpop.eup %8394  ;;  %v1606_v15 = vmul.f32 0.5, %v8393_v5  ;;  %v1618_v46 = vmul.f32 0.5, %v1564_v39  ;;  %v1559_v47 = vadd.f32 %v1558_v41, %v9640_v8  ;;  %v7683_v45 = vpop.f32.mrf.mxu1  ;;  %v1595_v5 = vadd.f32 0.5, %v1591_v12 }
 0x310   :  { %v8397_v7 = vpop.eup %8396  ;;  %v1934_v37 = vmul.f32 0.5, %v8395_v11  ;;  %v7649_v56 = vpop.f32.mrf.mxu0  ;;  %v1960_v8 = vmul.f32 %v1936_v28, %v9361_v31 }
 0x311   :  { %v8399_v33 = vpop.eup %8398  ;;  %v1610_v54 = vadd.f32 0.5, %v1606_v15  ;;  %v1605_v24 = vmul.f32 0.5, %v8397_v7  ;;  %v1574_v32 = vadd.f32 %v7649_v56, %v9642_v9  ;;  %8420 = vtanh.f32 %v1618_v46 }
 0x312   :  { %v8401_v6 = vpop.eup %8400  ;;  %v1938_v51 = vadd.f32 0.5, %v1934_v37  ;;  %v1933_v4 = vmul.f32 0.5, %v8399_v33  ;;  %v1617_v3 = vmul.f32 0.5, %v1559_v47  ;;  %8422 = vtanh.f32 %v1944_v49  ;;  %v1568_v46 = vpop.f32.mrf.mxu0 }
 0x313   :  { %v8403_v39 = vpop.eup %8402  ;;  %v1609_v25 = vadd.f32 0.5, %v1605_v24  ;;  %v1608_v16 = vmul.f32 0.5, %v8401_v6  ;;  %v1634_v41 = vmul.f32 %v1610_v54, %v9411_v26  ;;  %v1935_v15 = vadd.f32 0.5, %v1931_v53  ;;  %v1894_v49 = vpop.f32.mrf.mxu1 }
 0x314   :  { %v8405_v11 = vpop.eup %8404  ;;  %8424 = vtanh.f32 %v1617_v3  ;;  %v1937_v7 = vadd.f32 0.5, %v1933_v4  ;;  %v1620_v56 = vmul.f32 0.5, %v1574_v32  ;;  %v1962_v33 = vmul.f32 %v1938_v51, %v9367_v36 }
 0x315   :  { %v8407_v10 = vpop.eup %8406  ;;  %v1612_v9 = vadd.f32 0.5, %v1608_v16  ;;  %v1607_v37 = vmul.f32 0.5, %v8405_v11  ;;  %8426 = vtanh.f32 %v1943_v29  ;;  %v1946_v24 = vmul.f32 0.5, %v7683_v45 }
 0x316   :  { %v8409_v47 = vpop.eup %8408  ;;  %v1638_v12 = vmul.f32 %v8407_v10, %v1594_v22  ;;  %v1633_v31 = vmul.f32 %v1609_v25, %v9416_v34  ;;  %v1964_v26 = vmul.f32 %v8403_v39, %v9650_v63  ;;  %8428 = vtanh.f32 %v1620_v56 }
 0x317   :  { %v8411_v6 = vpop.eup %8410  ;;  %v1611_v28 = vadd.f32 0.5, %v1607_v37  ;;  %8430 = vtanh.f32 %v1946_v24  ;;  %v1569_v32 = vadd.f32 %v1568_v46, %v9644_v50  ;;  %v1636_v36 = vmul.f32 %v1612_v9, %v9424_v19 }
 0x318   :  { %v8413_v53 = vpop.eup %8412  ;;  %v9666_v54 = vadd.f32 %v1638_v12, %v1634_v41  ;;  %v1637_v4 = vmul.f32 %v8411_v6, %v1593_v55  ;;  %v1961_v22 = vmul.f32 %v1937_v7, %v9373_v23  ;;  %v1945_v51 = vmul.f32 0.5, %v1894_v49 }
 0x319   :  { %v8415_v3 = vpop.eup %8414  ;;  %v1966_v29 = vmul.f32 %v8413_v53, %v9654_v18  ;;  %v1619_v39 = vmul.f32 0.5, %v1569_v32  ;;  %v1963_v55 = vmul.f32 %v8409_v47, %v9652_v17  ;;  %v1635_v23 = vmul.f32 %v1611_v28, %v9430_v20 }
 0x31a   :  { %v8417_v34 = vpop.eup %8416  ;;  %8432 = vtanh.f32 %v9666_v54  ;;  %v9673_v63 = vadd.f32 %v1637_v4, %v1633_v31  ;;  %v1640_v45 = vmul.f32 %v8415_v3, %v1596_v52  ;;  %v1959_v11 = vmul.f32 %v1935_v15, %v9371_v40 }
 0x31b   :  { %v8419_v25 = vpop.eup %8418  ;;  %v9676_v16 = vadd.f32 %v1966_v29, %v1962_v33  ;;  %v1965_v50 = vmul.f32 %v8417_v34, %v9657_v58  ;;  %8434 = vtanh.f32 %v1945_v51  ;;  %v9686_v52 = vadd.f32 %v1964_v26, %v1960_v8 }
 0x31c   :  { %8436 = vtanh.f32 %v9673_v63  ;;  %v9681_v19 = vadd.f32 %v1640_v45, %v1636_v36  ;;  %v1639_v18 = vmul.f32 %v8419_v25, %v1595_v5  ;;  %v9691_v10 = vadd.f32 %v1963_v55, %v1959_v11 }
 0x31d   :  { %v9684_v41 = vadd.f32 %v1965_v50, %v1961_v22  ;;  %8438 = vtanh.f32 %v1619_v39 }
 0x31e   :  { %8440 = vtanh.f32 %v9681_v19  ;;  %v9689_v17 = vadd.f32 %v1639_v18, %v1635_v23  ;;  %v8421_v58 = vpop.eup %8420 }
 0x31f   :  { %8442 = vtanh.f32 %v9676_v16  ;;  %v8423_v20 = vpop.eup %8422  ;;  %v1626_v40 = vmul.f32 0.5, %v8421_v58 }
 0x320   :  { %8444 = vtanh.f32 %v9689_v17  ;;  %v1952_v24 = vmul.f32 0.5, %v8423_v20 }
 0x321   :  { %v8425_v5 = vpop.eup %8424  ;;  %8446 = vtanh.f32 %v9684_v41  ;;  %v1630_v37 = vadd.f32 0.5, %v1626_v40  ;;  %v9713_v40 = vld [vmem:[%s11153_s3 + $0x8] sm:$0xff] }
 0x322   :  { %8448 = vtanh.f32 %v9686_v52  ;;  %v8427_v8 = vpop.eup %8426  ;;  %v1625_v9 = vmul.f32 0.5, %v8425_v5  ;;  %v1956_v22 = vadd.f32 0.5, %v1952_v24  ;;  %v9795_v24 = vld [vmem:[%s11153_s3 + $0x38] sm:$0xff] }
 0x323   :  { %8450 = vtanh.f32 %v9691_v10  ;;  %v8429_v15 = vpop.eup %8428  ;;  %v1951_v34 = vmul.f32 0.5, %v8427_v8  ;;  %v9718_v8 = vld [vmem:[%s11153_s3 + $0x10] sm:$0xff] }
 0x324   :  { %v8431_v7 = vpop.eup %8430  ;;  %v1628_v56 = vmul.f32 0.5, %v8429_v15  ;;  %v1629_v49 = vadd.f32 0.5, %v1625_v9  ;;  %v9723_v15 = vld [vmem:[%s11154_s2 + $0x8] sm:$0xff]  ;;  %v9731_v9 = vld [vmem:[%s11154_s2 + $0x10] sm:$0xff] }
 0x325   :  { %v1954_v46 = vmul.f32 0.5, %v8431_v7  ;;  %v1955_v20 = vadd.f32 0.5, %v1951_v34  ;;  %v9739_v7 = vld [vmem:[%s11153_s3 + $0x18] sm:$0xff]  ;;  %v9894_v34 = vld [vmem:[%s11154_s2 + $0x68] sm:$0xff] }
 0x326   :  { %v1632_v4 = vadd.f32 0.5, %v1628_v56  ;;  %v9760_v56 = vld [vmem:[%s11154_s2 + $0x20] sm:$0xff] }
 0x327   :  { %v8433_v47 = vpop.eup %8432  ;;  %v1958_v31 = vadd.f32 0.5, %v1954_v46  ;;  %v9767_v46 = vld [vmem:[%s11153_s3 + $0x28] sm:$0xff] }
 0x328   :  { %v8435_v33 = vpop.eup %8434  ;;  %v1650_v12 = vmul.f32 %v8433_v47, %v1630_v37  ;;  %v9744_v37 = vld [vmem:[%s11153_s3 + $0x20] sm:$0xff]  ;;  %v9772_v47 = vld [vmem:[%s11153_s3 + $0x30] sm:$0xff] }
 0x329   :  { %v8437_v6 = vpop.eup %8436  ;;  %v1953_v28 = vmul.f32 0.5, %v8435_v33  ;;  %v9781_v33 = vld [vmem:[%s11154_s2 + $0x28] sm:$0xff] }
 0x32a   :  { %v8439_v26 = vpop.eup %8438  ;;  %6639 = vst [vmem:[%s11155_s4 + $0x28] sm:$0xff] %v1650_v12  ;;  %v1649_v53 = vmul.f32 %v8437_v6, %v1629_v49  ;;  %v9800_v49 = vld [vmem:[%s11153_s3 + $0x40] sm:$0xff]  ;;  %v9810_v6 = vld [vmem:[%s11154_s2 + $0x38] sm:$0xff] }
 0x32b   :  { %v8441_v32 = vpop.eup %8440  ;;  %v1627_v3 = vmul.f32 0.5, %v8439_v26  ;;  %v1957_v25 = vadd.f32 0.5, %v1953_v28  ;;  %v9824_v28 = vld [vmem:[%s11153_s3 + $0x48] sm:$0xff]  ;;  %v9829_v26 = vld [vmem:[%s11153_s3 + $0x50] sm:$0xff] }
 0x32c   :  { %v8443_v36 = vpop.eup %8442  ;;  %6638 = vst [vmem:[%s11155_s4 + $0x20] sm:$0xff] %v1649_v53  ;;  %v1652_v29 = vmul.f32 %v8441_v32, %v1632_v4  ;;  %v9845_v4 = vld [vmem:[%s11154_s2 + $0x50] sm:$0xff]  ;;  %v9852_v32 = vld [vmem:[%s11153_s3 + $0x58] sm:$0xff] }
 0x32d   :  { %v8445_v51 = vpop.eup %8444  ;;  %v1631_v45 = vadd.f32 0.5, %v1627_v3  ;;  %v1978_v39 = vmul.f32 %v8443_v36, %v1958_v31  ;;  %v9817_v31 = vld [vmem:[%s11154_s2 + $0x40] sm:$0xff]  ;;  %11219 = vst [vmem:[#allocation7_spill] sm:$0xff] %v9852_v32  ;;  %v9866_v36 = vld [vmem:[%s11154_s2 + $0x58] sm:$0xff] }
 0x32e   :  { %v8447_v55 = vpop.eup %8446  ;;  %6641 = vst [vmem:[%s11155_s4 + $0x38] sm:$0xff] %v1652_v29  ;;  %7718 = vmatprep.subr.mxu1 %v1652_v29  ;;  %v9857_v3 = vld [vmem:[%s11153_s3 + $0x60] sm:$0xff] }
 0x32f   :  { %v8449_v50 = vpop.eup %8448  ;;  %v1651_v23 = vmul.f32 %v8445_v51, %v1631_v45  ;;  %7684 = vmatprep.subr.mxu0 %v1978_v39  ;;  %v1977_v18 = vmul.f32 %v8447_v55, %v1957_v25  ;;  %7719 = vmatpush3.msra.mxu1 %v1652_v29  ;;  %11220 = vst [vmem:[#allocation8_spill] sm:$0xff] %v9857_v3  ;;  %v9880_v29 = vld [vmem:[%s11153_s3 + $0x68] sm:$0xff]  ;;  %v9885_v51 = vld [vmem:[%s11153_s3 + $0x70] sm:$0xff]  ;;  %v9917_v25 = vld [vmem:[%s11154_s2 + $0x78] sm:$0xff] }
 0x330   :  { %v8451_v11 = vpop.eup %8450  ;;  %7685 = vmatpush3.msra.mxu0 %v1978_v39  ;;  %v1976_v58 = vmul.f32 %v8449_v50, %v1956_v22  ;;  %v9873_v22 = vld [vmem:[%s11154_s2 + $0x60] sm:$0xff]  ;;  %11221 = vst [vmem:[#allocation9_spill] sm:$0xff] %v9880_v29  ;;  %11222 = vst [vmem:[#allocation10_spill] sm:$0xff] %v9885_v51  ;;  %v9901_v45 = vld [vmem:[%s11154_s2 + $0x70] sm:$0xff] }
 0x331   :  { %6640 = vst [vmem:[%s11155_s4 + $0x30] sm:$0xff] %v1651_v23  ;;  %7686 = vmatprep.subr.mxu0 %v1977_v18  ;;  %7720 = vmatprep.subr.mxu1 %v1651_v23  ;;  %v1975_v5 = vmul.f32 %v8451_v11, %v1955_v20 }
 0x332   :  { %7687 = vmatpush3.msra.mxu0 %v1977_v18  ;;  %7721 = vmatpush3.msra.mxu1 %v1651_v23 }
 0x333   :  { %7688 = vmatprep.subr.mxu0 %v1976_v58  ;;  %7722 = vmatprep.subr.mxu1 %v1650_v12 }
 0x334   :  { %7689 = vmatpush3.msra.mxu0 %v1976_v58  ;;  %7723 = vmatpush3.msra.mxu1 %v1650_v12  ;;  %v9788_v12 = vld [vmem:[%s11154_s2 + $0x30] sm:$0xff] }
 0x335   :  { %7690 = vmatprep.subr.mxu0 %v1975_v5  ;;  %7724 = vmatprep.subr.mxu1 %v1649_v53 }
 0x336   :  { %7691 = vmatpush3.msra.mxu0 %v1975_v5  ;;  %7725 = vmatpush3.msra.mxu1 %v1649_v53  ;;  %v9838_v53 = vld [vmem:[%s11154_s2 + $0x48] sm:$0xff] }
 0x337   :  { %7693 = vmatmul.mubr.msk.f32.vlgmr.msra.gmra.mxu0 %vm379_vm1, %v9713_v40  ;;  %7750 = vmatprep.subr.mxu0 %v9614_v2 }
 0x338   :  { %7751 = vmatpush3.msra.mxu0 %v9614_v2  ;;  %7695 = vmatprep.mubr.msk.f32.mxu0 %vm379_vm1, %v9718_v8  ;;  %v9753_v2 = vld [vmem:[%s11154_s2 + $0x18] sm:$0xff] }
 0x339   :  { %7752 = vmatprep.subr.mxu0 %v1978_v39  ;;  %7727 = vmatmul.mubr.msk.f32.vlgmr.msra.gmra.mxu1 %vm85_vm0, %v9723_v15 }
 0x33a   :  { %7753 = vmatpush3.msra.mxu0 %v1978_v39  ;;  %7729 = vmatprep.mubr.msk.f32.mxu1 %vm85_vm0, %v9731_v9  ;;  %v9908_v39 = vld [vmem:[%s11153_s3 + $0x78] sm:$0xff] }
 0x33b   :  { %7696 = vmatmul.mubr.msk.f32.gmra.mxu0 %vm379_vm1, %v9739_v7  ;;  %7754 = vmatprep.subr.mxu0 %v1977_v18  ;;  %11223 = vst [vmem:[#allocation11_spill] sm:$0xff] %v9908_v39 }
 0x33c   :  { %7755 = vmatpush3.msra.mxu0 %v1977_v18  ;;  %7698 = vmatprep.mubr.msk.f32.mxu0 %vm379_vm1, %v9744_v37 }
 0x33d   :  { %7756 = vmatprep.subr.mxu0 %v1976_v58  ;;  %7730 = vmatmul.mubr.msk.f32.gmra.mxu1 %vm85_vm0, %v9753_v2 }
 0x33e   :  { %7757 = vmatpush3.msra.mxu0 %v1976_v58  ;;  %7732 = vmatprep.mubr.msk.f32.mxu1 %vm85_vm0, %v9760_v56 }
 0x33f   :  { %7699 = vmatmul.mubr.msk.f32.gmra.mxu0 %vm379_vm1, %v9767_v46  ;;  %7758 = vmatprep.subr.mxu0 %v1975_v5 }
 0x340   :  { %7759 = vmatpush3.msra.mxu0 %v1975_v5  ;;  %7701 = vmatprep.mubr.msk.f32.mxu0 %vm379_vm1, %v9772_v47 }
 0x341   :  { %7733 = vmatmul.mubr.msk.f32.gmra.mxu1 %vm85_vm0, %v9781_v33  ;;  %7816 = vmatprep.subr.mxu0 %v9619_v44 }
 0x342   :  { %7735 = vmatprep.mubr.msk.f32.mxu1 %vm85_vm0, %v9788_v12 }
 0x343   :  { %7702 = vmatmul.mubr.msk.f32.gmra.mxu0 %vm379_vm1, %v9795_v24 }
 0x344   :  { %7704 = vmatprep.mubr.msk.f32.mxu0 %vm379_vm1, %v9800_v49 }
 0x345   :  { %7736 = vmatmul.mubr.msk.f32.gmra.mxu1 %vm85_vm0, %v9810_v6 }
 0x346   :  { %7738 = vmatprep.mubr.msk.f32.mxu1 %vm85_vm0, %v9817_v31 }
 0x347   :  { %7705 = vmatmul.mubr.msk.f32.gmra.mxu0 %vm379_vm1, %v9824_v28 }
 0x348   :  { %7707 = vmatprep.mubr.msk.f32.mxu0 %vm379_vm1, %v9829_v26 }
 0x349   :  { %7739 = vmatmul.mubr.msk.f32.gmra.mxu1 %vm85_vm0, %v9838_v53 }
 0x34a   :  { %7741 = vmatprep.mubr.msk.f32.mxu1 %vm85_vm0, %v9845_v4 }
 0x34b   :  { %7708 = vmatmul.mubr.msk.f32.gmra.mxu0 %vm379_vm1, %v9852_v32 }
 0x34c   :  { %7710 = vmatprep.mubr.msk.f32.mxu0 %vm379_vm1, %v9857_v3 }
 0x34d   :  { %7742 = vmatmul.mubr.msk.f32.gmra.mxu1 %vm85_vm0, %v9866_v36 }
 0x34e   :  { %7744 = vmatprep.mubr.msk.f32.mxu1 %vm85_vm0, %v9873_v22 }
 0x34f   :  { %7711 = vmatmul.mubr.msk.f32.gmra.mxu0 %vm379_vm1, %v9880_v29 }
 0x350   :  { %7713 = vmatprep.mubr.msk.f32.mxu0 %vm379_vm1, %v9885_v51 }
 0x351   :  { %7745 = vmatmul.mubr.msk.f32.gmra.mxu1 %vm85_vm0, %v9894_v34 }
 0x352   :  { %7747 = vmatprep.mubr.msk.f32.mxu1 %vm85_vm0, %v9901_v45 }
 0x353   :  { %7714 = vmatmul.mubr.msk.f32.gmra.mxu0 %vm379_vm1, %v9908_v39 }
 0x354   :  { %7760 = vmatprep.mubr.msk.f32.mxu0 %vm85_vm0, %v9463_v13  ;;  %v11224_v13 = vld [vmem:[#allocation6_spill] sm:$0xff] }
 0x355   :  { %7748 = vmatmul.mubr.msk.f32.gmra.mxu1 %vm85_vm0, %v9917_v25 }
 0x356   :  { %7792 = vmatprep.mubr.msk.f32.mxu1 %vm379_vm1, %v9610_v35 }
 0x357   :  { %7761 = vmatmul.mubr.msk.f32.vlgmr.msra.gmra.mxu0 %vm85_vm0, %v9475_v14  ;;  %v9960_v14 = vld [vmem:[#allocation2 + $0x20] sm:$0xff] }
 0x358   :  { %7763 = vmatprep.mubr.msk.f32.mxu0 %vm85_vm0, %v9480_v0  ;;  %7817 = vmatpush3.msra.mxu0 %v9619_v44  ;;  %v4123_v0 = vld [vmem:[%s11151_s0 + $0x5] sm:$0x1] }
 0x359   :  { %4124 = vst [vmem:[#allocation2 + $0x20] sm:$0x1] %v4123_v0 }
 0x35b   :  { %7764 = vmatmul.mubr.msk.f32.gmra.mxu0 %vm85_vm0, %v9491_v62 }
 0x35c   :  { %7766 = vmatprep.mubr.msk.f32.mxu0 %vm85_vm0, %v9498_v30 }
 0x35f   :  { %7767 = vmatmul.mubr.msk.f32.gmra.mxu0 %vm85_vm0, %v9509_v61 }
 0x360   :  { %7769 = vmatprep.mubr.msk.f32.mxu0 %vm85_vm0, %v9516_v59 }
 0x363   :  { %7770 = vmatmul.mubr.msk.f32.gmra.mxu0 %vm85_vm0, %v9527_v57 }
 0x364   :  { %7772 = vmatprep.mubr.msk.f32.mxu0 %vm85_vm0, %v9534_v27 }
 0x367   :  { %7773 = vmatmul.mubr.msk.f32.gmra.mxu0 %vm85_vm0, %v9545_v21 }
 0x368   :  { %7775 = vmatprep.mubr.msk.f32.mxu0 %vm85_vm0, %v9552_v60 }
 0x36b   :  { %7776 = vmatmul.mubr.msk.f32.gmra.mxu0 %vm85_vm0, %v9563_v38 }
 0x36c   :  { %7778 = vmatprep.mubr.msk.f32.mxu0 %vm85_vm0, %v9570_v48 }
 0x36f   :  { %7779 = vmatmul.mubr.msk.f32.gmra.mxu0 %vm85_vm0, %v9581_v42 }
 0x370   :  { %7781 = vmatprep.mubr.msk.f32.mxu0 %vm85_vm0, %v9588_v43 }
 0x373   :  { %7782 = vmatmul.mubr.msk.f32.gmra.mxu0 %vm85_vm0, %v9599_v1 }
 0x374   :  { %7826 = vmatprep.mubr.msk.f32.mxu0 %vm85_vm0, %v11224_v13 }
 0x3f7   :  { %v7694_v62 = vpop.f32.mrf.mxu0 }
 0x3f9   :  { %v2117_v30 = vpop.f32.mrf.mxu0  ;;  %v7728_v61 = vpop.f32.mrf.mxu1 }
 0x3fa   :  { %v2316_v57 = vadd.f32 %v7728_v61, %v7694_v62 }
 0x3fb   :  { %v7697_v59 = vpop.f32.mrf.mxu0  ;;  %v2310_v27 = vpop.f32.mrf.mxu1 }
 0x3fc   :  { %v2311_v21 = vadd.f32 %v2310_v27, %v2117_v30  ;;  %v2394_v43 = vmul.f32 0.5, %v2316_v57 }
 0x3fd   :  { %v2127_v60 = vpop.f32.mrf.mxu0  ;;  %v7731_v38 = vpop.f32.mrf.mxu1 }
 0x3fe   :  { %v2326_v48 = vadd.f32 %v7731_v38, %v7697_v59  ;;  %v2393_v35 = vmul.f32 0.5, %v2311_v21  ;;  %8452 = vtanh.f32 %v2394_v43 }
 0x3ff   :  { %v7700_v42 = vpop.f32.mrf.mxu0  ;;  %v2320_v1 = vpop.f32.mrf.mxu1 }
 0x400   :  { %v2396_v55 = vmul.f32 0.5, %v2326_v48  ;;  %v2321_v50 = vadd.f32 %v2320_v1, %v2127_v60  ;;  %8454 = vtanh.f32 %v2393_v35 }
 0x401   :  { %v2137_v44 = vpop.f32.mrf.mxu0  ;;  %v7734_v23 = vpop.f32.mrf.mxu1 }
 0x402   :  { %v2336_v18 = vadd.f32 %v7734_v23, %v7700_v42  ;;  %8456 = vtanh.f32 %v2396_v55  ;;  %v2395_v0 = vmul.f32 0.5, %v2321_v50 }
 0x403   :  { %v7703_v11 = vpop.f32.mrf.mxu0  ;;  %v2330_v58 = vpop.f32.mrf.mxu1 }
 0x404   :  { %v2410_v20 = vmul.f32 0.5, %v2336_v18  ;;  %v2331_v5 = vadd.f32 %v2330_v58, %v2137_v44 }
 0x405   :  { %v2147_v13 = vpop.f32.mrf.mxu0  ;;  %v7737_v62 = vpop.f32.mrf.mxu1 }
 0x406   :  { %8458 = vtanh.f32 %v2410_v20  ;;  %v2409_v30 = vmul.f32 0.5, %v2331_v5  ;;  %v2346_v61 = vadd.f32 %v7737_v62, %v7703_v11 }
 0x407   :  { %v7706_v59 = vpop.f32.mrf.mxu0  ;;  %v2340_v57 = vpop.f32.mrf.mxu1 }
 0x408   :  { %8460 = vtanh.f32 %v2409_v30  ;;  %v2412_v27 = vmul.f32 0.5, %v2346_v61  ;;  %v2341_v21 = vadd.f32 %v2340_v57, %v2147_v13 }
 0x409   :  { %v2157_v60 = vpop.f32.mrf.mxu0  ;;  %8462 = vtanh.f32 %v2395_v0  ;;  %v7740_v38 = vpop.f32.mrf.mxu1 }
 0x40a   :  { %8464 = vtanh.f32 %v2412_v27  ;;  %v2411_v48 = vmul.f32 0.5, %v2341_v21  ;;  %v2356_v42 = vadd.f32 %v7740_v38, %v7706_v59 }
 0x40b   :  { %v7709_v43 = vpop.f32.mrf.mxu0  ;;  %v2350_v1 = vpop.f32.mrf.mxu1 }
 0x40c   :  { %8466 = vtanh.f32 %v2411_v48  ;;  %v2351_v35 = vadd.f32 %v2350_v1, %v2157_v60  ;;  %v8453_v11 = vpop.eup %8452 }
 0x40d   :  { %v2167_v44 = vpop.f32.mrf.mxu0  ;;  %8468 = vtanh.f32 %v2356_v42  ;;  %v7743_v55 = vpop.f32.mrf.mxu1  ;;  %v2402_v57 = vmul.f32 0.5, %v8453_v11 }
 0x40e   :  { %8470 = vtanh.f32 %v2351_v35  ;;  %v2366_v50 = vadd.f32 %v7743_v55, %v7709_v43  ;;  %v8455_v20 = vpop.eup %8454 }
 0x40f   :  { %v7712_v23 = vpop.f32.mrf.mxu0  ;;  %v2360_v18 = vpop.f32.mrf.mxu1  ;;  %v2401_v48 = vmul.f32 0.5, %v8455_v20 }
 0x410   :  { %8472 = vtanh.f32 %v2366_v50  ;;  %v2361_v58 = vadd.f32 %v2360_v18, %v2167_v44  ;;  %v8457_v0 = vpop.eup %8456 }
 0x411   :  { %v2177_v5 = vpop.f32.mrf.mxu0  ;;  %v7746_v13 = vpop.f32.mrf.mxu1  ;;  %v2404_v35 = vmul.f32 0.5, %v8457_v0 }
 0x412   :  { %8474 = vtanh.f32 %v2361_v58  ;;  %v2376_v62 = vadd.f32 %v7746_v13, %v7712_v23  ;;  %v2406_v58 = vadd.f32 0.5, %v2402_v57 }
 0x413   :  { %v8459_v30 = vpop.eup %8458  ;;  %v7715_v61 = vpop.f32.mrf.mxu0  ;;  %v2408_v3 = vadd.f32 0.5, %v2404_v35 }
 0x414   :  { %v2370_v59 = vpop.f32.mrf.mxu1  ;;  %v2418_v27 = vmul.f32 0.5, %v8459_v30  ;;  %v2430_v21 = vmul.f32 0.5, %v2376_v62  ;;  %v2405_v62 = vadd.f32 0.5, %v2401_v48 }
 0x415   :  { %v2371_v60 = vadd.f32 %v2370_v59, %v2177_v5  ;;  %v8461_v38 = vpop.eup %8460  ;;  %v2187_v42 = vpop.f32.mrf.mxu0 }
 0x416   :  { %v7749_v43 = vpop.f32.mrf.mxu1  ;;  %v8463_v1 = vpop.eup %8462  ;;  %v2422_v44 = vadd.f32 0.5, %v2418_v27  ;;  %v2417_v55 = vmul.f32 0.5, %v8461_v38  ;;  %8476 = vtanh.f32 %v2430_v21 }
 0x417   :  { %v2429_v50 = vmul.f32 0.5, %v2371_v60  ;;  %v8465_v18 = vpop.eup %8464  ;;  %v7762_v39 = vpop.f32.mrf.mxu0  ;;  %v2386_v23 = vadd.f32 %v7749_v43, %v7715_v61  ;;  %v2403_v5 = vmul.f32 0.5, %v8463_v1 }
 0x418   :  { %v2421_v13 = vadd.f32 0.5, %v2417_v55  ;;  %v2420_v51 = vmul.f32 0.5, %v8465_v18  ;;  %v2720_v11 = vmul.f32 0.5, %v7762_v39  ;;  %v2446_v0 = vmul.f32 %v2422_v44, %v9666_v54  ;;  %v2380_v38 = vpop.f32.mrf.mxu1 }
 0x419   :  { %v8467_v30 = vpop.eup %8466  ;;  %v2636_v59 = vpop.f32.mrf.mxu0  ;;  %8478 = vtanh.f32 %v2429_v50  ;;  %v2432_v20 = vmul.f32 0.5, %v2386_v23  ;;  %v2407_v50 = vadd.f32 0.5, %v2403_v5 }
 0x41a   :  { %v8469_v29 = vpop.eup %8468  ;;  %v2424_v27 = vadd.f32 0.5, %v2420_v51  ;;  %v2419_v60 = vmul.f32 0.5, %v8467_v30  ;;  %v2445_v61 = vmul.f32 %v2421_v13, %v9673_v63  ;;  %v2719_v21 = vmul.f32 0.5, %v2636_v59 }
 0x41b   :  { %v8471_v32 = vpop.eup %8470  ;;  %v2450_v57 = vmul.f32 %v8469_v29, %v2406_v58  ;;  %v7765_v43 = vpop.f32.mrf.mxu0  ;;  %8480 = vtanh.f32 %v2432_v20  ;;  %v2381_v51 = vadd.f32 %v2380_v38, %v2187_v42 }
 0x41c   :  { %v2423_v39 = vadd.f32 0.5, %v2419_v60  ;;  %v2449_v48 = vmul.f32 %v8471_v32, %v2405_v62  ;;  %8482 = vtanh.f32 %v2720_v11  ;;  %v2722_v1 = vmul.f32 0.5, %v7765_v43 }
 0x41d   :  { %v8473_v55 = vpop.eup %8472  ;;  %v9967_v18 = vadd.f32 %v2450_v57, %v2446_v0  ;;  %8484 = vtanh.f32 %v2719_v21  ;;  %v2646_v54 = vpop.f32.mrf.mxu0  ;;  %v2448_v35 = vmul.f32 %v2424_v27, %v9681_v19  ;;  %v2431_v42 = vmul.f32 0.5, %v2381_v51 }
 0x41e   :  { %v9970_v44 = vadd.f32 %v2449_v48, %v2445_v61  ;;  %v2452_v63 = vmul.f32 %v8473_v55, %v2408_v3  ;;  %8486 = vtanh.f32 %v2722_v1  ;;  %v2447_v23 = vmul.f32 %v2423_v39, %v9689_v17 }
 0x41f   :  { %v8475_v29 = vpop.eup %8474  ;;  %8488 = vtanh.f32 %v9967_v18  ;;  %v2721_v32 = vmul.f32 0.5, %v2646_v54  ;;  %v7768_v58 = vpop.f32.mrf.mxu0 }
 0x420   :  { %8490 = vtanh.f32 %v9970_v44  ;;  %v9975_v13 = vadd.f32 %v2452_v63, %v2448_v35  ;;  %v2451_v11 = vmul.f32 %v8475_v29, %v2407_v50  ;;  %v2736_v30 = vmul.f32 0.5, %v7768_v58 }
 0x421   :  { %8492 = vtanh.f32 %v2721_v32  ;;  %v2656_v19 = vpop.f32.mrf.mxu0 }
 0x422   :  { %11225 = vst [vmem:[#allocation12_spill] sm:$0xff] %v9975_v13  ;;  %8494 = vtanh.f32 %v9975_v13  ;;  %v9978_v3 = vadd.f32 %v2451_v11, %v2447_v23  ;;  %v2735_v62 = vmul.f32 0.5, %v2656_v19 }
 0x423   :  { %8496 = vtanh.f32 %v2736_v30  ;;  %v7771_v17 = vpop.f32.mrf.mxu0  ;;  %v8477_v5 = vpop.eup %8476 }
 0x424   :  { %11226 = vst [vmem:[#allocation13_spill] sm:$0xff] %v9978_v3  ;;  %8498 = vtanh.f32 %v9978_v3  ;;  %v2738_v59 = vmul.f32 0.5, %v7771_v17  ;;  %v2438_v60 = vmul.f32 0.5, %v8477_v5 }
 0x425   :  { %8500 = vtanh.f32 %v2431_v42  ;;  %v2666_v20 = vpop.f32.mrf.mxu0 }
 0x426   :  { %v8479_v0 = vpop.eup %8478  ;;  %8502 = vtanh.f32 %v2735_v62  ;;  %v2737_v27 = vmul.f32 0.5, %v2666_v20  ;;  %v2442_v55 = vadd.f32 0.5, %v2438_v60 }
 0x427   :  { %8504 = vtanh.f32 %v2738_v59  ;;  %v7774_v38 = vpop.f32.mrf.mxu0  ;;  %v2437_v57 = vmul.f32 0.5, %v8479_v0 }
 0x428   :  { %v8481_v61 = vpop.eup %8480  ;;  %8506 = vtanh.f32 %v2737_v27 }
 0x429   :  { %v8483_v21 = vpop.eup %8482  ;;  %8508 = vtanh.f32 %v7774_v38  ;;  %v2676_v43 = vpop.f32.mrf.mxu0  ;;  %v2440_v48 = vmul.f32 0.5, %v8481_v61  ;;  %v2441_v51 = vadd.f32 0.5, %v2437_v57 }
 0x42a   :  { %v8485_v39 = vpop.eup %8484  ;;  %8510 = vtanh.f32 %v2676_v43  ;;  %v2728_v30 = vmul.f32 0.5, %v8483_v21 }
 0x42b   :  { %v8487_v1 = vpop.eup %8486  ;;  %v7777_v50 = vpop.f32.mrf.mxu0  ;;  %v2444_v58 = vadd.f32 0.5, %v2440_v48  ;;  %v2727_v62 = vmul.f32 0.5, %v8485_v39 }
 0x42c   :  { %v8489_v54 = vpop.eup %8488  ;;  %8512 = vtanh.f32 %v7777_v50  ;;  %v2732_v38 = vadd.f32 0.5, %v2728_v30  ;;  %v2730_v39 = vmul.f32 0.5, %v8487_v1 }
 0x42d   :  { %v8491_v35 = vpop.eup %8490  ;;  %v9981_v63 = vmul.f32 %v8489_v54, %v2442_v55  ;;  %v2686_v29 = vpop.f32.mrf.mxu0  ;;  %v2731_v43 = vadd.f32 0.5, %v2727_v62 }
 0x42e   :  { %v8493_v23 = vpop.eup %8492  ;;  %v9983_v32 = vmul.f32 %v8491_v35, %v2441_v51  ;;  %8514 = vtanh.f32 %v2686_v29  ;;  %v2734_v62 = vadd.f32 0.5, %v2730_v39 }
 0x42f   :  { %v8495_v11 = vpop.eup %8494  ;;  %6691 = vst [vmem:[%s11155_s4 + $0x48] sm:$0xff] %v9981_v63  ;;  %v7780_v42 = vpop.f32.mrf.mxu0 }
 0x430   :  { %v8497_v19 = vpop.eup %8496  ;;  %6690 = vst [vmem:[%s11155_s4 + $0x40] sm:$0xff] %v9983_v32  ;;  %v2464_v17 = vmul.f32 %v8495_v11, %v2444_v58  ;;  %v2756_v20 = vmul.f32 0.5, %v7780_v42  ;;  %v2729_v11 = vmul.f32 0.5, %v8493_v23 }
 0x431   :  { %v8499_v5 = vpop.eup %8498  ;;  %v2744_v59 = vmul.f32 0.5, %v8497_v19  ;;  %v2696_v0 = vpop.f32.mrf.mxu0 }
 0x432   :  { %v8501_v27 = vpop.eup %8500  ;;  %6693 = vst [vmem:[%s11155_s4 + $0x58] sm:$0xff] %v2464_v17  ;;  %7818 = vmatprep.subr.mxu0 %v2464_v17  ;;  %8516 = vtanh.f32 %v2756_v20  ;;  %v2755_v13 = vmul.f32 0.5, %v2696_v0  ;;  %v2733_v23 = vadd.f32 0.5, %v2729_v11  ;;  %v10180_v11 = vld [vmem:[%s11152_s1 + $0x70] sm:$0xff] }
 0x433   :  { %v8503_v60 = vpop.eup %8502  ;;  %v2439_v61 = vmul.f32 0.5, %v8501_v27  ;;  %v7783_v57 = vpop.f32.mrf.mxu0  ;;  %7819 = vmatpush3.msra.mxu0 %v2464_v17  ;;  %v2748_v54 = vadd.f32 0.5, %v2744_v59 }
 0x434   :  { %v8505_v21 = vpop.eup %8504  ;;  %v2743_v48 = vmul.f32 0.5, %v8503_v60  ;;  %v2758_v55 = vmul.f32 0.5, %v7783_v57 }
 0x435   :  { %v8507_v50 = vpop.eup %8506  ;;  %v2443_v51 = vadd.f32 0.5, %v2439_v61  ;;  %v2746_v35 = vmul.f32 0.5, %v8505_v21  ;;  %v2706_v29 = vpop.f32.mrf.mxu0  ;;  %v2772_v59 = vmul.f32 %v2748_v54, %v9686_v52 }
 0x436   :  { %v8509_v58 = vpop.eup %8508  ;;  %v2745_v42 = vmul.f32 0.5, %v8507_v50  ;;  %8518 = vtanh.f32 %v2758_v55  ;;  %v2757_v19 = vmul.f32 0.5, %v2706_v29  ;;  %v2747_v1 = vadd.f32 0.5, %v2743_v48 }
 0x437   :  { %v8511_v30 = vpop.eup %8510  ;;  %v2463_v27 = vmul.f32 %v8499_v5, %v2443_v51  ;;  %v2750_v3 = vadd.f32 0.5, %v2746_v35  ;;  %v2776_v17 = vmul.f32 %v8509_v58, %v2732_v38 }
 0x438   :  { %v2749_v60 = vadd.f32 0.5, %v2745_v42  ;;  %8520 = vtanh.f32 %v2757_v19  ;;  %v2775_v61 = vmul.f32 %v8511_v30, %v2731_v43  ;;  %v2771_v21 = vmul.f32 %v2747_v1, %v9691_v10  ;;  %v10189_v42 = vld [vmem:[%s11152_s1 + $0x78] sm:$0xff]  ;;  %v10193_v19 = vld [vmem:[#allocation3 + $0x18] sm:$0xff] }
 0x439   :  { %v8513_v57 = vpop.eup %8512  ;;  %6692 = vst [vmem:[%s11155_s4 + $0x50] sm:$0xff] %v2463_v27  ;;  %7820 = vmatprep.subr.mxu0 %v2463_v27  ;;  %v2774_v20 = vmul.f32 %v2750_v3, %v9676_v16  ;;  %v10001_v0 = vadd.f32 %v2776_v17, %v2772_v59  ;;  %8522 = vtanh.f32 %v2755_v13  ;;  %v10200_v30 = vld [vmem:[%s11153_s3] sm:$0xff] }
 0x43a   :  { %v2778_v5 = vmul.f32 %v8513_v57, %v2734_v62  ;;  %7821 = vmatpush3.msra.mxu0 %v2463_v27  ;;  %v2773_v52 = vmul.f32 %v2749_v60, %v9684_v41  ;;  %v10010_v16 = vadd.f32 %v2775_v61, %v2771_v21  ;;  %v10205_v27 = vld [vmem:[%s11154_s2] sm:$0xff] }
 0x43b   :  { %v8515_v38 = vpop.eup %8514  ;;  %7822 = vmatprep.subr.mxu0 %v9981_v63  ;;  %v10211_v17 = vld [vmem:[#allocation2 + $0x20] sm:$0xff] }
 0x43c   :  { %v10006_v39 = vadd.f32 %v2778_v5, %v2774_v20  ;;  %v2777_v48 = vmul.f32 %v8515_v38, %v2733_v23  ;;  %7823 = vmatpush3.msra.mxu0 %v9981_v63  ;;  %v4935_v62 = vld [vmem:[%s11151_s0 + $0x6] sm:$0x1] }
 0x43d   :  { %7824 = vmatprep.subr.mxu0 %v9983_v32  ;;  %4936 = vst [vmem:[#allocation2 + $0x20] sm:$0x1] %v4935_v62 }
 0x43e   :  { %v10012_v3 = vadd.f32 %v2777_v48, %v2773_v52  ;;  %7825 = vmatpush3.msra.mxu0 %v9983_v32  ;;  %8524 = vtanh.f32 %v10006_v39 }
 0x43f   :  { %8526 = vtanh.f32 %v10001_v0  ;;  %7827 = vmatmul.mubr.msk.f32.vlgmr.msra.gmra.mxu0 %vm85_vm0, %v9723_v15  ;;  %v8517_v41 = vpop.eup %8516 }
 0x440   :  { %8528 = vtanh.f32 %v10012_v3  ;;  %7829 = vmatprep.mubr.msk.f32.mxu0 %vm85_vm0, %v9731_v9  ;;  %v2764_v32 = vmul.f32 0.5, %v8517_v41 }
 0x441   :  { %8530 = vtanh.f32 %v10010_v16 }
 0x442   :  { %v2768_v50 = vadd.f32 0.5, %v2764_v32 }
 0x443   :  { %v8519_v10 = vpop.eup %8518  ;;  %7830 = vmatmul.mubr.msk.f32.gmra.mxu0 %vm85_vm0, %v9753_v2 }
 0x444   :  { %v2766_v13 = vmul.f32 0.5, %v8519_v10  ;;  %7832 = vmatprep.mubr.msk.f32.mxu0 %vm85_vm0, %v9760_v56 }
 0x445   :  { %v8521_v63 = vpop.eup %8520 }
 0x446   :  { %v8523_v15 = vpop.eup %8522  ;;  %v2770_v43 = vadd.f32 0.5, %v2766_v13  ;;  %v2765_v55 = vmul.f32 0.5, %v8521_v63 }
 0x447   :  { %7833 = vmatmul.mubr.msk.f32.gmra.mxu0 %vm85_vm0, %v9781_v33  ;;  %v2763_v54 = vmul.f32 0.5, %v8523_v15 }
 0x448   :  { %7835 = vmatprep.mubr.msk.f32.mxu0 %vm85_vm0, %v9788_v12  ;;  %v2769_v56 = vadd.f32 0.5, %v2765_v55 }
 0x449   :  { %v2767_v58 = vadd.f32 0.5, %v2763_v54 }
 0x44b   :  { %v8525_v9 = vpop.eup %8524  ;;  %7836 = vmatmul.mubr.msk.f32.gmra.mxu0 %vm85_vm0, %v9810_v6 }
 0x44c   :  { %v8527_v2 = vpop.eup %8526  ;;  %v2790_v51 = vmul.f32 %v8525_v9, %v2770_v43  ;;  %7838 = vmatprep.mubr.msk.f32.mxu0 %vm85_vm0, %v9817_v31  ;;  %v10105_v31 = vld [vmem:[%s11152_s1 + $0x18] sm:$0xff] }
 0x44d   :  { %v8529_v33 = vpop.eup %8528  ;;  %v2788_v12 = vmul.f32 %v8527_v2, %v2768_v50 }
 0x44e   :  { %7784 = vmatprep.subr.mxu1 %v2790_v51  ;;  %v2789_v35 = vmul.f32 %v8529_v33, %v2769_v56  ;;  %v8531_v29 = vpop.eup %8530 }
 0x44f   :  { %7785 = vmatpush3.msra.mxu1 %v2790_v51  ;;  %7839 = vmatmul.mubr.msk.f32.gmra.mxu0 %vm85_vm0, %v9838_v53  ;;  %v2787_v6 = vmul.f32 %v8531_v29, %v2767_v58  ;;  %v10124_v53 = vld [vmem:[%s11152_s1 + $0x30] sm:$0xff] }
 0x450   :  { %7786 = vmatprep.subr.mxu1 %v2789_v35  ;;  %7841 = vmatprep.mubr.msk.f32.mxu0 %vm85_vm0, %v9845_v4  ;;  %v10133_v4 = vld [vmem:[%s11152_s1 + $0x38] sm:$0xff] }
 0x451   :  { %7787 = vmatpush3.msra.mxu1 %v2789_v35 }
 0x452   :  { %7788 = vmatprep.subr.mxu1 %v2788_v12 }
 0x453   :  { %7789 = vmatpush3.msra.mxu1 %v2788_v12  ;;  %7842 = vmatmul.mubr.msk.f32.gmra.mxu0 %vm85_vm0, %v9866_v36  ;;  %v10138_v36 = vld [vmem:[%s11152_s1 + $0x40] sm:$0xff] }
 0x454   :  { %7790 = vmatprep.subr.mxu1 %v2787_v6  ;;  %7844 = vmatprep.mubr.msk.f32.mxu0 %vm85_vm0, %v9873_v22  ;;  %v10147_v22 = vld [vmem:[%s11152_s1 + $0x48] sm:$0xff] }
 0x455   :  { %7791 = vmatpush3.msra.mxu1 %v2787_v6 }
 0x456   :  { %7793 = vmatmul.mubr.msk.f32.vlgmr.msra.gmra.mxu1 %vm379_vm1, %v9713_v40  ;;  %7850 = vmatprep.subr.mxu1 %v9960_v14  ;;  %v11227_v40 = vld [vmem:[#allocation7_spill] sm:$0xff] }
 0x457   :  { %7851 = vmatpush3.msra.mxu1 %v9960_v14  ;;  %7795 = vmatprep.mubr.msk.f32.mxu1 %vm379_vm1, %v9718_v8  ;;  %v11228_v8 = vld [vmem:[#allocation8_spill] sm:$0xff]  ;;  %v10175_v14 = vld [vmem:[%s11152_s1 + $0x68] sm:$0xff] }
 0x458   :  { %7852 = vmatprep.subr.mxu1 %v2790_v51  ;;  %7845 = vmatmul.mubr.msk.f32.gmra.mxu0 %vm85_vm0, %v9894_v34  ;;  %v10152_v34 = vld [vmem:[%s11152_s1 + $0x50] sm:$0xff] }
 0x459   :  { %7853 = vmatpush3.msra.mxu1 %v2790_v51  ;;  %7847 = vmatprep.mubr.msk.f32.mxu0 %vm85_vm0, %v9901_v45  ;;  %v10161_v45 = vld [vmem:[%s11152_s1 + $0x58] sm:$0xff] }
 0x45a   :  { %7796 = vmatmul.mubr.msk.f32.gmra.mxu1 %vm379_vm1, %v9739_v7  ;;  %7854 = vmatprep.subr.mxu1 %v2789_v35  ;;  %v11229_v7 = vld [vmem:[#allocation9_spill] sm:$0xff] }
 0x45b   :  { %7855 = vmatpush3.msra.mxu1 %v2789_v35  ;;  %7798 = vmatprep.mubr.msk.f32.mxu1 %vm379_vm1, %v9744_v37  ;;  %v11230_v37 = vld [vmem:[#allocation10_spill] sm:$0xff] }
 0x45c   :  { %7856 = vmatprep.subr.mxu1 %v2788_v12  ;;  %7848 = vmatmul.mubr.msk.f32.gmra.mxu0 %vm85_vm0, %v9917_v25  ;;  %v10166_v25 = vld [vmem:[%s11152_s1 + $0x60] sm:$0xff] }
 0x45d   :  { %7857 = vmatpush3.msra.mxu1 %v2788_v12  ;;  %7892 = vmatprep.mubr.msk.f32.mxu0 %vm379_vm1, %v10200_v30 }
 0x45e   :  { %7799 = vmatmul.mubr.msk.f32.gmra.mxu1 %vm379_vm1, %v9767_v46  ;;  %7858 = vmatprep.subr.mxu1 %v2787_v6  ;;  %v10082_v46 = vld [vmem:[%s11152_s1] sm:$0xff] }
 0x45f   :  { %7859 = vmatpush3.msra.mxu1 %v2787_v6  ;;  %7801 = vmatprep.mubr.msk.f32.mxu1 %vm379_vm1, %v9772_v47  ;;  %v11231_v47 = vld [vmem:[#allocation11_spill] sm:$0xff] }
 0x460   :  { %7916 = vmatprep.subr.mxu1 %v10193_v19 }
 0x462   :  { %7802 = vmatmul.mubr.msk.f32.gmra.mxu1 %vm379_vm1, %v9795_v24  ;;  %v10091_v24 = vld [vmem:[%s11152_s1 + $0x8] sm:$0xff] }
 0x463   :  { %7804 = vmatprep.mubr.msk.f32.mxu1 %vm379_vm1, %v9800_v49  ;;  %v10096_v49 = vld [vmem:[%s11152_s1 + $0x10] sm:$0xff] }
 0x466   :  { %7805 = vmatmul.mubr.msk.f32.gmra.mxu1 %vm379_vm1, %v9824_v28  ;;  %v10110_v28 = vld [vmem:[%s11152_s1 + $0x20] sm:$0xff] }
 0x467   :  { %7807 = vmatprep.mubr.msk.f32.mxu1 %vm379_vm1, %v9829_v26  ;;  %v10119_v26 = vld [vmem:[%s11152_s1 + $0x28] sm:$0xff] }
 0x46a   :  { %7808 = vmatmul.mubr.msk.f32.gmra.mxu1 %vm379_vm1, %v11227_v40 }
 0x46b   :  { %7810 = vmatprep.mubr.msk.f32.mxu1 %vm379_vm1, %v11228_v8 }
 0x46e   :  { %7811 = vmatmul.mubr.msk.f32.gmra.mxu1 %vm379_vm1, %v11229_v7 }
 0x46f   :  { %7813 = vmatprep.mubr.msk.f32.mxu1 %vm379_vm1, %v11230_v37 }
 0x472   :  { %7814 = vmatmul.mubr.msk.f32.gmra.mxu1 %vm379_vm1, %v11231_v47 }
 0x473   :  { %7860 = vmatprep.mubr.msk.f32.mxu1 %vm85_vm0, %v10082_v46 }
 0x476   :  { %7861 = vmatmul.mubr.msk.f32.vlgmr.msra.gmra.mxu1 %vm85_vm0, %v10091_v24 }
 0x477   :  { %7863 = vmatprep.mubr.msk.f32.mxu1 %vm85_vm0, %v10096_v49  ;;  %7917 = vmatpush3.msra.mxu1 %v10193_v19 }
 0x47a   :  { %7864 = vmatmul.mubr.msk.f32.gmra.mxu1 %vm85_vm0, %v10105_v31 }
 0x47b   :  { %7866 = vmatprep.mubr.msk.f32.mxu1 %vm85_vm0, %v10110_v28 }
 0x47e   :  { %7867 = vmatmul.mubr.msk.f32.gmra.mxu1 %vm85_vm0, %v10119_v26 }
 0x47f   :  { %7869 = vmatprep.mubr.msk.f32.mxu1 %vm85_vm0, %v10124_v53 }
 0x482   :  { %7870 = vmatmul.mubr.msk.f32.gmra.mxu1 %vm85_vm0, %v10133_v4 }
 0x483   :  { %7872 = vmatprep.mubr.msk.f32.mxu1 %vm85_vm0, %v10138_v36 }
 0x486   :  { %7873 = vmatmul.mubr.msk.f32.gmra.mxu1 %vm85_vm0, %v10147_v22 }
 0x487   :  { %7875 = vmatprep.mubr.msk.f32.mxu1 %vm85_vm0, %v10152_v34 }
 0x48a   :  { %7876 = vmatmul.mubr.msk.f32.gmra.mxu1 %vm85_vm0, %v10161_v45 }
 0x48b   :  { %7878 = vmatprep.mubr.msk.f32.mxu1 %vm85_vm0, %v10166_v25 }
 0x48e   :  { %7879 = vmatmul.mubr.msk.f32.gmra.mxu1 %vm85_vm0, %v10175_v14 }
 0x48f   :  { %7881 = vmatprep.mubr.msk.f32.mxu1 %vm85_vm0, %v10180_v11 }
 0x492   :  { %7882 = vmatmul.mubr.msk.f32.gmra.mxu1 %vm85_vm0, %v10189_v42 }
 0x493   :  { %7926 = vmatprep.mubr.msk.f32.mxu1 %vm85_vm0, %v10205_v27 }
 0x4ff   :  { %v7828_v1 = vpop.f32.mrf.mxu0 }
 0x501   :  { %v3122_v60 = vpop.f32.mrf.mxu0 }
 0x503   :  { %v7831_v57 = vpop.f32.mrf.mxu0 }
 0x505   :  { %v3132_v59 = vpop.f32.mrf.mxu0 }
 0x507   :  { %v7834_v23 = vpop.f32.mrf.mxu0 }
 0x509   :  { %v3142_v20 = vpop.f32.mrf.mxu0 }
 0x50b   :  { %v7837_v61 = vpop.f32.mrf.mxu0 }
 0x50d   :  { %v3152_v5 = vpop.f32.mrf.mxu0 }
 0x50f   :  { %v7840_v21 = vpop.f32.mrf.mxu0 }
 0x511   :  { %v3162_v13 = vpop.f32.mrf.mxu0 }
 0x513   :  { %v7843_v50 = vpop.f32.mrf.mxu0 }
 0x515   :  { %v3172_v6 = vpop.f32.mrf.mxu0 }
 0x516   :  { %v7794_v38 = vpop.f32.mrf.mxu1 }
 0x517   :  { %v3128_v48 = vadd.f32 %v7828_v1, %v7794_v38 }
 0x518   :  { %v2929_v52 = vpop.f32.mrf.mxu1  ;;  %v7846_v1 = vpop.f32.mrf.mxu0 }
 0x519   :  { %v3123_v41 = vadd.f32 %v3122_v60, %v2929_v52  ;;  %v3206_v32 = vmul.f32 0.5, %v3128_v48 }
 0x51a   :  { %v7797_v10 = vpop.f32.mrf.mxu1 }
 0x51b   :  { %v3138_v63 = vadd.f32 %v7831_v57, %v7797_v10  ;;  %v3205_v43 = vmul.f32 0.5, %v3123_v41  ;;  %8532 = vtanh.f32 %v3206_v32 }
 0x51c   :  { %v2939_v15 = vpop.f32.mrf.mxu1 }
 0x51d   :  { %v3133_v55 = vadd.f32 %v3132_v59, %v2939_v15  ;;  %v3208_v54 = vmul.f32 0.5, %v3138_v63  ;;  %8534 = vtanh.f32 %v3205_v43 }
 0x51e   :  { %v7800_v9 = vpop.f32.mrf.mxu1 }
 0x51f   :  { %v3148_v2 = vadd.f32 %v7834_v23, %v7800_v9  ;;  %v3207_v35 = vmul.f32 0.5, %v3133_v55 }
 0x520   :  { %v2949_v51 = vpop.f32.mrf.mxu1 }
 0x521   :  { %v3222_v56 = vmul.f32 0.5, %v3148_v2  ;;  %v3143_v33 = vadd.f32 %v3142_v20, %v2949_v51  ;;  %v3182_v20 = vpop.f32.mrf.mxu0 }
 0x522   :  { %v7803_v29 = vpop.f32.mrf.mxu1 }
 0x523   :  { %8536 = vtanh.f32 %v3222_v56  ;;  %v3221_v12 = vmul.f32 0.5, %v3143_v33  ;;  %v3158_v58 = vadd.f32 %v7837_v61, %v7803_v29  ;;  %v7849_v10 = vpop.f32.mrf.mxu0 }
 0x524   :  { %8538 = vtanh.f32 %v3208_v54  ;;  %v2959_v40 = vpop.f32.mrf.mxu1 }
 0x525   :  { %8540 = vtanh.f32 %v3221_v12  ;;  %v3224_v8 = vmul.f32 0.5, %v3158_v58  ;;  %v3153_v7 = vadd.f32 %v3152_v5, %v2959_v40  ;;  %v3192_v33 = vpop.f32.mrf.mxu0 }
 0x526   :  { %8542 = vtanh.f32 %v3207_v35  ;;  %v7806_v37 = vpop.f32.mrf.mxu1 }
 0x527   :  { %8544 = vtanh.f32 %v3224_v8  ;;  %v3223_v47 = vmul.f32 0.5, %v3153_v7  ;;  %v3168_v62 = vadd.f32 %v7840_v21, %v7806_v37 }
 0x528   :  { %v2969_v60 = vpop.f32.mrf.mxu1  ;;  %v8533_v52 = vpop.eup %8532 }
 0x529   :  { %8546 = vtanh.f32 %v3223_v47  ;;  %v3163_v57 = vadd.f32 %v3162_v13, %v2969_v60  ;;  %v3214_v9 = vmul.f32 0.5, %v8533_v52 }
 0x52a   :  { %8548 = vtanh.f32 %v3168_v62  ;;  %v7809_v59 = vpop.f32.mrf.mxu1  ;;  %v8535_v5 = vpop.eup %8534 }
 0x52b   :  { %8550 = vtanh.f32 %v3163_v57  ;;  %v3178_v23 = vadd.f32 %v7843_v50, %v7809_v59  ;;  %v3213_v54 = vmul.f32 0.5, %v8535_v5  ;;  %v3218_v37 = vadd.f32 0.5, %v3214_v9 }
 0x52c   :  { %v2979_v61 = vpop.f32.mrf.mxu1 }
 0x52d   :  { %8552 = vtanh.f32 %v3178_v23  ;;  %v3173_v38 = vadd.f32 %v3172_v6, %v2979_v61  ;;  %v3217_v59 = vadd.f32 0.5, %v3213_v54 }
 0x52e   :  { %v7812_v48 = vpop.f32.mrf.mxu1 }
 0x52f   :  { %8554 = vtanh.f32 %v3173_v38  ;;  %v3188_v41 = vadd.f32 %v7846_v1, %v7812_v48 }
 0x530   :  { %v8537_v63 = vpop.eup %8536  ;;  %v2989_v21 = vpop.f32.mrf.mxu1 }
 0x531   :  { %v8539_v15 = vpop.eup %8538  ;;  %v3230_v32 = vmul.f32 0.5, %v8537_v63  ;;  %v3242_v43 = vmul.f32 0.5, %v3188_v41  ;;  %v3183_v13 = vadd.f32 %v3182_v20, %v2989_v21 }
 0x532   :  { %v8541_v55 = vpop.eup %8540  ;;  %v7815_v2 = vpop.f32.mrf.mxu1  ;;  %v3216_v6 = vmul.f32 0.5, %v8539_v15 }
 0x533   :  { %v8543_v50 = vpop.eup %8542  ;;  %v3229_v51 = vmul.f32 0.5, %v8541_v55  ;;  %v3241_v56 = vmul.f32 0.5, %v3183_v13  ;;  %v3234_v29 = vadd.f32 0.5, %v3230_v32  ;;  %8556 = vtanh.f32 %v3242_v43 }
 0x534   :  { %v8545_v35 = vpop.eup %8544  ;;  %v3198_v12 = vadd.f32 %v7849_v10, %v7815_v2  ;;  %v2999_v58 = vpop.f32.mrf.mxu1  ;;  %v3215_v47 = vmul.f32 0.5, %v8543_v50  ;;  %v3220_v10 = vadd.f32 0.5, %v3216_v6  ;;  %v11232_v2 = vld [vmem:[#allocation12_spill] sm:$0xff] }
 0x535   :  { %v3233_v40 = vadd.f32 0.5, %v3229_v51  ;;  %v3232_v8 = vmul.f32 0.5, %v8545_v35  ;;  %8558 = vtanh.f32 %v3241_v56  ;;  %v3193_v1 = vadd.f32 %v3192_v33, %v2999_v58  ;;  %v11233_v33 = vld [vmem:[#allocation13_spill] sm:$0xff] }
 0x536   :  { %v8547_v7 = vpop.eup %8546  ;;  %v3244_v62 = vmul.f32 0.5, %v3198_v12  ;;  %v7862_v60 = vpop.f32.mrf.mxu1  ;;  %v3258_v52 = vmul.f32 %v3234_v29, %v9967_v18  ;;  %v3219_v43 = vadd.f32 0.5, %v3215_v47 }
 0x537   :  { %v8549_v57 = vpop.eup %8548  ;;  %v3236_v23 = vadd.f32 0.5, %v3232_v8  ;;  %v3231_v20 = vmul.f32 0.5, %v8547_v7  ;;  %v3532_v61 = vmul.f32 0.5, %v7862_v60  ;;  %v3243_v5 = vmul.f32 0.5, %v3193_v1 }
 0x538   :  { %v8551_v38 = vpop.eup %8550  ;;  %v3262_v48 = vmul.f32 %v8549_v57, %v3218_v37  ;;  %8560 = vtanh.f32 %v3244_v62  ;;  %v3448_v41 = vpop.f32.mrf.mxu1  ;;  %v3257_v63 = vmul.f32 %v3233_v40, %v9970_v44 }
 0x539   :  { %v3235_v21 = vadd.f32 0.5, %v3231_v20  ;;  %v3261_v15 = vmul.f32 %v8551_v38, %v3217_v59  ;;  %8562 = vtanh.f32 %v3243_v5  ;;  %v3531_v55 = vmul.f32 0.5, %v3448_v41 }
 0x53a   :  { %v8553_v32 = vpop.eup %8552  ;;  %v10218_v13 = vadd.f32 %v3262_v48, %v3258_v52  ;;  %v7865_v9 = vpop.f32.mrf.mxu1  ;;  %v3260_v50 = vmul.f32 %v3236_v23, %v11232_v2  ;;  %8564 = vtanh.f32 %v3532_v61 }
 0x53b   :  { %v10221_v54 = vadd.f32 %v3261_v15, %v3257_v63  ;;  %v3264_v18 = vmul.f32 %v8553_v32, %v3220_v10  ;;  %v3534_v56 = vmul.f32 0.5, %v7865_v9  ;;  %v3259_v35 = vmul.f32 %v3235_v21, %v11233_v33 }
 0x53c   :  { %v8555_v51 = vpop.eup %8554  ;;  %8566 = vtanh.f32 %v10218_v13  ;;  %v3458_v44 = vpop.f32.mrf.mxu1 }
 0x53d   :  { %8568 = vtanh.f32 %v10221_v54  ;;  %v10226_v29 = vadd.f32 %v3264_v18, %v3260_v50  ;;  %v3263_v12 = vmul.f32 %v8555_v51, %v3219_v43  ;;  %v3533_v58 = vmul.f32 0.5, %v3458_v44 }
 0x53e   :  { %8570 = vtanh.f32 %v3531_v55  ;;  %v7868_v6 = vpop.f32.mrf.mxu1 }
 0x53f   :  { %8572 = vtanh.f32 %v10226_v29  ;;  %v10229_v40 = vadd.f32 %v3263_v12, %v3259_v35  ;;  %v3548_v8 = vmul.f32 0.5, %v7868_v6 }
 0x540   :  { %8574 = vtanh.f32 %v3534_v56  ;;  %v3468_v7 = vpop.f32.mrf.mxu1  ;;  %v8557_v37 = vpop.eup %8556 }
 0x541   :  { %8576 = vtanh.f32 %v10229_v40  ;;  %v3547_v47 = vmul.f32 0.5, %v3468_v7  ;;  %v3250_v57 = vmul.f32 0.5, %v8557_v37 }
 0x542   :  { %v8559_v62 = vpop.eup %8558  ;;  %8578 = vtanh.f32 %v3533_v58  ;;  %v7871_v1 = vpop.f32.mrf.mxu1 }
 0x543   :  { %8580 = vtanh.f32 %v3548_v8  ;;  %v3550_v60 = vmul.f32 0.5, %v7871_v1  ;;  %v3249_v20 = vmul.f32 0.5, %v8559_v62  ;;  %v3254_v41 = vadd.f32 0.5, %v3250_v57 }
 0x544   :  { %8582 = vtanh.f32 %v3547_v47  ;;  %v3478_v59 = vpop.f32.mrf.mxu1 }
 0x545   :  { %v8561_v23 = vpop.eup %8560  ;;  %8584 = vtanh.f32 %v3550_v60  ;;  %v3549_v61 = vmul.f32 0.5, %v3478_v59  ;;  %v3253_v21 = vadd.f32 0.5, %v3249_v20 }
 0x546   :  { %v7874_v38 = vpop.f32.mrf.mxu1  ;;  %v8563_v52 = vpop.eup %8562  ;;  %v3252_v48 = vmul.f32 0.5, %v8561_v23 }
 0x547   :  { %8586 = vtanh.f32 %v3549_v61  ;;  %v8565_v5 = vpop.eup %8564  ;;  %v3251_v15 = vmul.f32 0.5, %v8563_v52 }
 0x548   :  { %8588 = vtanh.f32 %v7874_v38  ;;  %v3488_v10 = vpop.f32.mrf.mxu1  ;;  %v3256_v50 = vadd.f32 0.5, %v3252_v48  ;;  %v3540_v7 = vmul.f32 0.5, %v8565_v5 }
 0x549   :  { %v8567_v63 = vpop.eup %8566  ;;  %8590 = vtanh.f32 %v3488_v10  ;;  %v3255_v33 = vadd.f32 0.5, %v3251_v15  ;;  %v10247_v10 = vld [vmem:[%s11154_s2 + $0x8] sm:$0xff] }
 0x54a   :  { %v8569_v32 = vpop.eup %8568  ;;  %v3274_v43 = vmul.f32 %v8567_v63, %v3254_v41  ;;  %v7877_v55 = vpop.f32.mrf.mxu1  ;;  %v3544_v48 = vadd.f32 0.5, %v3540_v7 }
 0x54b   :  { %v8571_v9 = vpop.eup %8570  ;;  %v3273_v2 = vmul.f32 %v8569_v32, %v3253_v21  ;;  %8592 = vtanh.f32 %v7877_v55  ;;  %v10252_v55 = vld [vmem:[%s11154_s2 + $0x10] sm:$0xff] }
 0x54c   :  { %v8573_v18 = vpop.eup %8572  ;;  %6743 = vst [vmem:[%s11155_s4 + $0x68] sm:$0xff] %v3274_v43  ;;  %v3498_v51 = vpop.f32.mrf.mxu1  ;;  %v3539_v60 = vmul.f32 0.5, %v8571_v9 }
 0x54d   :  { %v8575_v56 = vpop.eup %8574  ;;  %6742 = vst [vmem:[%s11155_s4 + $0x60] sm:$0xff] %v3273_v2  ;;  %v3276_v44 = vmul.f32 %v8573_v18, %v3256_v50  ;;  %8594 = vtanh.f32 %v3498_v51 }
 0x54e   :  { %v8577_v35 = vpop.eup %8576  ;;  %v7880_v12 = vpop.f32.mrf.mxu1  ;;  %v3542_v57 = vmul.f32 0.5, %v8575_v56  ;;  %v3543_v50 = vadd.f32 0.5, %v3539_v60 }
 0x54f   :  { %v8579_v58 = vpop.eup %8578  ;;  %6745 = vst [vmem:[%s11155_s4 + $0x78] sm:$0xff] %v3276_v44  ;;  %v3275_v6 = vmul.f32 %v8577_v35, %v3255_v33  ;;  %7918 = vmatprep.subr.mxu1 %v3276_v44  ;;  %v3568_v61 = vmul.f32 0.5, %v7880_v12 }
 0x550   :  { %v8581_v8 = vpop.eup %8580  ;;  %v3508_v37 = vpop.f32.mrf.mxu1  ;;  %7919 = vmatpush3.msra.mxu1 %v3276_v44  ;;  %v3541_v21 = vmul.f32 0.5, %v8579_v58  ;;  %v3546_v56 = vadd.f32 0.5, %v3542_v57  ;;  %v10262_v58 = vld [vmem:[%s11154_s2 + $0x18] sm:$0xff] }
 0x551   :  { %v8583_v47 = vpop.eup %8582  ;;  %6744 = vst [vmem:[%s11155_s4 + $0x70] sm:$0xff] %v3275_v6  ;;  %v3556_v62 = vmul.f32 0.5, %v8581_v8  ;;  %7920 = vmatprep.subr.mxu1 %v3275_v6 }
 0x552   :  { %v8585_v1 = vpop.eup %8584  ;;  %v7883_v59 = vpop.f32.mrf.mxu1  ;;  %7921 = vmatpush3.msra.mxu1 %v3275_v6  ;;  %v3555_v23 = vmul.f32 0.5, %v8583_v47 }
 0x553   :  { %v3558_v20 = vmul.f32 0.5, %v8585_v1  ;;  %v3570_v38 = vmul.f32 0.5, %v7883_v59  ;;  %7922 = vmatprep.subr.mxu1 %v3274_v43  ;;  %v3560_v5 = vadd.f32 0.5, %v3556_v62 }
 0x554   :  { %v8587_v52 = vpop.eup %8586  ;;  %v3518_v41 = vpop.f32.mrf.mxu1  ;;  %7923 = vmatpush3.msra.mxu1 %v3274_v43  ;;  %v3567_v43 = vmul.f32 0.5, %v3508_v37  ;;  %v3559_v44 = vadd.f32 0.5, %v3555_v23  ;;  %v10268_v37 = vld [vmem:[%s11154_s2 + $0x20] sm:$0xff] }
 0x555   :  { %v8589_v63 = vpop.eup %8588  ;;  %v3562_v15 = vadd.f32 0.5, %v3558_v20  ;;  %v3557_v32 = vmul.f32 0.5, %v8587_v52  ;;  %8596 = vtanh.f32 %v3570_v38  ;;  %7924 = vmatprep.subr.mxu1 %v3273_v2  ;;  %v3569_v51 = vmul.f32 0.5, %v3518_v41  ;;  %v10310_v20 = vld [vmem:[%s11154_s2 + $0x40] sm:$0xff]  ;;  %v10324_v41 = vld [vmem:[%s11154_s2 + $0x50] sm:$0xff] }
 0x556   :  { %v8591_v9 = vpop.eup %8590  ;;  %v3588_v18 = vmul.f32 %v8589_v63, %v3544_v48  ;;  %7925 = vmatpush3.msra.mxu1 %v3273_v2  ;;  %8598 = vtanh.f32 %v3568_v61  ;;  %v3584_v12 = vmul.f32 %v3560_v5, %v10001_v0  ;;  %v3545_v2 = vadd.f32 0.5, %v3541_v21  ;;  %v10319_v48 = vld [vmem:[%s11154_s2 + $0x48] sm:$0xff] }
 0x557   :  { %v3561_v33 = vadd.f32 0.5, %v3557_v32  ;;  %7927 = vmatmul.mubr.msk.f32.vlgmr.msra.gmra.mxu1 %vm85_vm0, %v10247_v10  ;;  %8600 = vtanh.f32 %v3569_v51  ;;  %v3586_v6 = vmul.f32 %v3562_v15, %v10006_v39  ;;  %v3587_v8 = vmul.f32 %v8591_v9, %v3543_v50  ;;  %v10283_v39 = vld [vmem:[%s11154_s2 + $0x28] sm:$0xff]  ;;  %v10333_v9 = vld [vmem:[%s11154_s2 + $0x58] sm:$0xff]  ;;  %v10338_v50 = vld [vmem:[%s11154_s2 + $0x60] sm:$0xff] }
 0x558   :  { %v8593_v35 = vpop.eup %8592  ;;  %7929 = vmatprep.mubr.msk.f32.mxu1 %vm85_vm0, %v10252_v55  ;;  %v10270_v47 = vadd.f32 %v3588_v18, %v3584_v12  ;;  %8602 = vtanh.f32 %v3567_v43  ;;  %v3583_v62 = vmul.f32 %v3559_v44, %v10010_v16  ;;  %v10293_v16 = vld [vmem:[%s11154_s2 + $0x30] sm:$0xff]  ;;  %v10347_v12 = vld [vmem:[%s11154_s2 + $0x68] sm:$0xff] }
 0x559   :  { %v3590_v7 = vmul.f32 %v8593_v35, %v3546_v56  ;;  %v3585_v1 = vmul.f32 %v3561_v33, %v10012_v3  ;;  %v10304_v3 = vld [vmem:[%s11154_s2 + $0x38] sm:$0xff] }
 0x55a   :  { %v8595_v0 = vpop.eup %8594  ;;  %v10285_v59 = vadd.f32 %v3587_v8, %v3583_v62  ;;  %v10361_v62 = vld [vmem:[%s11154_s2 + $0x78] sm:$0xff] }
 0x55b   :  { %v10274_v60 = vadd.f32 %v3590_v7, %v3586_v6  ;;  %v3589_v57 = vmul.f32 %v8595_v0, %v3545_v2  ;;  %7930 = vmatmul.mubr.msk.f32.gmra.mxu1 %vm85_vm0, %v10262_v58  ;;  %v10352_v6 = vld [vmem:[%s11154_s2 + $0x70] sm:$0xff] }
 0x55c   :  { %7932 = vmatprep.mubr.msk.f32.mxu1 %vm85_vm0, %v10268_v37 }
 0x55d   :  { %v10287_v23 = vadd.f32 %v3589_v57, %v3585_v1  ;;  %8604 = vtanh.f32 %v10274_v60  ;;  %v10366_v57 = vld [vmem:[%s11153_s3 + $0x8] sm:$0xff] }
 0x55e   :  { %8606 = vtanh.f32 %v10270_v47 }
 0x55f   :  { %8608 = vtanh.f32 %v10287_v23  ;;  %7933 = vmatmul.mubr.msk.f32.gmra.mxu1 %vm85_vm0, %v10283_v39 }
 0x560   :  { %7935 = vmatprep.mubr.msk.f32.mxu1 %vm85_vm0, %v10293_v16  ;;  %8610 = vtanh.f32 %v10285_v59 }
 0x562   :  { %v8597_v61 = vpop.eup %8596 }
 0x563   :  { %v3578_v38 = vmul.f32 0.5, %v8597_v61  ;;  %7936 = vmatmul.mubr.msk.f32.gmra.mxu1 %vm85_vm0, %v10304_v3  ;;  %v8599_v52 = vpop.eup %8598  ;;  %v10371_v61 = vld [vmem:[%s11153_s3 + $0x10] sm:$0xff] }
 0x564   :  { %7938 = vmatprep.mubr.msk.f32.mxu1 %vm85_vm0, %v10310_v20  ;;  %v8601_v5 = vpop.eup %8600  ;;  %v3576_v21 = vmul.f32 0.5, %v8599_v52  ;;  %v10405_v52 = vld [vmem:[%s11153_s3 + $0x30] sm:$0xff] }
 0x565   :  { %v8603_v63 = vpop.eup %8602  ;;  %v3582_v15 = vadd.f32 0.5, %v3578_v38  ;;  %v3577_v32 = vmul.f32 0.5, %v8601_v5  ;;  %v10386_v38 = vld [vmem:[%s11153_s3 + $0x18] sm:$0xff] }
 0x566   :  { %v3580_v51 = vadd.f32 0.5, %v3576_v21  ;;  %v3575_v56 = vmul.f32 0.5, %v8603_v63  ;;  %v10414_v5 = vld [vmem:[%s11153_s3 + $0x38] sm:$0xff]  ;;  %v10419_v63 = vld [vmem:[%s11153_s3 + $0x40] sm:$0xff]  ;;  %v10429_v21 = vld [vmem:[%s11153_s3 + $0x48] sm:$0xff] }
 0x567   :  { %7939 = vmatmul.mubr.msk.f32.gmra.mxu1 %vm85_vm0, %v10319_v48  ;;  %v3581_v44 = vadd.f32 0.5, %v3577_v32  ;;  %v10443_v32 = vld [vmem:[%s11153_s3 + $0x58] sm:$0xff] }
 0x568   :  { %7941 = vmatprep.mubr.msk.f32.mxu1 %vm85_vm0, %v10324_v41  ;;  %v3579_v7 = vadd.f32 0.5, %v3575_v56  ;;  %11234 = vst [vmem:[#allocation14_spill] sm:$0xff] %v10443_v32  ;;  %v10471_v56 = vld [vmem:[%s11153_s3 + $0x78] sm:$0xff] }
 0x569   :  { %11238 = vst [vmem:[#allocation18_spill] sm:$0xff] %v10471_v56 }
 0x56a   :  { %v8605_v18 = vpop.eup %8604 }
 0x56b   :  { %v8607_v43 = vpop.eup %8606  ;;  %v3602_v33 = vmul.f32 %v8605_v18, %v3582_v15  ;;  %7942 = vmatmul.mubr.msk.f32.gmra.mxu1 %vm85_vm0, %v10333_v9  ;;  %v10434_v15 = vld [vmem:[%s11153_s3 + $0x50] sm:$0xff]  ;;  %v10448_v18 = vld [vmem:[%s11153_s3 + $0x60] sm:$0xff] }
 0x56c   :  { %v8609_v35 = vpop.eup %8608  ;;  %7944 = vmatprep.mubr.msk.f32.mxu1 %vm85_vm0, %v10338_v50  ;;  %v3600_v0 = vmul.f32 %v8607_v43, %v3580_v51  ;;  %11235 = vst [vmem:[#allocation15_spill] sm:$0xff] %v10448_v18  ;;  %v10457_v43 = vld [vmem:[%s11153_s3 + $0x68] sm:$0xff]  ;;  %v10462_v51 = vld [vmem:[%s11153_s3 + $0x70] sm:$0xff] }
 0x56d   :  { %7884 = vmatprep.subr.mxu0 %v3602_v33  ;;  %v3601_v2 = vmul.f32 %v8609_v35, %v3581_v44  ;;  %v8611_v8 = vpop.eup %8610  ;;  %11236 = vst [vmem:[#allocation16_spill] sm:$0xff] %v10457_v43  ;;  %11237 = vst [vmem:[#allocation17_spill] sm:$0xff] %v10462_v51 }
 0x56e   :  { %7885 = vmatpush3.msra.mxu0 %v3602_v33  ;;  %v3599_v1 = vmul.f32 %v8611_v8, %v3579_v7 }
 0x56f   :  { %7886 = vmatprep.subr.mxu0 %v3601_v2  ;;  %7945 = vmatmul.mubr.msk.f32.gmra.mxu1 %vm85_vm0, %v10347_v12 }
 0x570   :  { %7887 = vmatpush3.msra.mxu0 %v3601_v2  ;;  %7947 = vmatprep.mubr.msk.f32.mxu1 %vm85_vm0, %v10352_v6 }
 0x571   :  { %7888 = vmatprep.subr.mxu0 %v3600_v0 }
 0x572   :  { %7889 = vmatpush3.msra.mxu0 %v3600_v0 }
 0x573   :  { %7890 = vmatprep.subr.mxu0 %v3599_v1  ;;  %7948 = vmatmul.mubr.msk.f32.gmra.mxu1 %vm85_vm0, %v10361_v62 }
 0x574   :  { %7891 = vmatpush3.msra.mxu0 %v3599_v1  ;;  %7992 = vmatprep.mubr.msk.f32.mxu1 %vm379_vm1, %v10200_v30  ;;  %v10391_v30 = vld [vmem:[%s11153_s3 + $0x20] sm:$0xff] }
 0x575   :  { %7893 = vmatmul.mubr.msk.f32.vlgmr.msra.gmra.mxu0 %vm379_vm1, %v10366_v57  ;;  %7950 = vmatprep.subr.mxu0 %v10211_v17 }
 0x576   :  { %7951 = vmatpush3.msra.mxu0 %v10211_v17  ;;  %7895 = vmatprep.mubr.msk.f32.mxu0 %vm379_vm1, %v10371_v61  ;;  %v10400_v17 = vld [vmem:[%s11153_s3 + $0x28] sm:$0xff] }
 0x577   :  { %7952 = vmatprep.subr.mxu0 %v3602_v33 }
 0x578   :  { %7953 = vmatpush3.msra.mxu0 %v3602_v33 }
 0x579   :  { %7896 = vmatmul.mubr.msk.f32.gmra.mxu0 %vm379_vm1, %v10386_v38  ;;  %7954 = vmatprep.subr.mxu0 %v3601_v2 }
 0x57a   :  { %7955 = vmatpush3.msra.mxu0 %v3601_v2  ;;  %7898 = vmatprep.mubr.msk.f32.mxu0 %vm379_vm1, %v10391_v30 }
 0x57b   :  { %7956 = vmatprep.subr.mxu0 %v3600_v0 }
 0x57c   :  { %7957 = vmatpush3.msra.mxu0 %v3600_v0 }
 0x57d   :  { %7899 = vmatmul.mubr.msk.f32.gmra.mxu0 %vm379_vm1, %v10400_v17  ;;  %7958 = vmatprep.subr.mxu0 %v3599_v1 }
 0x57e   :  { %7959 = vmatpush3.msra.mxu0 %v3599_v1  ;;  %7901 = vmatprep.mubr.msk.f32.mxu0 %vm379_vm1, %v10405_v52 }
 0x57f   :  { %8016 = vmatprep.subr.mxu0 %v10193_v19 }
 0x581   :  { %7902 = vmatmul.mubr.msk.f32.gmra.mxu0 %vm379_vm1, %v10414_v5 }
 0x582   :  { %7904 = vmatprep.mubr.msk.f32.mxu0 %vm379_vm1, %v10419_v63 }
 0x585   :  { %7905 = vmatmul.mubr.msk.f32.gmra.mxu0 %vm379_vm1, %v10429_v21 }
 0x586   :  { %7907 = vmatprep.mubr.msk.f32.mxu0 %vm379_vm1, %v10434_v15 }
 0x589   :  { %7908 = vmatmul.mubr.msk.f32.gmra.mxu0 %vm379_vm1, %v10443_v32 }
 0x58a   :  { %7910 = vmatprep.mubr.msk.f32.mxu0 %vm379_vm1, %v10448_v18 }
 0x58d   :  { %7911 = vmatmul.mubr.msk.f32.gmra.mxu0 %vm379_vm1, %v10457_v43 }
 0x58e   :  { %7913 = vmatprep.mubr.msk.f32.mxu0 %vm379_vm1, %v10462_v51 }
 0x591   :  { %7914 = vmatmul.mubr.msk.f32.gmra.mxu0 %vm379_vm1, %v10471_v56 }
 0x592   :  { %7960 = vmatprep.mubr.msk.f32.mxu0 %vm85_vm0, %v10082_v46  ;;  %v10510_v46 = vld [vmem:[#allocation2 + $0x20] sm:$0xff] }
 0x595   :  { %7961 = vmatmul.mubr.msk.f32.vlgmr.msra.gmra.mxu0 %vm85_vm0, %v10091_v24  ;;  %v5747_v24 = vld [vmem:[%s11151_s0 + $0x7] sm:$0x1] }
 0x596   :  { %7963 = vmatprep.mubr.msk.f32.mxu0 %vm85_vm0, %v10096_v49  ;;  %8017 = vmatpush3.msra.mxu0 %v10193_v19  ;;  %5748 = vst [vmem:[#allocation2 + $0x20] sm:$0x1] %v5747_v24 }
 0x599   :  { %7964 = vmatmul.mubr.msk.f32.gmra.mxu0 %vm85_vm0, %v10105_v31 }
 0x59a   :  { %7966 = vmatprep.mubr.msk.f32.mxu0 %vm85_vm0, %v10110_v28 }
 0x59d   :  { %7967 = vmatmul.mubr.msk.f32.gmra.mxu0 %vm85_vm0, %v10119_v26 }
 0x59e   :  { %7969 = vmatprep.mubr.msk.f32.mxu0 %vm85_vm0, %v10124_v53 }
 0x5a1   :  { %7970 = vmatmul.mubr.msk.f32.gmra.mxu0 %vm85_vm0, %v10133_v4 }
 0x5a2   :  { %7972 = vmatprep.mubr.msk.f32.mxu0 %vm85_vm0, %v10138_v36 }
 0x5a5   :  { %7973 = vmatmul.mubr.msk.f32.gmra.mxu0 %vm85_vm0, %v10147_v22 }
 0x5a6   :  { %7975 = vmatprep.mubr.msk.f32.mxu0 %vm85_vm0, %v10152_v34 }
 0x5a9   :  { %7976 = vmatmul.mubr.msk.f32.gmra.mxu0 %vm85_vm0, %v10161_v45 }
 0x5aa   :  { %7978 = vmatprep.mubr.msk.f32.mxu0 %vm85_vm0, %v10166_v25 }
 0x5ad   :  { %7979 = vmatmul.mubr.msk.f32.gmra.mxu0 %vm85_vm0, %v10175_v14 }
 0x5ae   :  { %7981 = vmatprep.mubr.msk.f32.mxu0 %vm85_vm0, %v10180_v11 }
 0x5b1   :  { %7982 = vmatmul.mubr.msk.f32.gmra.mxu0 %vm85_vm0, %v10189_v42 }
 0x5b2   :  { %8026 = vmatprep.mubr.msk.f32.mxu0 %vm85_vm0, %v10205_v27 }
 0x617   :  { %v7928_v49 = vpop.f32.mrf.mxu1 }
 0x619   :  { %v3934_v31 = vpop.f32.mrf.mxu1 }
 0x61b   :  { %v7931_v28 = vpop.f32.mrf.mxu1 }
 0x61d   :  { %v3944_v26 = vpop.f32.mrf.mxu1 }
 0x61f   :  { %v7934_v53 = vpop.f32.mrf.mxu1 }
 0x621   :  { %v3954_v4 = vpop.f32.mrf.mxu1 }
 0x623   :  { %v7937_v36 = vpop.f32.mrf.mxu1 }
 0x625   :  { %v3964_v22 = vpop.f32.mrf.mxu1 }
 0x627   :  { %v7940_v45 = vpop.f32.mrf.mxu1 }
 0x629   :  { %v3974_v19 = vpop.f32.mrf.mxu1 }
 0x62b   :  { %v7943_v0 = vpop.f32.mrf.mxu1 }
 0x635   :  { %v7894_v34 = vpop.f32.mrf.mxu0 }
 0x636   :  { %v3940_v14 = vadd.f32 %v7928_v49, %v7894_v34  ;;  %v3984_v34 = vpop.f32.mrf.mxu1 }
 0x637   :  { %v3741_v25 = vpop.f32.mrf.mxu0 }
 0x638   :  { %v3935_v11 = vadd.f32 %v3934_v31, %v3741_v25  ;;  %v4018_v33 = vmul.f32 0.5, %v3940_v14 }
 0x639   :  { %v7897_v42 = vpop.f32.mrf.mxu0 }
 0x63a   :  { %v3950_v27 = vadd.f32 %v7931_v28, %v7897_v42  ;;  %v4017_v35 = vmul.f32 0.5, %v3935_v11  ;;  %8612 = vtanh.f32 %v4018_v33  ;;  %v7946_v42 = vpop.f32.mrf.mxu1 }
 0x63b   :  { %v3751_v44 = vpop.f32.mrf.mxu0 }
 0x63c   :  { %v3945_v2 = vadd.f32 %v3944_v26, %v3751_v44  ;;  %v4020_v1 = vmul.f32 0.5, %v3950_v27  ;;  %8614 = vtanh.f32 %v4017_v35 }
 0x63d   :  { %v7900_v8 = vpop.f32.mrf.mxu0 }
 0x63e   :  { %v3960_v7 = vadd.f32 %v7934_v53, %v7900_v8  ;;  %v4019_v43 = vmul.f32 0.5, %v3945_v2 }
 0x63f   :  { %v3761_v24 = vpop.f32.mrf.mxu0 }
 0x640   :  { %v4034_v56 = vmul.f32 0.5, %v3960_v7  ;;  %v3955_v51 = vadd.f32 %v3954_v4, %v3761_v24 }
 0x641   :  { %v7903_v18 = vpop.f32.mrf.mxu0 }
 0x642   :  { %8616 = vtanh.f32 %v4034_v56  ;;  %v4033_v49 = vmul.f32 0.5, %v3955_v51  ;;  %v3970_v31 = vadd.f32 %v7937_v36, %v7903_v18  ;;  %v3994_v18 = vpop.f32.mrf.mxu1 }
 0x643   :  { %8618 = vtanh.f32 %v4020_v1  ;;  %v3771_v28 = vpop.f32.mrf.mxu0 }
 0x644   :  { %8620 = vtanh.f32 %v4033_v49  ;;  %v4036_v25 = vmul.f32 0.5, %v3970_v31  ;;  %v3965_v26 = vadd.f32 %v3964_v22, %v3771_v28  ;;  %v7949_v2 = vpop.f32.mrf.mxu1 }
 0x645   :  { %8622 = vtanh.f32 %v4019_v43  ;;  %v7906_v53 = vpop.f32.mrf.mxu0 }
 0x646   :  { %8624 = vtanh.f32 %v4036_v25  ;;  %v4035_v14 = vmul.f32 0.5, %v3965_v26  ;;  %v3980_v11 = vadd.f32 %v7940_v45, %v7906_v53 }
 0x647   :  { %v3781_v27 = vpop.f32.mrf.mxu0  ;;  %v8613_v33 = vpop.eup %8612 }
 0x648   :  { %8626 = vtanh.f32 %v4035_v14  ;;  %v3975_v4 = vadd.f32 %v3974_v19, %v3781_v27  ;;  %v4026_v31 = vmul.f32 0.5, %v8613_v33 }
 0x649   :  { %8628 = vtanh.f32 %v3980_v11  ;;  %v7909_v44 = vpop.f32.mrf.mxu0  ;;  %v8615_v22 = vpop.eup %8614 }
 0x64a   :  { %8630 = vtanh.f32 %v3975_v4  ;;  %v3990_v51 = vadd.f32 %v7943_v0, %v7909_v44  ;;  %v4025_v25 = vmul.f32 0.5, %v8615_v22 }
 0x64b   :  { %v3791_v56 = vpop.f32.mrf.mxu0 }
 0x64c   :  { %8632 = vtanh.f32 %v3990_v51  ;;  %v3985_v36 = vadd.f32 %v3984_v34, %v3791_v56  ;;  %v4004_v34 = vpop.f32.mrf.mxu1  ;;  %v4029_v22 = vadd.f32 0.5, %v4025_v25 }
 0x64d   :  { %v7912_v35 = vpop.f32.mrf.mxu0 }
 0x64e   :  { %8634 = vtanh.f32 %v3985_v36  ;;  %v4000_v43 = vadd.f32 %v7946_v42, %v7912_v35  ;;  %v4030_v36 = vadd.f32 0.5, %v4026_v31 }
 0x64f   :  { %v8617_v8 = vpop.eup %8616  ;;  %v3801_v45 = vpop.f32.mrf.mxu0 }
 0x650   :  { %v8619_v7 = vpop.eup %8618  ;;  %v4042_v1 = vmul.f32 0.5, %v8617_v8  ;;  %v4054_v24 = vmul.f32 0.5, %v4000_v43  ;;  %v3995_v19 = vadd.f32 %v3994_v18, %v3801_v45 }
 0x651   :  { %v8621_v49 = vpop.eup %8620  ;;  %v7915_v28 = vpop.f32.mrf.mxu0  ;;  %v4028_v4 = vmul.f32 0.5, %v8619_v7 }
 0x652   :  { %v8623_v0 = vpop.eup %8622  ;;  %v4041_v26 = vmul.f32 0.5, %v8621_v49  ;;  %v4053_v53 = vmul.f32 0.5, %v3995_v19  ;;  %v4046_v11 = vadd.f32 0.5, %v4042_v1  ;;  %8636 = vtanh.f32 %v4054_v24 }
 0x653   :  { %v8625_v14 = vpop.eup %8624  ;;  %v4010_v27 = vadd.f32 %v7949_v2, %v7915_v28  ;;  %v3811_v42 = vpop.f32.mrf.mxu0  ;;  %v4027_v18 = vmul.f32 0.5, %v8623_v0  ;;  %v4032_v28 = vadd.f32 0.5, %v4028_v4 }
 0x654   :  { %v4045_v44 = vadd.f32 0.5, %v4041_v26  ;;  %v4044_v51 = vmul.f32 0.5, %v8625_v14  ;;  %8638 = vtanh.f32 %v4053_v53  ;;  %v4005_v33 = vadd.f32 %v4004_v34, %v3811_v42 }
 0x655   :  { %v8627_v56 = vpop.eup %8626  ;;  %v4056_v35 = vmul.f32 0.5, %v4010_v27  ;;  %v7962_v43 = vpop.f32.mrf.mxu0  ;;  %v4070_v1 = vmul.f32 %v4046_v11, %v10218_v13  ;;  %v4031_v34 = vadd.f32 0.5, %v4027_v18 }
 0x656   :  { %v8629_v8 = vpop.eup %8628  ;;  %v4048_v45 = vadd.f32 0.5, %v4044_v51  ;;  %v4043_v19 = vmul.f32 0.5, %v8627_v56  ;;  %v4344_v49 = vmul.f32 0.5, %v7962_v43  ;;  %v4055_v7 = vmul.f32 0.5, %v4005_v33 }
 0x657   :  { %v8631_v32 = vpop.eup %8630  ;;  %v4074_v2 = vmul.f32 %v8629_v8, %v4030_v36  ;;  %8640 = vtanh.f32 %v4056_v35  ;;  %v4260_v24 = vpop.f32.mrf.mxu0  ;;  %v4069_v26 = vmul.f32 %v4045_v44, %v10221_v54 }
 0x658   :  { %v4047_v31 = vadd.f32 0.5, %v4043_v19  ;;  %v4073_v0 = vmul.f32 %v8631_v32, %v4029_v22  ;;  %8642 = vtanh.f32 %v4055_v7  ;;  %v4343_v25 = vmul.f32 0.5, %v4260_v24 }
 0x659   :  { %v8633_v53 = vpop.eup %8632  ;;  %v10517_v14 = vadd.f32 %v4074_v2, %v4070_v1  ;;  %v7965_v27 = vpop.f32.mrf.mxu0  ;;  %v4072_v42 = vmul.f32 %v4048_v45, %v10226_v29  ;;  %8644 = vtanh.f32 %v4344_v49 }
 0x65a   :  { %v10520_v51 = vadd.f32 %v4073_v0, %v4069_v26  ;;  %v4076_v13 = vmul.f32 %v8633_v53, %v4032_v28  ;;  %v4346_v4 = vmul.f32 0.5, %v7965_v27  ;;  %v4071_v32 = vmul.f32 %v4047_v31, %v10229_v40 }
 0x65b   :  { %v8635_v11 = vpop.eup %8634  ;;  %8646 = vtanh.f32 %v10517_v14  ;;  %v4270_v54 = vpop.f32.mrf.mxu0 }
 0x65c   :  { %8648 = vtanh.f32 %v10520_v51  ;;  %v10525_v44 = vadd.f32 %v4076_v13, %v4072_v42  ;;  %v4075_v56 = vmul.f32 %v8635_v11, %v4031_v34  ;;  %v4345_v36 = vmul.f32 0.5, %v4270_v54 }
 0x65d   :  { %8650 = vtanh.f32 %v4343_v25  ;;  %v7968_v18 = vpop.f32.mrf.mxu0 }
 0x65e   :  { %8652 = vtanh.f32 %v10525_v44  ;;  %v10528_v29 = vadd.f32 %v4075_v56, %v4071_v32  ;;  %v4360_v35 = vmul.f32 0.5, %v7968_v18 }
 0x65f   :  { %8654 = vtanh.f32 %v4346_v4  ;;  %v4280_v33 = vpop.f32.mrf.mxu0  ;;  %v8637_v43 = vpop.eup %8636 }
 0x660   :  { %8656 = vtanh.f32 %v10528_v29  ;;  %v4359_v8 = vmul.f32 0.5, %v4280_v33  ;;  %v4062_v19 = vmul.f32 0.5, %v8637_v43 }
 0x661   :  { %v8639_v40 = vpop.eup %8638  ;;  %8658 = vtanh.f32 %v4345_v36  ;;  %v7971_v22 = vpop.f32.mrf.mxu0 }
 0x662   :  { %8660 = vtanh.f32 %v4360_v35  ;;  %v4362_v45 = vmul.f32 0.5, %v7971_v22  ;;  %v4061_v2 = vmul.f32 0.5, %v8639_v40  ;;  %v4066_v0 = vadd.f32 0.5, %v4062_v19 }
 0x663   :  { %8662 = vtanh.f32 %v4359_v8  ;;  %v4290_v49 = vpop.f32.mrf.mxu0 }
 0x664   :  { %v8641_v1 = vpop.eup %8640  ;;  %8664 = vtanh.f32 %v4362_v45  ;;  %v4361_v7 = vmul.f32 0.5, %v4290_v49  ;;  %v4065_v25 = vadd.f32 0.5, %v4061_v2 }
 0x665   :  { %v7974_v24 = vpop.f32.mrf.mxu0  ;;  %v8643_v28 = vpop.eup %8642  ;;  %v4064_v26 = vmul.f32 0.5, %v8641_v1 }
 0x666   :  { %8666 = vtanh.f32 %v4361_v7  ;;  %v8645_v31 = vpop.eup %8644  ;;  %v4063_v27 = vmul.f32 0.5, %v8643_v28 }
 0x667   :  { %8668 = vtanh.f32 %v7974_v24  ;;  %v4300_v53 = vpop.f32.mrf.mxu0  ;;  %v4068_v32 = vadd.f32 0.5, %v4064_v26  ;;  %v4352_v19 = vmul.f32 0.5, %v8645_v31 }
 0x668   :  { %v8647_v34 = vpop.eup %8646  ;;  %8670 = vtanh.f32 %v4300_v53  ;;  %v4067_v33 = vadd.f32 0.5, %v4063_v27 }
 0x669   :  { %v8649_v42 = vpop.eup %8648  ;;  %v4086_v13 = vmul.f32 %v8647_v34, %v4066_v0  ;;  %v7977_v11 = vpop.f32.mrf.mxu0  ;;  %v4356_v27 = vadd.f32 0.5, %v4352_v19 }
 0x66a   :  { %v8651_v4 = vpop.eup %8650  ;;  %v4085_v54 = vmul.f32 %v8649_v42, %v4065_v25  ;;  %8672 = vtanh.f32 %v7977_v11 }
 0x66b   :  { %v8653_v56 = vpop.eup %8652  ;;  %6795 = vst [vmem:[%s11155_s4 + $0x88] sm:$0xff] %v4086_v13  ;;  %v4310_v36 = vpop.f32.mrf.mxu0  ;;  %v4351_v24 = vmul.f32 0.5, %v8651_v4 }
 0x66c   :  { %v8655_v18 = vpop.eup %8654  ;;  %6794 = vst [vmem:[%s11155_s4 + $0x80] sm:$0xff] %v4085_v54  ;;  %v4088_v35 = vmul.f32 %v8653_v56, %v4068_v32  ;;  %8674 = vtanh.f32 %v4310_v36 }
 0x66d   :  { %v8657_v43 = vpop.eup %8656  ;;  %v7980_v8 = vpop.f32.mrf.mxu0  ;;  %v4354_v28 = vmul.f32 0.5, %v8655_v18  ;;  %v4355_v18 = vadd.f32 0.5, %v4351_v24 }
 0x66e   :  { %v8659_v40 = vpop.eup %8658  ;;  %6797 = vst [vmem:[%s11155_s4 + $0x98] sm:$0xff] %v4088_v35  ;;  %v4087_v22 = vmul.f32 %v8657_v43, %v4067_v33  ;;  %8018 = vmatprep.subr.mxu0 %v4088_v35  ;;  %v4380_v34 = vmul.f32 0.5, %v7980_v8 }
 0x66f   :  { %v8661_v45 = vpop.eup %8660  ;;  %v4320_v49 = vpop.f32.mrf.mxu0  ;;  %8019 = vmatpush3.msra.mxu0 %v4088_v35  ;;  %v4353_v56 = vmul.f32 0.5, %v8659_v40  ;;  %v4358_v8 = vadd.f32 0.5, %v4354_v28 }
 0x670   :  { %v8663_v1 = vpop.eup %8662  ;;  %6796 = vst [vmem:[%s11155_s4 + $0x90] sm:$0xff] %v4087_v22  ;;  %v4368_v2 = vmul.f32 0.5, %v8661_v45  ;;  %8020 = vmatprep.subr.mxu0 %v4087_v22  ;;  %v4379_v43 = vmul.f32 0.5, %v4320_v49 }
 0x671   :  { %v8665_v7 = vpop.eup %8664  ;;  %v7983_v26 = vpop.f32.mrf.mxu0  ;;  %8021 = vmatpush3.msra.mxu0 %v4087_v22  ;;  %v4367_v0 = vmul.f32 0.5, %v8663_v1  ;;  %v4357_v19 = vadd.f32 0.5, %v4353_v56  ;;  %v10692_v56 = vld [vmem:[%s11152_s1 + $0x50] sm:$0xff] }
 0x672   :  { %v4370_v53 = vmul.f32 0.5, %v8665_v7  ;;  %v4382_v25 = vmul.f32 0.5, %v7983_v26  ;;  %8022 = vmatprep.subr.mxu0 %v4086_v13  ;;  %v4372_v42 = vadd.f32 0.5, %v4368_v2 }
 0x673   :  { %v8667_v31 = vpop.eup %8666  ;;  %v4330_v11 = vpop.f32.mrf.mxu0  ;;  %8023 = vmatpush3.msra.mxu0 %v4086_v13  ;;  %v4371_v45 = vadd.f32 0.5, %v4367_v0 }
 0x674   :  { %v8669_v32 = vpop.eup %8668  ;;  %v4374_v36 = vadd.f32 0.5, %v4370_v53  ;;  %v4369_v35 = vmul.f32 0.5, %v8667_v31  ;;  %8676 = vtanh.f32 %v4382_v25  ;;  %8024 = vmatprep.subr.mxu0 %v4085_v54  ;;  %v4381_v22 = vmul.f32 0.5, %v4330_v11 }
 0x675   :  { %v8671_v4 = vpop.eup %8670  ;;  %v4400_v33 = vmul.f32 %v8669_v32, %v4356_v27  ;;  %8025 = vmatpush3.msra.mxu0 %v4085_v54  ;;  %8678 = vtanh.f32 %v4380_v34  ;;  %v4396_v40 = vmul.f32 %v4372_v42, %v10270_v47  ;;  %v4395_v28 = vmul.f32 %v4371_v45, %v10285_v59 }
 0x676   :  { %v4373_v1 = vadd.f32 0.5, %v4369_v35  ;;  %8027 = vmatmul.mubr.msk.f32.vlgmr.msra.gmra.mxu0 %vm85_vm0, %v10247_v10  ;;  %8680 = vtanh.f32 %v4381_v22  ;;  %v4398_v2 = vmul.f32 %v4374_v36, %v10274_v60  ;;  %v4399_v49 = vmul.f32 %v8671_v4, %v4355_v18  ;;  %v10701_v36 = vld [vmem:[%s11152_s1 + $0x58] sm:$0xff]  ;;  %v10706_v35 = vld [vmem:[%s11152_s1 + $0x60] sm:$0xff]  ;;  %v10715_v4 = vld [vmem:[%s11152_s1 + $0x68] sm:$0xff] }
 0x677   :  { %v8673_v13 = vpop.eup %8672  ;;  %8029 = vmatprep.mubr.msk.f32.mxu0 %vm85_vm0, %v10252_v55  ;;  %v10549_v24 = vadd.f32 %v4400_v33, %v4396_v40  ;;  %8682 = vtanh.f32 %v4379_v43  ;;  %v10720_v18 = vld [vmem:[%s11152_s1 + $0x70] sm:$0xff]  ;;  %v10729_v33 = vld [vmem:[%s11152_s1 + $0x78] sm:$0xff]  ;;  %v10733_v43 = vld [vmem:[#allocation3 + $0x18] sm:$0xff] }
 0x678   :  { %v4402_v7 = vmul.f32 %v8673_v13, %v4358_v8  ;;  %v4397_v10 = vmul.f32 %v4373_v1, %v10287_v23  ;;  %v10559_v55 = vadd.f32 %v4399_v49, %v4395_v28  ;;  %v10740_v22 = vld [vmem:[%s11153_s3] sm:$0xff] }
 0x679   :  { %v8675_v54 = vpop.eup %8674  ;;  %v10745_v8 = vld [vmem:[%s11154_s2] sm:$0xff] }
 0x67a   :  { %v10553_v26 = vadd.f32 %v4402_v7, %v4398_v2  ;;  %v4401_v47 = vmul.f32 %v8675_v54, %v4357_v19  ;;  %8030 = vmatmul.mubr.msk.f32.gmra.mxu0 %vm85_vm0, %v10262_v58 }
 0x67b   :  { %8032 = vmatprep.mubr.msk.f32.mxu0 %vm85_vm0, %v10268_v37 }
 0x67c   :  { %v10561_v60 = vadd.f32 %v4401_v47, %v4397_v10  ;;  %8684 = vtanh.f32 %v10553_v26 }
 0x67d   :  { %8686 = vtanh.f32 %v10549_v24 }
 0x67e   :  { %8688 = vtanh.f32 %v10561_v60  ;;  %8033 = vmatmul.mubr.msk.f32.gmra.mxu0 %vm85_vm0, %v10283_v39 }
 0x67f   :  { %8035 = vmatprep.mubr.msk.f32.mxu0 %vm85_vm0, %v10293_v16  ;;  %8690 = vtanh.f32 %v10559_v55 }
 0x681   :  { %v8677_v58 = vpop.eup %8676 }
 0x682   :  { %v4390_v37 = vmul.f32 0.5, %v8677_v58  ;;  %8036 = vmatmul.mubr.msk.f32.gmra.mxu0 %vm85_vm0, %v10304_v3  ;;  %v8679_v59 = vpop.eup %8678 }
 0x683   :  { %8038 = vmatprep.mubr.msk.f32.mxu0 %vm85_vm0, %v10310_v20  ;;  %v8681_v23 = vpop.eup %8680  ;;  %v4388_v53 = vmul.f32 0.5, %v8679_v59 }
 0x684   :  { %v8683_v0 = vpop.eup %8682  ;;  %v4394_v34 = vadd.f32 0.5, %v4390_v37  ;;  %v4389_v25 = vmul.f32 0.5, %v8681_v23 }
 0x685   :  { %v4392_v31 = vadd.f32 0.5, %v4388_v53  ;;  %v4387_v27 = vmul.f32 0.5, %v8683_v0 }
 0x686   :  { %8039 = vmatmul.mubr.msk.f32.gmra.mxu0 %vm85_vm0, %v10319_v48  ;;  %v4393_v3 = vadd.f32 0.5, %v4389_v25 }
 0x687   :  { %8041 = vmatprep.mubr.msk.f32.mxu0 %vm85_vm0, %v10324_v41  ;;  %v4391_v48 = vadd.f32 0.5, %v4387_v27 }
 0x689   :  { %v8685_v39 = vpop.eup %8684 }
 0x68a   :  { %v8687_v16 = vpop.eup %8686  ;;  %v4414_v42 = vmul.f32 %v8685_v39, %v4394_v34  ;;  %8042 = vmatmul.mubr.msk.f32.gmra.mxu0 %vm85_vm0, %v10333_v9 }
 0x68b   :  { %v8689_v20 = vpop.eup %8688  ;;  %8044 = vmatprep.mubr.msk.f32.mxu0 %vm85_vm0, %v10338_v50  ;;  %v4412_v41 = vmul.f32 %v8687_v16, %v4392_v31  ;;  %v11239_v50 = vld [vmem:[#allocation14_spill] sm:$0xff] }
 0x68c   :  { %7984 = vmatprep.subr.mxu1 %v4414_v42  ;;  %v4413_v11 = vmul.f32 %v8689_v20, %v4393_v3  ;;  %v8691_v32 = vpop.eup %8690 }
 0x68d   :  { %7985 = vmatpush3.msra.mxu1 %v4414_v42  ;;  %v4411_v9 = vmul.f32 %v8691_v32, %v4391_v48 }
 0x68e   :  { %7986 = vmatprep.subr.mxu1 %v4413_v11  ;;  %8045 = vmatmul.mubr.msk.f32.gmra.mxu0 %vm85_vm0, %v10347_v12  ;;  %v11240_v12 = vld [vmem:[#allocation15_spill] sm:$0xff] }
 0x68f   :  { %7987 = vmatpush3.msra.mxu1 %v4413_v11  ;;  %8047 = vmatprep.mubr.msk.f32.mxu0 %vm85_vm0, %v10352_v6  ;;  %v11241_v6 = vld [vmem:[#allocation16_spill] sm:$0xff] }
 0x690   :  { %7988 = vmatprep.subr.mxu1 %v4412_v41 }
 0x691   :  { %7989 = vmatpush3.msra.mxu1 %v4412_v41 }
 0x692   :  { %7990 = vmatprep.subr.mxu1 %v4411_v9  ;;  %8048 = vmatmul.mubr.msk.f32.gmra.mxu0 %vm85_vm0, %v10361_v62  ;;  %v11242_v62 = vld [vmem:[#allocation17_spill] sm:$0xff] }
 0x693   :  { %7991 = vmatpush3.msra.mxu1 %v4411_v9  ;;  %8092 = vmatprep.mubr.msk.f32.mxu0 %vm379_vm1, %v10740_v22 }
 0x694   :  { %7993 = vmatmul.mubr.msk.f32.vlgmr.msra.gmra.mxu1 %vm379_vm1, %v10366_v57  ;;  %8050 = vmatprep.subr.mxu1 %v10510_v46  ;;  %v10622_v57 = vld [vmem:[%s11152_s1] sm:$0xff] }
 0x695   :  { %8051 = vmatpush3.msra.mxu1 %v10510_v46  ;;  %7995 = vmatprep.mubr.msk.f32.mxu1 %vm379_vm1, %v10371_v61  ;;  %v11243_v61 = vld [vmem:[#allocation18_spill] sm:$0xff]  ;;  %v10687_v46 = vld [vmem:[%s11152_s1 + $0x48] sm:$0xff] }
 0x696   :  { %8052 = vmatprep.subr.mxu1 %v4414_v42 }
 0x697   :  { %8053 = vmatpush3.msra.mxu1 %v4414_v42 }
 0x698   :  { %7996 = vmatmul.mubr.msk.f32.gmra.mxu1 %vm379_vm1, %v10386_v38  ;;  %8054 = vmatprep.subr.mxu1 %v4413_v11  ;;  %v10631_v38 = vld [vmem:[%s11152_s1 + $0x8] sm:$0xff] }
 0x699   :  { %8055 = vmatpush3.msra.mxu1 %v4413_v11  ;;  %7998 = vmatprep.mubr.msk.f32.mxu1 %vm379_vm1, %v10391_v30  ;;  %v10636_v30 = vld [vmem:[%s11152_s1 + $0x10] sm:$0xff] }
 0x69a   :  { %8056 = vmatprep.subr.mxu1 %v4412_v41 }
 0x69b   :  { %8057 = vmatpush3.msra.mxu1 %v4412_v41 }
 0x69c   :  { %7999 = vmatmul.mubr.msk.f32.gmra.mxu1 %vm379_vm1, %v10400_v17  ;;  %8058 = vmatprep.subr.mxu1 %v4411_v9  ;;  %v10645_v17 = vld [vmem:[%s11152_s1 + $0x18] sm:$0xff] }
 0x69d   :  { %8059 = vmatpush3.msra.mxu1 %v4411_v9  ;;  %8001 = vmatprep.mubr.msk.f32.mxu1 %vm379_vm1, %v10405_v52  ;;  %v10650_v52 = vld [vmem:[%s11152_s1 + $0x20] sm:$0xff] }
 0x69e   :  { %8116 = vmatprep.subr.mxu1 %v10733_v43 }
 0x6a0   :  { %8002 = vmatmul.mubr.msk.f32.gmra.mxu1 %vm379_vm1, %v10414_v5  ;;  %v10659_v5 = vld [vmem:[%s11152_s1 + $0x28] sm:$0xff] }
 0x6a1   :  { %8004 = vmatprep.mubr.msk.f32.mxu1 %vm379_vm1, %v10419_v63  ;;  %v10664_v63 = vld [vmem:[%s11152_s1 + $0x30] sm:$0xff] }
 0x6a4   :  { %8005 = vmatmul.mubr.msk.f32.gmra.mxu1 %vm379_vm1, %v10429_v21  ;;  %v10673_v21 = vld [vmem:[%s11152_s1 + $0x38] sm:$0xff] }
 0x6a5   :  { %8007 = vmatprep.mubr.msk.f32.mxu1 %vm379_vm1, %v10434_v15  ;;  %v10678_v15 = vld [vmem:[%s11152_s1 + $0x40] sm:$0xff] }
 0x6a8   :  { %8008 = vmatmul.mubr.msk.f32.gmra.mxu1 %vm379_vm1, %v11239_v50 }
 0x6a9   :  { %8010 = vmatprep.mubr.msk.f32.mxu1 %vm379_vm1, %v11240_v12 }
 0x6ac   :  { %8011 = vmatmul.mubr.msk.f32.gmra.mxu1 %vm379_vm1, %v11241_v6 }
 0x6ad   :  { %8013 = vmatprep.mubr.msk.f32.mxu1 %vm379_vm1, %v11242_v62 }
 0x6b0   :  { %8014 = vmatmul.mubr.msk.f32.gmra.mxu1 %vm379_vm1, %v11243_v61 }
 0x6b1   :  { %8060 = vmatprep.mubr.msk.f32.mxu1 %vm85_vm0, %v10622_v57 }
 0x6b4   :  { %8061 = vmatmul.mubr.msk.f32.vlgmr.msra.gmra.mxu1 %vm85_vm0, %v10631_v38 }
 0x6b5   :  { %8063 = vmatprep.mubr.msk.f32.mxu1 %vm85_vm0, %v10636_v30  ;;  %8117 = vmatpush3.msra.mxu1 %v10733_v43 }
 0x6b8   :  { %8064 = vmatmul.mubr.msk.f32.gmra.mxu1 %vm85_vm0, %v10645_v17 }
 0x6b9   :  { %8066 = vmatprep.mubr.msk.f32.mxu1 %vm85_vm0, %v10650_v52 }
 0x6bc   :  { %8067 = vmatmul.mubr.msk.f32.gmra.mxu1 %vm85_vm0, %v10659_v5 }
 0x6bd   :  { %8069 = vmatprep.mubr.msk.f32.mxu1 %vm85_vm0, %v10664_v63 }
 0x6c0   :  { %8070 = vmatmul.mubr.msk.f32.gmra.mxu1 %vm85_vm0, %v10673_v21 }
 0x6c1   :  { %8072 = vmatprep.mubr.msk.f32.mxu1 %vm85_vm0, %v10678_v15 }
 0x6c4   :  { %8073 = vmatmul.mubr.msk.f32.gmra.mxu1 %vm85_vm0, %v10687_v46 }
 0x6c5   :  { %8075 = vmatprep.mubr.msk.f32.mxu1 %vm85_vm0, %v10692_v56 }
 0x6c8   :  { %8076 = vmatmul.mubr.msk.f32.gmra.mxu1 %vm85_vm0, %v10701_v36 }
 0x6c9   :  { %8078 = vmatprep.mubr.msk.f32.mxu1 %vm85_vm0, %v10706_v35 }
 0x6cc   :  { %8079 = vmatmul.mubr.msk.f32.gmra.mxu1 %vm85_vm0, %v10715_v4 }
 0x6cd   :  { %8081 = vmatprep.mubr.msk.f32.mxu1 %vm85_vm0, %v10720_v18 }
 0x6d0   :  { %8082 = vmatmul.mubr.msk.f32.gmra.mxu1 %vm85_vm0, %v10729_v33 }
 0x6d1   :  { %8126 = vmatprep.mubr.msk.f32.mxu1 %vm85_vm0, %v10745_v8 }
 0x736   :  { %v8028_v45 = vpop.f32.mrf.mxu0 }
 0x738   :  { %v4746_v1 = vpop.f32.mrf.mxu0 }
 0x73a   :  { %v8031_v13 = vpop.f32.mrf.mxu0 }
 0x73c   :  { %v4756_v40 = vpop.f32.mrf.mxu0 }
 0x73e   :  { %v8034_v19 = vpop.f32.mrf.mxu0 }
 0x740   :  { %v4766_v2 = vpop.f32.mrf.mxu0 }
 0x742   :  { %v8037_v49 = vpop.f32.mrf.mxu0 }
 0x744   :  { %v4776_v7 = vpop.f32.mrf.mxu0 }
 0x746   :  { %v8040_v28 = vpop.f32.mrf.mxu0 }
 0x748   :  { %v4786_v59 = vpop.f32.mrf.mxu0 }
 0x74a   :  { %v8043_v31 = vpop.f32.mrf.mxu0 }
 0x74c   :  { %v4796_v9 = vpop.f32.mrf.mxu0 }
 0x754   :  { %v7994_v54 = vpop.f32.mrf.mxu1 }
 0x755   :  { %v4752_v47 = vadd.f32 %v8028_v45, %v7994_v54 }
 0x756   :  { %v4553_v10 = vpop.f32.mrf.mxu1 }
 0x757   :  { %v4747_v58 = vadd.f32 %v4746_v1, %v4553_v10  ;;  %v4830_v53 = vmul.f32 0.5, %v4752_v47  ;;  %v8046_v1 = vpop.f32.mrf.mxu0 }
 0x758   :  { %v7997_v37 = vpop.f32.mrf.mxu1 }
 0x759   :  { %v4762_v23 = vadd.f32 %v8031_v13, %v7997_v37  ;;  %v4829_v34 = vmul.f32 0.5, %v4747_v58  ;;  %8692 = vtanh.f32 %v4830_v53 }
 0x75a   :  { %v4563_v0 = vpop.f32.mrf.mxu1 }
 0x75b   :  { %v4757_v25 = vadd.f32 %v4756_v40, %v4563_v0  ;;  %v4832_v27 = vmul.f32 0.5, %v4762_v23  ;;  %8694 = vtanh.f32 %v4829_v34 }
 0x75c   :  { %v8000_v39 = vpop.f32.mrf.mxu1 }
 0x75d   :  { %v4772_v16 = vadd.f32 %v8034_v19, %v8000_v39  ;;  %v4831_v11 = vmul.f32 0.5, %v4757_v25 }
 0x75e   :  { %v4573_v3 = vpop.f32.mrf.mxu1 }
 0x75f   :  { %v4846_v42 = vmul.f32 0.5, %v4772_v16  ;;  %v4767_v20 = vadd.f32 %v4766_v2, %v4573_v3 }
 0x760   :  { %v8003_v32 = vpop.f32.mrf.mxu1 }
 0x761   :  { %8696 = vtanh.f32 %v4846_v42  ;;  %v4845_v48 = vmul.f32 0.5, %v4767_v20  ;;  %v4782_v41 = vadd.f32 %v8037_v49, %v8003_v32  ;;  %v4806_v49 = vpop.f32.mrf.mxu0 }
 0x762   :  { %8698 = vtanh.f32 %v4832_v27  ;;  %v4583_v50 = vpop.f32.mrf.mxu1 }
 0x763   :  { %8700 = vtanh.f32 %v4845_v48  ;;  %v4848_v12 = vmul.f32 0.5, %v4782_v41  ;;  %v4777_v6 = vadd.f32 %v4776_v7, %v4583_v50  ;;  %v8049_v23 = vpop.f32.mrf.mxu0 }
 0x764   :  { %8702 = vtanh.f32 %v4831_v11  ;;  %v8006_v62 = vpop.f32.mrf.mxu1 }
 0x765   :  { %8704 = vtanh.f32 %v4848_v12  ;;  %v4847_v61 = vmul.f32 0.5, %v4777_v6  ;;  %v4792_v45 = vadd.f32 %v8040_v28, %v8006_v62  ;;  %v4816_v11 = vpop.f32.mrf.mxu0 }
 0x766   :  { %v4593_v13 = vpop.f32.mrf.mxu1  ;;  %v8693_v47 = vpop.eup %8692 }
 0x767   :  { %8706 = vtanh.f32 %v4847_v61  ;;  %v4787_v40 = vadd.f32 %v4786_v59, %v4593_v13  ;;  %v4838_v16 = vmul.f32 0.5, %v8693_v47 }
 0x768   :  { %8708 = vtanh.f32 %v4792_v45  ;;  %v8009_v19 = vpop.f32.mrf.mxu1  ;;  %v8695_v7 = vpop.eup %8694 }
 0x769   :  { %8710 = vtanh.f32 %v4787_v40  ;;  %v4802_v2 = vadd.f32 %v8043_v31, %v8009_v19  ;;  %v4837_v3 = vmul.f32 0.5, %v8695_v7  ;;  %v4842_v61 = vadd.f32 0.5, %v4838_v16 }
 0x76a   :  { %v4603_v54 = vpop.f32.mrf.mxu1 }
 0x76b   :  { %8712 = vtanh.f32 %v4802_v2  ;;  %v4797_v10 = vadd.f32 %v4796_v9, %v4603_v54  ;;  %v4841_v2 = vadd.f32 0.5, %v4837_v3 }
 0x76c   :  { %v8012_v58 = vpop.f32.mrf.mxu1 }
 0x76d   :  { %8714 = vtanh.f32 %v4797_v10  ;;  %v4812_v37 = vadd.f32 %v8046_v1, %v8012_v58 }
 0x76e   :  { %v8697_v0 = vpop.eup %8696  ;;  %v4613_v28 = vpop.f32.mrf.mxu1 }
 0x76f   :  { %v8699_v53 = vpop.eup %8698  ;;  %v4854_v34 = vmul.f32 0.5, %v8697_v0  ;;  %v4866_v25 = vmul.f32 0.5, %v4812_v37  ;;  %v4807_v59 = vadd.f32 %v4806_v49, %v4613_v28 }
 0x770   :  { %v8701_v39 = vpop.eup %8700  ;;  %v8015_v27 = vpop.f32.mrf.mxu1  ;;  %v4840_v50 = vmul.f32 0.5, %v8699_v53 }
 0x771   :  { %v8703_v31 = vpop.eup %8702  ;;  %v4853_v42 = vmul.f32 0.5, %v8701_v39  ;;  %v4865_v20 = vmul.f32 0.5, %v4807_v59  ;;  %v4858_v48 = vadd.f32 0.5, %v4854_v34  ;;  %8716 = vtanh.f32 %v4866_v25 }
 0x772   :  { %v8705_v32 = vpop.eup %8704  ;;  %v4822_v41 = vadd.f32 %v8049_v23, %v8015_v27  ;;  %v4623_v9 = vpop.f32.mrf.mxu1  ;;  %v4839_v45 = vmul.f32 0.5, %v8703_v31  ;;  %v4844_v0 = vadd.f32 0.5, %v4840_v50 }
 0x773   :  { %v4857_v12 = vadd.f32 0.5, %v4853_v42  ;;  %v4856_v6 = vmul.f32 0.5, %v8705_v32  ;;  %8718 = vtanh.f32 %v4865_v20  ;;  %v4817_v13 = vadd.f32 %v4816_v11, %v4623_v9 }
 0x774   :  { %v8707_v62 = vpop.eup %8706  ;;  %v4868_v1 = vmul.f32 0.5, %v4822_v41  ;;  %v8062_v40 = vpop.f32.mrf.mxu1  ;;  %v4882_v58 = vmul.f32 %v4858_v48, %v10517_v14  ;;  %v4843_v59 = vadd.f32 0.5, %v4839_v45 }
 0x775   :  { %v8709_v19 = vpop.eup %8708  ;;  %v4860_v49 = vadd.f32 0.5, %v4856_v6  ;;  %v4855_v54 = vmul.f32 0.5, %v8707_v62  ;;  %v5156_v10 = vmul.f32 0.5, %v8062_v40  ;;  %v4867_v37 = vmul.f32 0.5, %v4817_v13 }
 0x776   :  { %v8711_v47 = vpop.eup %8710  ;;  %v4886_v7 = vmul.f32 %v8709_v19, %v4842_v61  ;;  %8720 = vtanh.f32 %v4868_v1  ;;  %v5072_v23 = vpop.f32.mrf.mxu1  ;;  %v4881_v28 = vmul.f32 %v4857_v12, %v10520_v51 }
 0x777   :  { %v4859_v53 = vadd.f32 0.5, %v4855_v54  ;;  %v4885_v34 = vmul.f32 %v8711_v47, %v4841_v2  ;;  %8722 = vtanh.f32 %v4867_v37  ;;  %v5155_v16 = vmul.f32 0.5, %v5072_v23 }
 0x778   :  { %v8713_v25 = vpop.eup %8712  ;;  %v10753_v39 = vadd.f32 %v4886_v7, %v4882_v58  ;;  %v8065_v27 = vpop.f32.mrf.mxu1  ;;  %v4884_v31 = vmul.f32 %v4860_v49, %v10525_v44  ;;  %8724 = vtanh.f32 %v5156_v10 }
 0x779   :  { %v10756_v3 = vadd.f32 %v4885_v34, %v4881_v28  ;;  %v4888_v14 = vmul.f32 %v8713_v25, %v4844_v0  ;;  %v5158_v20 = vmul.f32 0.5, %v8065_v27  ;;  %v4883_v11 = vmul.f32 %v4859_v53, %v10528_v29 }
 0x77a   :  { %v8715_v42 = vpop.eup %8714  ;;  %8726 = vtanh.f32 %v10753_v39  ;;  %v5082_v51 = vpop.f32.mrf.mxu1 }
 0x77b   :  { %8728 = vtanh.f32 %v10756_v3  ;;  %v10761_v32 = vadd.f32 %v4888_v14, %v4884_v31  ;;  %v4887_v48 = vmul.f32 %v8715_v42, %v4843_v59  ;;  %v5157_v41 = vmul.f32 0.5, %v5082_v51 }
 0x77c   :  { %8730 = vtanh.f32 %v5155_v16  ;;  %v8068_v9 = vpop.f32.mrf.mxu1 }
 0x77d   :  { %8732 = vtanh.f32 %v10761_v32  ;;  %v10764_v44 = vadd.f32 %v4887_v48, %v4883_v11  ;;  %v5172_v50 = vmul.f32 0.5, %v8068_v9 }
 0x77e   :  { %8734 = vtanh.f32 %v5158_v20  ;;  %v5092_v12 = vpop.f32.mrf.mxu1  ;;  %v8717_v6 = vpop.eup %8716 }
 0x77f   :  { %8736 = vtanh.f32 %v10764_v44  ;;  %v5171_v62 = vmul.f32 0.5, %v5092_v12  ;;  %v4874_v1 = vmul.f32 0.5, %v8717_v6 }
 0x780   :  { %v8719_v29 = vpop.eup %8718  ;;  %8738 = vtanh.f32 %v5157_v41  ;;  %v8071_v61 = vpop.f32.mrf.mxu1 }
 0x781   :  { %8740 = vtanh.f32 %v5172_v50  ;;  %v5174_v45 = vmul.f32 0.5, %v8071_v61  ;;  %v4873_v19 = vmul.f32 0.5, %v8719_v29  ;;  %v4878_v58 = vadd.f32 0.5, %v4874_v1 }
 0x782   :  { %8742 = vtanh.f32 %v5171_v62  ;;  %v5102_v13 = vpop.f32.mrf.mxu1 }
 0x783   :  { %v8721_v40 = vpop.eup %8720  ;;  %8744 = vtanh.f32 %v5174_v45  ;;  %v5173_v2 = vmul.f32 0.5, %v5102_v13  ;;  %v4877_v23 = vadd.f32 0.5, %v4873_v19 }
 0x784   :  { %v8074_v49 = vpop.f32.mrf.mxu1  ;;  %v8723_v54 = vpop.eup %8722  ;;  %v4876_v10 = vmul.f32 0.5, %v8721_v40 }
 0x785   :  { %8746 = vtanh.f32 %v5173_v2  ;;  %v8725_v47 = vpop.eup %8724  ;;  %v4875_v0 = vmul.f32 0.5, %v8723_v54 }
 0x786   :  { %8748 = vtanh.f32 %v8074_v49  ;;  %v5112_v7 = vpop.f32.mrf.mxu1  ;;  %v4880_v16 = vadd.f32 0.5, %v4876_v10  ;;  %v5164_v50 = vmul.f32 0.5, %v8725_v47 }
 0x787   :  { %v8727_v37 = vpop.eup %8726  ;;  %8750 = vtanh.f32 %v5112_v7  ;;  %v4879_v20 = vadd.f32 0.5, %v4875_v0 }
 0x788   :  { %v8729_v28 = vpop.eup %8728  ;;  %v4898_v53 = vmul.f32 %v8727_v37, %v4878_v58  ;;  %v8077_v34 = vpop.f32.mrf.mxu1  ;;  %v5168_v54 = vadd.f32 0.5, %v5164_v50  ;;  %v10782_v58 = vld [vmem:[%s11154_s2 + $0x8] sm:$0xff]  ;;  %v10803_v50 = vld [vmem:[%s11154_s2 + $0x20] sm:$0xff] }
 0x789   :  { %v8731_v25 = vpop.eup %8730  ;;  %v4897_v59 = vmul.f32 %v8729_v28, %v4877_v23  ;;  %8752 = vtanh.f32 %v8077_v34  ;;  %v10787_v28 = vld [vmem:[%s11154_s2 + $0x10] sm:$0xff] }
 0x78a   :  { %v8733_v27 = vpop.eup %8732  ;;  %6847 = vst [vmem:[%s11155_s4 + $0xa8] sm:$0xff] %v4898_v53  ;;  %v5122_v31 = vpop.f32.mrf.mxu1  ;;  %v5163_v61 = vmul.f32 0.5, %v8731_v25 }
 0x78b   :  { %v8735_v14 = vpop.eup %8734  ;;  %6846 = vst [vmem:[%s11155_s4 + $0xa0] sm:$0xff] %v4897_v59  ;;  %v4900_v42 = vmul.f32 %v8733_v27, %v4880_v16  ;;  %8754 = vtanh.f32 %v5122_v31 }
 0x78c   :  { %v8737_v51 = vpop.eup %8736  ;;  %v8080_v11 = vpop.f32.mrf.mxu1  ;;  %v5166_v45 = vmul.f32 0.5, %v8735_v14  ;;  %v5167_v25 = vadd.f32 0.5, %v5163_v61 }
 0x78d   :  { %v8739_v48 = vpop.eup %8738  ;;  %6849 = vst [vmem:[%s11155_s4 + $0xb8] sm:$0xff] %v4900_v42  ;;  %v4899_v41 = vmul.f32 %v8737_v51, %v4879_v20  ;;  %8118 = vmatprep.subr.mxu1 %v4900_v42  ;;  %v5192_v19 = vmul.f32 0.5, %v8080_v11  ;;  %v10797_v11 = vld [vmem:[%s11154_s2 + $0x18] sm:$0xff] }
 0x78e   :  { %v8741_v9 = vpop.eup %8740  ;;  %v5132_v12 = vpop.f32.mrf.mxu1  ;;  %8119 = vmatpush3.msra.mxu1 %v4900_v42  ;;  %v5165_v37 = vmul.f32 0.5, %v8739_v48  ;;  %v5170_v31 = vadd.f32 0.5, %v5166_v45 }
 0x78f   :  { %v8743_v6 = vpop.eup %8742  ;;  %6848 = vst [vmem:[%s11155_s4 + $0xb0] sm:$0xff] %v4899_v41  ;;  %v5180_v62 = vmul.f32 0.5, %v8741_v9  ;;  %8120 = vmatprep.subr.mxu1 %v4899_v41 }
 0x790   :  { %v8745_v29 = vpop.eup %8744  ;;  %v8083_v1 = vpop.f32.mrf.mxu1  ;;  %8121 = vmatpush3.msra.mxu1 %v4899_v41  ;;  %v5179_v13 = vmul.f32 0.5, %v8743_v6 }
 0x791   :  { %v5182_v40 = vmul.f32 0.5, %v8745_v29  ;;  %v5194_v2 = vmul.f32 0.5, %v8083_v1  ;;  %8122 = vmatprep.subr.mxu1 %v4898_v53  ;;  %v5184_v10 = vadd.f32 0.5, %v5180_v62 }
 0x792   :  { %v8747_v49 = vpop.eup %8746  ;;  %v5142_v47 = vpop.f32.mrf.mxu1  ;;  %8123 = vmatpush3.msra.mxu1 %v4898_v53  ;;  %v5191_v53 = vmul.f32 0.5, %v5132_v12  ;;  %v5183_v14 = vadd.f32 0.5, %v5179_v13  ;;  %v10845_v13 = vld [vmem:[%s11154_s2 + $0x40] sm:$0xff] }
 0x793   :  { %v8749_v7 = vpop.eup %8748  ;;  %v5186_v23 = vadd.f32 0.5, %v5182_v40  ;;  %v5181_v0 = vmul.f32 0.5, %v8747_v49  ;;  %8756 = vtanh.f32 %v5194_v2  ;;  %8124 = vmatprep.subr.mxu1 %v4897_v59  ;;  %v5193_v27 = vmul.f32 0.5, %v5142_v47  ;;  %v10854_v49 = vld [vmem:[%s11154_s2 + $0x48] sm:$0xff] }
 0x794   :  { %v8751_v34 = vpop.eup %8750  ;;  %v5212_v16 = vmul.f32 %v8749_v7, %v5168_v54  ;;  %8125 = vmatpush3.msra.mxu1 %v4897_v59  ;;  %8758 = vtanh.f32 %v5192_v19  ;;  %v5208_v51 = vmul.f32 %v5184_v10, %v10549_v24  ;;  %v5169_v59 = vadd.f32 0.5, %v5165_v37  ;;  %v10859_v10 = vld [vmem:[%s11154_s2 + $0x50] sm:$0xff] }
 0x795   :  { %v5185_v42 = vadd.f32 0.5, %v5181_v0  ;;  %8127 = vmatmul.mubr.msk.f32.vlgmr.msra.gmra.mxu1 %vm85_vm0, %v10782_v58  ;;  %8760 = vtanh.f32 %v5193_v27  ;;  %v5210_v48 = vmul.f32 %v5186_v23, %v10553_v26  ;;  %v5211_v41 = vmul.f32 %v8751_v34, %v5167_v25  ;;  %v10818_v26 = vld [vmem:[%s11154_s2 + $0x28] sm:$0xff]  ;;  %v10868_v0 = vld [vmem:[%s11154_s2 + $0x58] sm:$0xff]  ;;  %v10873_v34 = vld [vmem:[%s11154_s2 + $0x60] sm:$0xff] }
 0x796   :  { %v8753_v20 = vpop.eup %8752  ;;  %8129 = vmatprep.mubr.msk.f32.mxu1 %vm85_vm0, %v10787_v28  ;;  %v10805_v12 = vadd.f32 %v5212_v16, %v5208_v51  ;;  %8762 = vtanh.f32 %v5191_v53  ;;  %v5207_v6 = vmul.f32 %v5183_v14, %v10559_v55  ;;  %v10828_v55 = vld [vmem:[%s11154_s2 + $0x30] sm:$0xff] }
 0x797   :  { %v5214_v9 = vmul.f32 %v8753_v20, %v5170_v31  ;;  %v5209_v62 = vmul.f32 %v5185_v42, %v10561_v60  ;;  %v10839_v60 = vld [vmem:[%s11154_s2 + $0x38] sm:$0xff]  ;;  %v10882_v20 = vld [vmem:[%s11154_s2 + $0x68] sm:$0xff] }
 0x798   :  { %v8755_v24 = vpop.eup %8754  ;;  %v10820_v45 = vadd.f32 %v5211_v41, %v5207_v6 }
 0x799   :  { %v10809_v29 = vadd.f32 %v5214_v9, %v5210_v48  ;;  %v5213_v61 = vmul.f32 %v8755_v24, %v5169_v59  ;;  %8130 = vmatmul.mubr.msk.f32.gmra.mxu1 %vm85_vm0, %v10797_v11  ;;  %v10887_v59 = vld [vmem:[%s11154_s2 + $0x70] sm:$0xff]  ;;  %v10896_v24 = vld [vmem:[%s11154_s2 + $0x78] sm:$0xff] }
 0x79a   :  { %8132 = vmatprep.mubr.msk.f32.mxu1 %vm85_vm0, %v10803_v50 }
 0x79b   :  { %v10822_v1 = vadd.f32 %v5213_v61, %v5209_v62  ;;  %8764 = vtanh.f32 %v10809_v29  ;;  %v10901_v62 = vld [vmem:[%s11153_s3 + $0x8] sm:$0xff]  ;;  %v5769_v61 = vld [vmem:[#allocation2 + $0x20] sm:$0xff] }
 0x79c   :  { %8766 = vtanh.f32 %v10805_v12 }
 0x79d   :  { %8768 = vtanh.f32 %v10822_v1  ;;  %8133 = vmatmul.mubr.msk.f32.gmra.mxu1 %vm85_vm0, %v10818_v26 }
 0x79e   :  { %8135 = vmatprep.mubr.msk.f32.mxu1 %vm85_vm0, %v10828_v55  ;;  %8770 = vtanh.f32 %v10820_v45 }
 0x7a0   :  { %v8757_v40 = vpop.eup %8756 }
 0x7a1   :  { %v5202_v19 = vmul.f32 0.5, %v8757_v40  ;;  %8136 = vmatmul.mubr.msk.f32.gmra.mxu1 %vm85_vm0, %v10839_v60  ;;  %v8759_v2 = vpop.eup %8758  ;;  %v10906_v40 = vld [vmem:[%s11153_s3 + $0x10] sm:$0xff] }
 0x7a2   :  { %8138 = vmatprep.mubr.msk.f32.mxu1 %vm85_vm0, %v10845_v13  ;;  %v8761_v54 = vpop.eup %8760  ;;  %v5200_v7 = vmul.f32 0.5, %v8759_v2  ;;  %v10924_v2 = vld [vmem:[%s11153_s3 + $0x20] sm:$0xff] }
 0x7a3   :  { %v8763_v47 = vpop.eup %8762  ;;  %v5206_v37 = vadd.f32 0.5, %v5202_v19  ;;  %v5201_v23 = vmul.f32 0.5, %v8761_v54  ;;  %v10919_v19 = vld [vmem:[%s11153_s3 + $0x18] sm:$0xff]  ;;  %v10938_v54 = vld [vmem:[%s11153_s3 + $0x30] sm:$0xff] }
 0x7a4   :  { %v5204_v53 = vadd.f32 0.5, %v5200_v7  ;;  %v5199_v27 = vmul.f32 0.5, %v8763_v47  ;;  %v10947_v47 = vld [vmem:[%s11153_s3 + $0x38] sm:$0xff]  ;;  %v10952_v7 = vld [vmem:[%s11153_s3 + $0x40] sm:$0xff] }
 0x7a5   :  { %8139 = vmatmul.mubr.msk.f32.gmra.mxu1 %vm85_vm0, %v10854_v49  ;;  %v5205_v31 = vadd.f32 0.5, %v5201_v23  ;;  %v10967_v23 = vld [vmem:[%s11153_s3 + $0x50] sm:$0xff] }
 0x7a6   :  { %8141 = vmatprep.mubr.msk.f32.mxu1 %vm85_vm0, %v10859_v10  ;;  %v5203_v41 = vadd.f32 0.5, %v5199_v27  ;;  %v10995_v27 = vld [vmem:[%s11153_s3 + $0x70] sm:$0xff] }
 0x7a7   :  { %11246 = vst [vmem:[#allocation6_spill] sm:$0xff] %v10995_v27 }
 0x7a8   :  { %v8765_v25 = vpop.eup %8764 }
 0x7a9   :  { %v8767_v16 = vpop.eup %8766  ;;  %v5226_v14 = vmul.f32 %v8765_v25, %v5206_v37  ;;  %8142 = vmatmul.mubr.msk.f32.gmra.mxu1 %vm85_vm0, %v10868_v0  ;;  %v10962_v37 = vld [vmem:[%s11153_s3 + $0x48] sm:$0xff]  ;;  %v10976_v25 = vld [vmem:[%s11153_s3 + $0x58] sm:$0xff] }
 0x7aa   :  { %v8769_v42 = vpop.eup %8768  ;;  %8144 = vmatprep.mubr.msk.f32.mxu1 %vm85_vm0, %v10873_v34  ;;  %v5224_v9 = vmul.f32 %v8767_v16, %v5204_v53  ;;  %v10981_v16 = vld [vmem:[%s11153_s3 + $0x60] sm:$0xff]  ;;  %v10990_v53 = vld [vmem:[%s11153_s3 + $0x68] sm:$0xff] }
 0x7ab   :  { %8084 = vmatprep.subr.mxu0 %v5226_v14  ;;  %v5225_v51 = vmul.f32 %v8769_v42, %v5205_v31  ;;  %v8771_v48 = vpop.eup %8770  ;;  %11244 = vst [vmem:[#allocation19_spill] sm:$0xff] %v10981_v16  ;;  %11245 = vst [vmem:[#allocation20_spill] sm:$0xff] %v10990_v53  ;;  %v11004_v31 = vld [vmem:[%s11153_s3 + $0x78] sm:$0xff] }
 0x7ac   :  { %8085 = vmatpush3.msra.mxu0 %v5226_v14  ;;  %v5223_v6 = vmul.f32 %v8771_v48, %v5203_v41  ;;  %11247 = vst [vmem:[#allocation7_spill] sm:$0xff] %v11004_v31 }
 0x7ad   :  { %8086 = vmatprep.subr.mxu0 %v5225_v51  ;;  %8145 = vmatmul.mubr.msk.f32.gmra.mxu1 %vm85_vm0, %v10882_v20 }
 0x7ae   :  { %8087 = vmatpush3.msra.mxu0 %v5225_v51  ;;  %8147 = vmatprep.mubr.msk.f32.mxu1 %vm85_vm0, %v10887_v59 }
 0x7af   :  { %8088 = vmatprep.subr.mxu0 %v5224_v9 }
 0x7b0   :  { %8089 = vmatpush3.msra.mxu0 %v5224_v9 }
 0x7b1   :  { %8090 = vmatprep.subr.mxu0 %v5223_v6  ;;  %8148 = vmatmul.mubr.msk.f32.gmra.mxu1 %vm85_vm0, %v10896_v24 }
 0x7b2   :  { %8091 = vmatpush3.msra.mxu0 %v5223_v6  ;;  %8192 = vmatprep.mubr.msk.f32.mxu1 %vm379_vm1, %v10740_v22  ;;  %v10933_v22 = vld [vmem:[%s11153_s3 + $0x28] sm:$0xff] }
 0x7b3   :  { %8093 = vmatmul.mubr.msk.f32.vlgmr.msra.gmra.mxu0 %vm379_vm1, %v10901_v62  ;;  %8150 = vmatprep.subr.mxu0 %v5769_v61 }
 0x7b4   :  { %8151 = vmatpush3.msra.mxu0 %v5769_v61  ;;  %8095 = vmatprep.mubr.msk.f32.mxu0 %vm379_vm1, %v10906_v40 }
 0x7b5   :  { %8152 = vmatprep.subr.mxu0 %v5226_v14 }
 0x7b6   :  { %8153 = vmatpush3.msra.mxu0 %v5226_v14 }
 0x7b7   :  { %8096 = vmatmul.mubr.msk.f32.gmra.mxu0 %vm379_vm1, %v10919_v19  ;;  %8154 = vmatprep.subr.mxu0 %v5225_v51 }
 0x7b8   :  { %8155 = vmatpush3.msra.mxu0 %v5225_v51  ;;  %8098 = vmatprep.mubr.msk.f32.mxu0 %vm379_vm1, %v10924_v2 }
 0x7b9   :  { %8156 = vmatprep.subr.mxu0 %v5224_v9 }
 0x7ba   :  { %8157 = vmatpush3.msra.mxu0 %v5224_v9 }
 0x7bb   :  { %8099 = vmatmul.mubr.msk.f32.gmra.mxu0 %vm379_vm1, %v10933_v22  ;;  %8158 = vmatprep.subr.mxu0 %v5223_v6 }
 0x7bc   :  { %8159 = vmatpush3.msra.mxu0 %v5223_v6  ;;  %8101 = vmatprep.mubr.msk.f32.mxu0 %vm379_vm1, %v10938_v54 }
 0x7bd   :  { %8216 = vmatprep.subr.mxu0 %v10733_v43 }
 0x7bf   :  { %8102 = vmatmul.mubr.msk.f32.gmra.mxu0 %vm379_vm1, %v10947_v47 }
 0x7c0   :  { %8104 = vmatprep.mubr.msk.f32.mxu0 %vm379_vm1, %v10952_v7 }
 0x7c3   :  { %8105 = vmatmul.mubr.msk.f32.gmra.mxu0 %vm379_vm1, %v10962_v37 }
 0x7c4   :  { %8107 = vmatprep.mubr.msk.f32.mxu0 %vm379_vm1, %v10967_v23 }
 0x7c7   :  { %8108 = vmatmul.mubr.msk.f32.gmra.mxu0 %vm379_vm1, %v10976_v25 }
 0x7c8   :  { %8110 = vmatprep.mubr.msk.f32.mxu0 %vm379_vm1, %v10981_v16 }
 0x7cb   :  { %8111 = vmatmul.mubr.msk.f32.gmra.mxu0 %vm379_vm1, %v10990_v53 }
 0x7cc   :  { %8113 = vmatprep.mubr.msk.f32.mxu0 %vm379_vm1, %v10995_v27 }
 0x7cf   :  { %8114 = vmatmul.mubr.msk.f32.gmra.mxu0 %vm379_vm1, %v11004_v31 }
 0x7d0   :  { %8160 = vmatprep.mubr.msk.f32.mxu0 %vm85_vm0, %v10622_v57 }
 0x7d3   :  { %8161 = vmatmul.mubr.msk.f32.vlgmr.msra.gmra.mxu0 %vm85_vm0, %v10631_v38 }
 0x7d4   :  { %8163 = vmatprep.mubr.msk.f32.mxu0 %vm85_vm0, %v10636_v30  ;;  %8217 = vmatpush3.msra.mxu0 %v10733_v43 }
 0x7d7   :  { %8164 = vmatmul.mubr.msk.f32.gmra.mxu0 %vm85_vm0, %v10645_v17 }
 0x7d8   :  { %8166 = vmatprep.mubr.msk.f32.mxu0 %vm85_vm0, %v10650_v52 }
 0x7db   :  { %8167 = vmatmul.mubr.msk.f32.gmra.mxu0 %vm85_vm0, %v10659_v5 }
 0x7dc   :  { %8169 = vmatprep.mubr.msk.f32.mxu0 %vm85_vm0, %v10664_v63 }
 0x7df   :  { %8170 = vmatmul.mubr.msk.f32.gmra.mxu0 %vm85_vm0, %v10673_v21 }
 0x7e0   :  { %8172 = vmatprep.mubr.msk.f32.mxu0 %vm85_vm0, %v10678_v15 }
 0x7e3   :  { %8173 = vmatmul.mubr.msk.f32.gmra.mxu0 %vm85_vm0, %v10687_v46 }
 0x7e4   :  { %8175 = vmatprep.mubr.msk.f32.mxu0 %vm85_vm0, %v10692_v56 }
 0x7e7   :  { %8176 = vmatmul.mubr.msk.f32.gmra.mxu0 %vm85_vm0, %v10701_v36 }
 0x7e8   :  { %8178 = vmatprep.mubr.msk.f32.mxu0 %vm85_vm0, %v10706_v35 }
 0x7eb   :  { %8179 = vmatmul.mubr.msk.f32.gmra.mxu0 %vm85_vm0, %v10715_v4 }
 0x7ec   :  { %8181 = vmatprep.mubr.msk.f32.mxu0 %vm85_vm0, %v10720_v18 }
 0x7ef   :  { %8182 = vmatmul.mubr.msk.f32.gmra.mxu0 %vm85_vm0, %v10729_v33 }
 0x7f0   :  { %8226 = vmatprep.mubr.msk.f32.mxu0 %vm85_vm0, %v10745_v8 }
 0x855   :  { %v8128_v57 = vpop.f32.mrf.mxu1 }
 0x857   :  { %v5558_v38 = vpop.f32.mrf.mxu1 }
 0x859   :  { %v8131_v30 = vpop.f32.mrf.mxu1 }
 0x85b   :  { %v5568_v17 = vpop.f32.mrf.mxu1 }
 0x85d   :  { %v8134_v52 = vpop.f32.mrf.mxu1 }
 0x85f   :  { %v5578_v5 = vpop.f32.mrf.mxu1 }
 0x861   :  { %v8137_v63 = vpop.f32.mrf.mxu1 }
 0x863   :  { %v5588_v21 = vpop.f32.mrf.mxu1 }
 0x865   :  { %v8140_v46 = vpop.f32.mrf.mxu1 }
 0x867   :  { %v5598_v18 = vpop.f32.mrf.mxu1 }
 0x869   :  { %v8143_v41 = vpop.f32.mrf.mxu1 }
 0x873   :  { %v8094_v15 = vpop.f32.mrf.mxu0 }
 0x874   :  { %v5564_v36 = vadd.f32 %v8128_v57, %v8094_v15  ;;  %v5608_v15 = vpop.f32.mrf.mxu1 }
 0x875   :  { %v5365_v56 = vpop.f32.mrf.mxu0 }
 0x876   :  { %v5559_v35 = vadd.f32 %v5558_v38, %v5365_v56  ;;  %v5642_v14 = vmul.f32 0.5, %v5564_v36 }
 0x877   :  { %v8097_v4 = vpop.f32.mrf.mxu0 }
 0x878   :  { %v5574_v43 = vadd.f32 %v8131_v30, %v8097_v4  ;;  %v5641_v42 = vmul.f32 0.5, %v5559_v35  ;;  %8772 = vtanh.f32 %v5642_v14  ;;  %v8146_v4 = vpop.f32.mrf.mxu1 }
 0x879   :  { %v5375_v33 = vpop.f32.mrf.mxu0 }
 0x87a   :  { %v5569_v8 = vadd.f32 %v5568_v17, %v5375_v33  ;;  %v5644_v9 = vmul.f32 0.5, %v5574_v43  ;;  %8774 = vtanh.f32 %v5641_v42 }
 0x87b   :  { %v8100_v51 = vpop.f32.mrf.mxu0 }
 0x87c   :  { %v5584_v48 = vadd.f32 %v8134_v52, %v8100_v51  ;;  %v5643_v27 = vmul.f32 0.5, %v5569_v8 }
 0x87d   :  { %v5385_v6 = vpop.f32.mrf.mxu0 }
 0x87e   :  { %v5658_v61 = vmul.f32 0.5, %v5584_v48  ;;  %v5579_v31 = vadd.f32 %v5578_v5, %v5385_v6 }
 0x87f   :  { %v8103_v53 = vpop.f32.mrf.mxu0 }
 0x880   :  { %8776 = vtanh.f32 %v5658_v61  ;;  %v5657_v57 = vmul.f32 0.5, %v5579_v31  ;;  %v5594_v38 = vadd.f32 %v8137_v63, %v8103_v53  ;;  %v5618_v53 = vpop.f32.mrf.mxu1 }
 0x881   :  { %8778 = vtanh.f32 %v5644_v9  ;;  %v5395_v30 = vpop.f32.mrf.mxu0 }
 0x882   :  { %8780 = vtanh.f32 %v5657_v57  ;;  %v5660_v56 = vmul.f32 0.5, %v5594_v38  ;;  %v5589_v17 = vadd.f32 %v5588_v21, %v5395_v30  ;;  %v8149_v51 = vpop.f32.mrf.mxu1 }
 0x883   :  { %8782 = vtanh.f32 %v5643_v27  ;;  %v8106_v52 = vpop.f32.mrf.mxu0 }
 0x884   :  { %8784 = vtanh.f32 %v5660_v56  ;;  %v5659_v36 = vmul.f32 0.5, %v5589_v17  ;;  %v5604_v35 = vadd.f32 %v8140_v46, %v8106_v52 }
 0x885   :  { %v5405_v43 = vpop.f32.mrf.mxu0  ;;  %v8773_v42 = vpop.eup %8772 }
 0x886   :  { %8786 = vtanh.f32 %v5659_v36  ;;  %v5599_v5 = vadd.f32 %v5598_v18, %v5405_v43  ;;  %v5650_v38 = vmul.f32 0.5, %v8773_v42 }
 0x887   :  { %8788 = vtanh.f32 %v5604_v35  ;;  %v8109_v33 = vpop.f32.mrf.mxu0  ;;  %v8775_v21 = vpop.eup %8774 }
 0x888   :  { %8790 = vtanh.f32 %v5599_v5  ;;  %v5614_v31 = vadd.f32 %v8143_v41, %v8109_v33  ;;  %v5649_v56 = vmul.f32 0.5, %v8775_v21 }
 0x889   :  { %v5415_v63 = vpop.f32.mrf.mxu0 }
 0x88a   :  { %8792 = vtanh.f32 %v5614_v31  ;;  %v5609_v14 = vadd.f32 %v5608_v15, %v5415_v63  ;;  %v5628_v15 = vpop.f32.mrf.mxu1  ;;  %v5653_v21 = vadd.f32 0.5, %v5649_v56 }
 0x88b   :  { %v8112_v8 = vpop.f32.mrf.mxu0 }
 0x88c   :  { %8794 = vtanh.f32 %v5609_v14  ;;  %v5624_v27 = vadd.f32 %v8146_v4, %v8112_v8  ;;  %v5654_v14 = vadd.f32 0.5, %v5650_v38 }
 0x88d   :  { %v8777_v48 = vpop.eup %8776  ;;  %v5425_v46 = vpop.f32.mrf.mxu0 }
 0x88e   :  { %v8779_v9 = vpop.eup %8778  ;;  %v5666_v6 = vmul.f32 0.5, %v8777_v48  ;;  %v5678_v61 = vmul.f32 0.5, %v5624_v27  ;;  %v5619_v18 = vadd.f32 %v5618_v53, %v5425_v46 }
 0x88f   :  { %v8781_v57 = vpop.eup %8780  ;;  %v8115_v30 = vpop.f32.mrf.mxu0  ;;  %v5652_v5 = vmul.f32 0.5, %v8779_v9 }
 0x890   :  { %v8783_v41 = vpop.eup %8782  ;;  %v5665_v17 = vmul.f32 0.5, %v8781_v57  ;;  %v5677_v52 = vmul.f32 0.5, %v5619_v18  ;;  %v5670_v35 = vadd.f32 0.5, %v5666_v6  ;;  %8796 = vtanh.f32 %v5678_v61 }
 0x891   :  { %v8785_v36 = vpop.eup %8784  ;;  %v5634_v43 = vadd.f32 %v8149_v51, %v8115_v30  ;;  %v5435_v4 = vpop.f32.mrf.mxu0  ;;  %v5651_v53 = vmul.f32 0.5, %v8783_v41  ;;  %v5656_v30 = vadd.f32 0.5, %v5652_v5 }
 0x892   :  { %v5669_v33 = vadd.f32 0.5, %v5665_v17  ;;  %v5668_v31 = vmul.f32 0.5, %v8785_v36  ;;  %8798 = vtanh.f32 %v5677_v52  ;;  %v5629_v42 = vadd.f32 %v5628_v15, %v5435_v4 }
 0x893   :  { %v8787_v63 = vpop.eup %8786  ;;  %v5680_v8 = vmul.f32 0.5, %v5634_v43  ;;  %v8162_v27 = vpop.f32.mrf.mxu0  ;;  %v5694_v6 = vmul.f32 %v5670_v35, %v10753_v39  ;;  %v5655_v15 = vadd.f32 0.5, %v5651_v53 }
 0x894   :  { %v8789_v48 = vpop.eup %8788  ;;  %v5672_v46 = vadd.f32 0.5, %v5668_v31  ;;  %v5667_v18 = vmul.f32 0.5, %v8787_v63  ;;  %v5968_v57 = vmul.f32 0.5, %v8162_v27  ;;  %v5679_v9 = vmul.f32 0.5, %v5629_v42 }
 0x895   :  { %v8791_v16 = vpop.eup %8790  ;;  %v5698_v51 = vmul.f32 %v8789_v48, %v5654_v14  ;;  %8800 = vtanh.f32 %v5680_v8  ;;  %v5884_v61 = vpop.f32.mrf.mxu0  ;;  %v5693_v17 = vmul.f32 %v5669_v33, %v10756_v3 }
 0x896   :  { %v5671_v38 = vadd.f32 0.5, %v5667_v18  ;;  %v5697_v41 = vmul.f32 %v8791_v16, %v5653_v21  ;;  %8802 = vtanh.f32 %v5679_v9  ;;  %v5967_v56 = vmul.f32 0.5, %v5884_v61 }
 0x897   :  { %v8793_v52 = vpop.eup %8792  ;;  %v11045_v36 = vadd.f32 %v5698_v51, %v5694_v6  ;;  %v8165_v43 = vpop.f32.mrf.mxu0  ;;  %v5696_v4 = vmul.f32 %v5672_v46, %v10761_v32  ;;  %8804 = vtanh.f32 %v5968_v57 }
 0x898   :  { %v11048_v31 = vadd.f32 %v5697_v41, %v5693_v17  ;;  %v5700_v39 = vmul.f32 %v8793_v52, %v5656_v30  ;;  %v5970_v5 = vmul.f32 0.5, %v8165_v43  ;;  %v5695_v16 = vmul.f32 %v5671_v38, %v10764_v44 }
 0x899   :  { %v8795_v35 = vpop.eup %8794  ;;  %8806 = vtanh.f32 %v11045_v36  ;;  %v5894_v3 = vpop.f32.mrf.mxu0 }
 0x89a   :  { %8808 = vtanh.f32 %v11048_v31  ;;  %v11053_v33 = vadd.f32 %v5700_v39, %v5696_v4  ;;  %v5699_v63 = vmul.f32 %v8795_v35, %v5655_v15  ;;  %v5969_v14 = vmul.f32 0.5, %v5894_v3 }
 0x89b   :  { %8810 = vtanh.f32 %v5967_v56  ;;  %v8168_v53 = vpop.f32.mrf.mxu0 }
 0x89c   :  { %8812 = vtanh.f32 %v11053_v33  ;;  %v11056_v32 = vadd.f32 %v5699_v63, %v5695_v16  ;;  %v5984_v8 = vmul.f32 0.5, %v8168_v53 }
 0x89d   :  { %8814 = vtanh.f32 %v5970_v5  ;;  %v5904_v42 = vpop.f32.mrf.mxu0  ;;  %v8797_v27 = vpop.eup %8796 }
 0x89e   :  { %8816 = vtanh.f32 %v11056_v32  ;;  %v5983_v48 = vmul.f32 0.5, %v5904_v42  ;;  %v5686_v18 = vmul.f32 0.5, %v8797_v27 }
 0x89f   :  { %v8799_v44 = vpop.eup %8798  ;;  %8818 = vtanh.f32 %v5969_v14  ;;  %v8171_v21 = vpop.f32.mrf.mxu0 }
 0x8a0   :  { %8820 = vtanh.f32 %v5984_v8  ;;  %v5986_v46 = vmul.f32 0.5, %v8171_v21  ;;  %v5685_v51 = vmul.f32 0.5, %v8799_v44  ;;  %v5690_v41 = vadd.f32 0.5, %v5686_v18 }
 0x8a1   :  { %8822 = vtanh.f32 %v5983_v48  ;;  %v5914_v57 = vpop.f32.mrf.mxu0 }
 0x8a2   :  { %v8801_v6 = vpop.eup %8800  ;;  %8824 = vtanh.f32 %v5986_v46  ;;  %v5985_v9 = vmul.f32 0.5, %v5914_v57  ;;  %v5689_v56 = vadd.f32 0.5, %v5685_v51 }
 0x8a3   :  { %v8174_v61 = vpop.f32.mrf.mxu0  ;;  %v8803_v30 = vpop.eup %8802  ;;  %v5688_v17 = vmul.f32 0.5, %v8801_v6 }
 0x8a4   :  { %8826 = vtanh.f32 %v5985_v9  ;;  %v8805_v38 = vpop.eup %8804  ;;  %v5687_v43 = vmul.f32 0.5, %v8803_v30 }
 0x8a5   :  { %8828 = vtanh.f32 %v8174_v61  ;;  %v5924_v52 = vpop.f32.mrf.mxu0  ;;  %v5692_v16 = vadd.f32 0.5, %v5688_v17  ;;  %v5976_v57 = vmul.f32 0.5, %v8805_v38 }
 0x8a6   :  { %v8807_v15 = vpop.eup %8806  ;;  %8830 = vtanh.f32 %v5924_v52  ;;  %v5691_v42 = vadd.f32 0.5, %v5687_v43 }
 0x8a7   :  { %v8809_v4 = vpop.eup %8808  ;;  %v5710_v39 = vmul.f32 %v8807_v15, %v5690_v41  ;;  %v8177_v35 = vpop.f32.mrf.mxu0 }
 0x8a8   :  { %v8811_v5 = vpop.eup %8810  ;;  %v5709_v3 = vmul.f32 %v8809_v4, %v5689_v56  ;;  %8832 = vtanh.f32 %v8177_v35  ;;  %v5980_v35 = vadd.f32 0.5, %v5976_v57 }
 0x8a9   :  { %v8813_v63 = vpop.eup %8812  ;;  %6899 = vst [vmem:[%s11155_s4 + $0xc8] sm:$0xff] %v5710_v39  ;;  %v5934_v14 = vpop.f32.mrf.mxu0  ;;  %v5975_v6 = vmul.f32 0.5, %v8811_v5 }
 0x8aa   :  { %v8815_v53 = vpop.eup %8814  ;;  %6898 = vst [vmem:[%s11155_s4 + $0xc0] sm:$0xff] %v5709_v3  ;;  %v5712_v8 = vmul.f32 %v8813_v63, %v5692_v16  ;;  %8834 = vtanh.f32 %v5934_v14 }
 0x8ab   :  { %v8817_v27 = vpop.eup %8816  ;;  %v8180_v48 = vpop.f32.mrf.mxu0  ;;  %v5978_v41 = vmul.f32 0.5, %v8815_v53  ;;  %v5979_v5 = vadd.f32 0.5, %v5975_v6 }
 0x8ac   :  { %v8819_v44 = vpop.eup %8818  ;;  %6901 = vst [vmem:[%s11155_s4 + $0xd8] sm:$0xff] %v5712_v8  ;;  %v5711_v21 = vmul.f32 %v8817_v27, %v5691_v42  ;;  %v6004_v46 = vmul.f32 0.5, %v8180_v48  ;;  %8218 = vmatprep.subr.mxu0 %v5712_v8 }
 0x8ad   :  { %v8821_v18 = vpop.eup %8820  ;;  %v5944_v51 = vpop.f32.mrf.mxu0  ;;  %8219 = vmatpush3.msra.mxu0 %v5712_v8  ;;  %v5977_v8 = vmul.f32 0.5, %v8819_v44 }
 0x8ae   :  { %v8823_v9 = vpop.eup %8822  ;;  %6900 = vst [vmem:[%s11155_s4 + $0xd0] sm:$0xff] %v5711_v21  ;;  %v5992_v61 = vmul.f32 0.5, %v8821_v18  ;;  %8836 = vtanh.f32 %v6004_v46  ;;  %v6003_v30 = vmul.f32 0.5, %v5944_v51  ;;  %8220 = vmatprep.subr.mxu0 %v5711_v21  ;;  %v5982_v18 = vadd.f32 0.5, %v5978_v41 }
 0x8af   :  { %v8825_v17 = vpop.eup %8824  ;;  %v5991_v52 = vmul.f32 0.5, %v8823_v9  ;;  %v8183_v15 = vpop.f32.mrf.mxu0  ;;  %8221 = vmatpush3.msra.mxu0 %v5711_v21  ;;  %v5981_v9 = vadd.f32 0.5, %v5977_v8 }
 0x8b0   :  { %v5996_v56 = vadd.f32 0.5, %v5992_v61  ;;  %v5994_v43 = vmul.f32 0.5, %v8825_v17  ;;  %8838 = vtanh.f32 %v6003_v30  ;;  %v6006_v38 = vmul.f32 0.5, %v8183_v15  ;;  %8222 = vmatprep.subr.mxu0 %v5710_v39 }
 0x8b1   :  { %v8827_v4 = vpop.eup %8826  ;;  %v5995_v16 = vadd.f32 0.5, %v5991_v52  ;;  %v5954_v63 = vpop.f32.mrf.mxu0  ;;  %8223 = vmatpush3.msra.mxu0 %v5710_v39 }
 0x8b2   :  { %v8829_v14 = vpop.eup %8828  ;;  %v5998_v42 = vadd.f32 0.5, %v5994_v43  ;;  %v5993_v27 = vmul.f32 0.5, %v8827_v4  ;;  %8840 = vtanh.f32 %v6006_v38  ;;  %8224 = vmatprep.subr.mxu0 %v5709_v3  ;;  %v6020_v48 = vmul.f32 %v5996_v56, %v10805_v12 }
 0x8b3   :  { %v8831_v53 = vpop.eup %8830  ;;  %v6024_v21 = vmul.f32 %v8829_v14, %v5980_v35  ;;  %v6005_v46 = vmul.f32 0.5, %v5954_v63  ;;  %8225 = vmatpush3.msra.mxu0 %v5709_v3  ;;  %v6019_v51 = vmul.f32 %v5995_v16, %v10820_v45 }
 0x8b4   :  { %v5997_v57 = vadd.f32 0.5, %v5993_v27  ;;  %v6023_v6 = vmul.f32 %v8831_v53, %v5979_v5  ;;  %8227 = vmatmul.mubr.msk.f32.vlgmr.msra.gmra.mxu0 %vm85_vm0, %v10782_v58  ;;  %v6022_v12 = vmul.f32 %v5998_v42, %v10809_v29 }
 0x8b5   :  { %v8833_v39 = vpop.eup %8832  ;;  %v6028_v44 = vadd.f32 %v6024_v21, %v6020_v48  ;;  %8842 = vtanh.f32 %v6005_v46  ;;  %8229 = vmatprep.mubr.msk.f32.mxu0 %vm85_vm0, %v10787_v28 }
 0x8b6   :  { %v6027_v61 = vadd.f32 %v6023_v6, %v6019_v51  ;;  %v6026_v30 = vmul.f32 %v8833_v39, %v5982_v18  ;;  %v6021_v45 = vmul.f32 %v5997_v57, %v10822_v1 }
 0x8b7   :  { %v8835_v3 = vpop.eup %8834  ;;  %8844 = vtanh.f32 %v6028_v44 }
 0x8b8   :  { %8846 = vtanh.f32 %v6027_v61  ;;  %v6030_v17 = vadd.f32 %v6026_v30, %v6022_v12  ;;  %v6025_v41 = vmul.f32 %v8835_v3, %v5981_v9  ;;  %8230 = vmatmul.mubr.msk.f32.gmra.mxu0 %vm85_vm0, %v10797_v11 }
 0x8b9   :  { %8232 = vmatprep.mubr.msk.f32.mxu0 %vm85_vm0, %v10803_v50 }
 0x8ba   :  { %8848 = vtanh.f32 %v6030_v17  ;;  %v6029_v58 = vadd.f32 %v6025_v41, %v6021_v45 }
 0x8bb   :  { %v8837_v28 = vpop.eup %8836 }
 0x8bc   :  { %8850 = vtanh.f32 %v6029_v58  ;;  %8233 = vmatmul.mubr.msk.f32.gmra.mxu0 %vm85_vm0, %v10818_v26  ;;  %v6012_v52 = vmul.f32 0.5, %v8837_v28 }
 0x8bd   :  { %v8839_v29 = vpop.eup %8838  ;;  %8235 = vmatprep.mubr.msk.f32.mxu0 %vm85_vm0, %v10828_v55 }
 0x8be   :  { %v6011_v15 = vmul.f32 0.5, %v8839_v29  ;;  %v6016_v11 = vadd.f32 0.5, %v6012_v52 }
 0x8bf   :  { %v8841_v1 = vpop.eup %8840 }
 0x8c0   :  { %v6014_v56 = vmul.f32 0.5, %v8841_v1  ;;  %8236 = vmatmul.mubr.msk.f32.gmra.mxu0 %vm85_vm0, %v10839_v60  ;;  %v6015_v38 = vadd.f32 0.5, %v6011_v15 }
 0x8c1   :  { %8238 = vmatprep.mubr.msk.f32.mxu0 %vm85_vm0, %v10845_v13 }
 0x8c2   :  { %v8843_v50 = vpop.eup %8842  ;;  %v6018_v4 = vadd.f32 0.5, %v6014_v56 }
 0x8c3   :  { %v6013_v26 = vmul.f32 0.5, %v8843_v50 }
 0x8c4   :  { %v8845_v43 = vpop.eup %8844  ;;  %8239 = vmatmul.mubr.msk.f32.gmra.mxu0 %vm85_vm0, %v10854_v49  ;;  %v11248_v49 = vld [vmem:[#allocation19_spill] sm:$0xff] }
 0x8c5   :  { %v8847_v35 = vpop.eup %8846  ;;  %v6036_v55 = vmul.f32 %v8845_v43, %v6016_v11  ;;  %8241 = vmatprep.mubr.msk.f32.mxu0 %vm85_vm0, %v10859_v10  ;;  %v6017_v60 = vadd.f32 0.5, %v6013_v26  ;;  %v11249_v10 = vld [vmem:[#allocation20_spill] sm:$0xff] }
 0x8c6   :  { %v6035_v5 = vmul.f32 %v8847_v35, %v6015_v38 }
 0x8c7   :  { %v8849_v16 = vpop.eup %8848 }
 0x8c8   :  { %v6038_v63 = vmul.f32 %v8849_v16, %v6018_v4  ;;  %8242 = vmatmul.mubr.msk.f32.gmra.mxu0 %vm85_vm0, %v10868_v0  ;;  %v11250_v0 = vld [vmem:[#allocation6_spill] sm:$0xff] }
 0x8c9   :  { %v8851_v13 = vpop.eup %8850  ;;  %8244 = vmatprep.mubr.msk.f32.mxu0 %vm85_vm0, %v10873_v34  ;;  %v11251_v34 = vld [vmem:[#allocation7_spill] sm:$0xff] }
 0x8ca   :  { %8184 = vmatprep.subr.mxu1 %v6038_v63  ;;  %v6037_v14 = vmul.f32 %v8851_v13, %v6017_v60 }
 0x8cb   :  { %8185 = vmatpush3.msra.mxu1 %v6038_v63 }
 0x8cc   :  { %8186 = vmatprep.subr.mxu1 %v6037_v14  ;;  %8245 = vmatmul.mubr.msk.f32.gmra.mxu0 %vm85_vm0, %v10882_v20 }
 0x8cd   :  { %8187 = vmatpush3.msra.mxu1 %v6037_v14  ;;  %8247 = vmatprep.mubr.msk.f32.mxu0 %vm85_vm0, %v10887_v59 }
 0x8ce   :  { %8188 = vmatprep.subr.mxu1 %v6036_v55 }
 0x8cf   :  { %8189 = vmatpush3.msra.mxu1 %v6036_v55 }
 0x8d0   :  { %8190 = vmatprep.subr.mxu1 %v6035_v5  ;;  %8248 = vmatmul.mubr.msk.f32.gmra.mxu0 %vm85_vm0, %v10896_v24 }
 0x8d1   :  { %8191 = vmatpush3.msra.mxu1 %v6035_v5 }
 0x8d2   :  { %8193 = vmatmul.mubr.msk.f32.vlgmr.msra.gmra.mxu1 %vm379_vm1, %v10901_v62 }
 0x8d3   :  { %8195 = vmatprep.mubr.msk.f32.mxu1 %vm379_vm1, %v10906_v40 }
 0x8d6   :  { %8196 = vmatmul.mubr.msk.f32.gmra.mxu1 %vm379_vm1, %v10919_v19 }
 0x8d7   :  { %8198 = vmatprep.mubr.msk.f32.mxu1 %vm379_vm1, %v10924_v2 }
 0x8da   :  { %8199 = vmatmul.mubr.msk.f32.gmra.mxu1 %vm379_vm1, %v10933_v22 }
 0x8db   :  { %8201 = vmatprep.mubr.msk.f32.mxu1 %vm379_vm1, %v10938_v54 }
 0x8de   :  { %8202 = vmatmul.mubr.msk.f32.gmra.mxu1 %vm379_vm1, %v10947_v47 }
 0x8df   :  { %8204 = vmatprep.mubr.msk.f32.mxu1 %vm379_vm1, %v10952_v7 }
 0x8e2   :  { %8205 = vmatmul.mubr.msk.f32.gmra.mxu1 %vm379_vm1, %v10962_v37 }
 0x8e3   :  { %8207 = vmatprep.mubr.msk.f32.mxu1 %vm379_vm1, %v10967_v23 }
 0x8e6   :  { %8208 = vmatmul.mubr.msk.f32.gmra.mxu1 %vm379_vm1, %v10976_v25 }
 0x8e7   :  { %8210 = vmatprep.mubr.msk.f32.mxu1 %vm379_vm1, %v11248_v49 }
 0x8ea   :  { %8211 = vmatmul.mubr.msk.f32.gmra.mxu1 %vm379_vm1, %v11249_v10 }
 0x8eb   :  { %8213 = vmatprep.mubr.msk.f32.mxu1 %vm379_vm1, %v11250_v0 }
 0x8ee   :  { %8214 = vmatmul.mubr.msk.f32.gmra.mxu1 %vm379_vm1, %v11251_v34 }
 0x974   :  { %v8228_v20 = vpop.f32.mrf.mxu0 }
 0x976   :  { %v6370_v59 = vpop.f32.mrf.mxu0 }
 0x978   :  { %v8231_v24 = vpop.f32.mrf.mxu0 }
 0x97a   :  { %v6380_v62 = vpop.f32.mrf.mxu0 }
 0x97c   :  { %v8234_v40 = vpop.f32.mrf.mxu0 }
 0x97e   :  { %v6390_v19 = vpop.f32.mrf.mxu0 }
 0x980   :  { %v8237_v2 = vpop.f32.mrf.mxu0 }
 0x982   :  { %v6400_v22 = vpop.f32.mrf.mxu0 }
 0x984   :  { %v8240_v37 = vpop.f32.mrf.mxu0 }
 0x986   :  { %v6410_v53 = vpop.f32.mrf.mxu0 }
 0x988   :  { %v8243_v44 = vpop.f32.mrf.mxu0 }
 0x98a   :  { %v6420_v41 = vpop.f32.mrf.mxu0 }
 0x98c   :  { %v8246_v52 = vpop.f32.mrf.mxu0 }
 0x98e   :  { %v6430_v50 = vpop.f32.mrf.mxu0 }
 0x990   :  { %v8249_v5 = vpop.f32.mrf.mxu0 }
 0x992   :  { %v8194_v54 = vpop.f32.mrf.mxu1 }
 0x993   :  { %v6376_v7 = vadd.f32 %v8228_v20, %v8194_v54 }
 0x994   :  { %v6177_v47 = vpop.f32.mrf.mxu1 }
 0x995   :  { %v6371_v23 = vadd.f32 %v6370_v59, %v6177_v47  ;;  %v6454_v27 = vmul.f32 0.5, %v6376_v7 }
 0x996   :  { %v8197_v25 = vpop.f32.mrf.mxu1 }
 0x997   :  { %v6386_v8 = vadd.f32 %v8231_v24, %v8197_v25  ;;  %v6453_v48 = vmul.f32 0.5, %v6371_v23  ;;  %8852 = vtanh.f32 %v6454_v27 }
 0x998   :  { %v6187_v42 = vpop.f32.mrf.mxu1 }
 0x999   :  { %v6381_v21 = vadd.f32 %v6380_v62, %v6187_v42  ;;  %v6456_v51 = vmul.f32 0.5, %v6386_v8  ;;  %8854 = vtanh.f32 %v6453_v48 }
 0x99a   :  { %v8200_v46 = vpop.f32.mrf.mxu1 }
 0x99b   :  { %v6396_v18 = vadd.f32 %v8234_v40, %v8200_v46  ;;  %v6455_v9 = vmul.f32 0.5, %v6381_v21  ;;  %v6440_v40 = vpop.f32.mrf.mxu0 }
 0x99c   :  { %v6197_v57 = vpop.f32.mrf.mxu1 }
 0x99d   :  { %v6470_v6 = vmul.f32 0.5, %v6396_v18  ;;  %v6391_v39 = vadd.f32 %v6390_v19, %v6197_v57 }
 0x99e   :  { %v8203_v12 = vpop.f32.mrf.mxu1 }
 0x99f   :  { %8856 = vtanh.f32 %v6470_v6  ;;  %v6469_v61 = vmul.f32 0.5, %v6391_v39  ;;  %v6406_v30 = vadd.f32 %v8237_v2, %v8203_v12 }
 0x9a0   :  { %8858 = vtanh.f32 %v6456_v51  ;;  %v6207_v3 = vpop.f32.mrf.mxu1 }
 0x9a1   :  { %8860 = vtanh.f32 %v6469_v61  ;;  %v6472_v45 = vmul.f32 0.5, %v6406_v30  ;;  %v6401_v17 = vadd.f32 %v6400_v22, %v6207_v3 }
 0x9a2   :  { %8862 = vtanh.f32 %v6455_v9  ;;  %v8206_v58 = vpop.f32.mrf.mxu1 }
 0x9a3   :  { %8864 = vtanh.f32 %v6472_v45  ;;  %v6471_v28 = vmul.f32 0.5, %v6401_v17  ;;  %v6416_v29 = vadd.f32 %v8240_v37, %v8206_v58 }
 0x9a4   :  { %v6217_v1 = vpop.f32.mrf.mxu1  ;;  %v8853_v4 = vpop.eup %8852 }
 0x9a5   :  { %8866 = vtanh.f32 %v6471_v28  ;;  %v6411_v15 = vadd.f32 %v6410_v53, %v6217_v1  ;;  %v6462_v0 = vmul.f32 0.5, %v8853_v4 }
 0x9a6   :  { %8868 = vtanh.f32 %v6416_v29  ;;  %v8209_v56 = vpop.f32.mrf.mxu1  ;;  %v8855_v35 = vpop.eup %8854 }
 0x9a7   :  { %8870 = vtanh.f32 %v6411_v15  ;;  %v6426_v11 = vadd.f32 %v8243_v44, %v8209_v56  ;;  %v6461_v59 = vmul.f32 0.5, %v8855_v35  ;;  %v6466_v25 = vadd.f32 0.5, %v6462_v0 }
 0x9a8   :  { %v6227_v43 = vpop.f32.mrf.mxu1 }
 0x9a9   :  { %8872 = vtanh.f32 %v6426_v11  ;;  %v6421_v38 = vadd.f32 %v6420_v41, %v6227_v43  ;;  %v6465_v53 = vadd.f32 0.5, %v6461_v59 }
 0x9aa   :  { %v8212_v26 = vpop.f32.mrf.mxu1 }
 0x9ab   :  { %8874 = vtanh.f32 %v6421_v38  ;;  %v6436_v55 = vadd.f32 %v8246_v52, %v8212_v26 }
 0x9ac   :  { %v8857_v16 = vpop.eup %8856  ;;  %v6237_v60 = vpop.f32.mrf.mxu1 }
 0x9ad   :  { %v8859_v63 = vpop.eup %8858  ;;  %v6478_v13 = vmul.f32 0.5, %v8857_v16  ;;  %v6490_v14 = vmul.f32 0.5, %v6436_v55  ;;  %v6431_v49 = vadd.f32 %v6430_v50, %v6237_v60 }
 0x9ae   :  { %v8861_v10 = vpop.eup %8860  ;;  %v8215_v34 = vpop.f32.mrf.mxu1  ;;  %v6464_v47 = vmul.f32 0.5, %v8859_v63 }
 0x9af   :  { %v8863_v20 = vpop.eup %8862  ;;  %v6477_v24 = vmul.f32 0.5, %v8861_v10  ;;  %8876 = vtanh.f32 %v6490_v14  ;;  %v6489_v62 = vmul.f32 0.5, %v6431_v49  ;;  %v6482_v2 = vadd.f32 0.5, %v6478_v13 }
 0x9b0   :  { %v8865_v19 = vpop.eup %8864  ;;  %v6446_v22 = vadd.f32 %v8249_v5, %v8215_v34  ;;  %v6247_v54 = vpop.f32.mrf.mxu1  ;;  %v6463_v48 = vmul.f32 0.5, %v8863_v20  ;;  %v6468_v39 = vadd.f32 0.5, %v6464_v47 }
 0x9b1   :  { %v6481_v7 = vadd.f32 0.5, %v6477_v24  ;;  %v6480_v37 = vmul.f32 0.5, %v8865_v19  ;;  %8878 = vtanh.f32 %v6489_v62  ;;  %v6441_v42 = vadd.f32 %v6440_v40, %v6247_v54 }
 0x9b2   :  { %v8867_v23 = vpop.eup %8866  ;;  %v6492_v8 = vmul.f32 0.5, %v6446_v22  ;;  %v6506_v51 = vmul.f32 %v6482_v2, %v11045_v36  ;;  %v6467_v3 = vadd.f32 0.5, %v6463_v48 }
 0x9b3   :  { %v8869_v27 = vpop.eup %8868  ;;  %v6484_v21 = vadd.f32 0.5, %v6480_v37  ;;  %v6479_v46 = vmul.f32 0.5, %v8867_v23  ;;  %v6491_v6 = vmul.f32 0.5, %v6441_v42  ;;  %v6505_v44 = vmul.f32 %v6481_v7, %v11048_v31 }
 0x9b4   :  { %v8871_v18 = vpop.eup %8870  ;;  %v6510_v57 = vmul.f32 %v8869_v27, %v6466_v25  ;;  %8880 = vtanh.f32 %v6492_v8 }
 0x9b5   :  { %v6483_v9 = vadd.f32 0.5, %v6479_v46  ;;  %v6509_v12 = vmul.f32 %v8871_v18, %v6465_v53  ;;  %8882 = vtanh.f32 %v6491_v6  ;;  %v6508_v45 = vmul.f32 %v6484_v21, %v11053_v33 }
 0x9b6   :  { %v8873_v61 = vpop.eup %8872  ;;  %v6514_v30 = vadd.f32 %v6510_v57, %v6506_v51 }
 0x9b7   :  { %v6513_v17 = vadd.f32 %v6509_v12, %v6505_v44  ;;  %v6512_v41 = vmul.f32 %v8873_v61, %v6468_v39  ;;  %v6507_v36 = vmul.f32 %v6483_v9, %v11056_v32 }
 0x9b8   :  { %v8875_v58 = vpop.eup %8874  ;;  %8884 = vtanh.f32 %v6514_v30 }
 0x9b9   :  { %8886 = vtanh.f32 %v6513_v17  ;;  %v6516_v28 = vadd.f32 %v6512_v41, %v6508_v45  ;;  %v6511_v29 = vmul.f32 %v8875_v58, %v6467_v3 }
 0x9bb   :  { %8888 = vtanh.f32 %v6516_v28  ;;  %v6515_v52 = vadd.f32 %v6511_v29, %v6507_v36 }
 0x9bc   :  { %v8877_v31 = vpop.eup %8876 }
 0x9bd   :  { %8890 = vtanh.f32 %v6515_v52  ;;  %v6498_v15 = vmul.f32 0.5, %v8877_v31 }
 0x9be   :  { %v8879_v1 = vpop.eup %8878 }
 0x9bf   :  { %v6497_v11 = vmul.f32 0.5, %v8879_v1  ;;  %v6502_v50 = vadd.f32 0.5, %v6498_v15 }
 0x9c1   :  { %v8881_v56 = vpop.eup %8880  ;;  %v6501_v4 = vadd.f32 0.5, %v6497_v11 }
 0x9c2   :  { %v6500_v43 = vmul.f32 0.5, %v8881_v56  ;;  %v8883_v33 = vpop.eup %8882 }
 0x9c3   :  { %v6499_v35 = vmul.f32 0.5, %v8883_v33 }
 0x9c4   :  { %v6504_v26 = vadd.f32 0.5, %v6500_v43 }
 0x9c5   :  { %v8885_v38 = vpop.eup %8884  ;;  %v6503_v63 = vadd.f32 0.5, %v6499_v35 }
 0x9c6   :  { %v8887_v55 = vpop.eup %8886  ;;  %v6522_v32 = vmul.f32 %v8885_v38, %v6502_v50 }
 0x9c7   :  { %v6521_v5 = vmul.f32 %v8887_v55, %v6501_v4 }
 0x9c8   :  { %v8889_v16 = vpop.eup %8888  ;;  %6951 = vst [vmem:[%s11155_s4 + $0xe8] sm:$0xff] %v6522_v32 }
 0x9c9   :  { %6950 = vst [vmem:[%s11155_s4 + $0xe0] sm:$0xff] %v6521_v5  ;;  %v6524_v60 = vmul.f32 %v8889_v16, %v6504_v26 }
 0x9ca   :  { %v8891_v13 = vpop.eup %8890 }
 0x9cb   :  { %6953 = vst [vmem:[%s11155_s4 + $0xf8] sm:$0xff] %v6524_v60  ;;  %v6523_v14 = vmul.f32 %v8891_v13, %v6503_v63 }
 0x9cd   :  { %6952 = vst [vmem:[%s11155_s4 + $0xf0] sm:$0xff] %v6523_v14 }

</bundles_post_ra>
